<compile_context>
chip_gen: v5e
topology: v5e:2x2
jax: 0.10.0
libtpu: 0.0.40
codegen_flags: <defaults>
</compile_context>

<pallas_src>
import jax
import jax.numpy as jnp
from jax import lax
from jax.experimental import pallas as pl
from jax.experimental.pallas import tpu as pltpu

EPS = 1e-5
LANE = 128


# ---------------------------------------------------------------- kernel body

def _normalize_rows(x):
    # BatchNorm1d (training mode) WITHOUT affine: (x - mean) * rsqrt(var + eps).
    # Single-pass statistics, biased variance, f32 math.
    mean = jnp.mean(x, axis=0, keepdims=True)
    mean_sq = jnp.mean(x * x, axis=0, keepdims=True)
    var = jnp.maximum(mean_sq - mean * mean, 0.0)
    return (x - mean) * lax.rsqrt(var + EPS)


def fused_gcn_kernel(a_ref, x0_ref, pool_ref, w_ref, p_ref, o_ref):
    # a_ref   : (N, N)   bf16   symmetric-normalized adjacency A_hat
    # x0_ref  : (N, P)   f32    padded raw node features
    # pool_ref: (G, N)   bf16   exact 0/1 graph-membership matrix
    # w_ref   : (6, P, P) bf16  [W1'..W4', W5', W6']  (BN gammas folded in)
    # p_ref   : (16, P)  f32    rows 0-3: c_k = beta_{k-1}@W_k ; rows 4-7: b_k ;
    #                           row 8: b5' ; row 9: b6' ; rest zero
    # o_ref   : (G, P)   f32
    p = p_ref[...]
    a_bf = a_ref[...]

    # bn0 normalization (its affine is folded into W1' / c_1).
    x = _normalize_rows(x0_ref[...])

    # 4x GCNConv + ReLU + BN (unrolled at trace time).
    for i in range(4):
        xw = jnp.dot(x.astype(jnp.bfloat16), w_ref[i],
                     preferred_element_type=jnp.float32)
        xw = xw + p[i:i + 1, :]                       # beta_{k-1}@W_k, pre-aggregation
        h = jnp.dot(a_bf, xw.astype(jnp.bfloat16),
                    preferred_element_type=jnp.float32)
        h = jnp.maximum(h + p[4 + i:5 + i, :], 0.0)   # GCNConv bias + ReLU
        x = _normalize_rows(h)                        # bn_k (affine folded forward)

    # global_mean_pool: exact binary matmul (sum) then f32 mean rescale on (G, P).
    pool_bf = pool_ref[...]
    counts = jnp.sum(pool_bf.astype(jnp.float32), axis=1, keepdims=True)
    pooled = jnp.dot(pool_bf, x.astype(jnp.bfloat16),
                     preferred_element_type=jnp.float32)
    pooled = pooled / jnp.maximum(counts, 1.0)        # (bn4 affine already in W5'/b5')

    # fc5 -> ReLU -> bn5 -> fc6
    h5 = jnp.dot(pooled.astype(jnp.bfloat16), w_ref[4],
                 preferred_element_type=jnp.float32)
    h5 = jnp.maximum(h5 + p[8:9, :], 0.0)
    h5 = _normalize_rows(h5)                          # bn5 (affine folded into W6'/b6')
    o_ref[...] = jnp.dot(h5.astype(jnp.bfloat16), w_ref[5],
                         preferred_element_type=jnp.float32) + p[9:10, :]


# ---------------------------------------------------------------- glue (plain JAX)

def _rup(n, m=LANE):
    return ((n + m - 1) // m) * m


def _pad2(a, pr, pc):
    return jnp.pad(a, ((0, pr - a.shape[0]), (0, pc - a.shape[1])))


def normalized_adjacency(edge_index, num_nodes):
    """A_hat = D^-1/2 (A + I) D^-1/2, matching PyG GCNConv default normalization.

    Duplicate edges sum; self loops are re-set to weight 1 (add_remaining_self_loops
    semantics for unweighted graphs); A[dst, src] orientation = source_to_target flow.
    """
    src, dst = edge_index
    a = jnp.zeros((num_nodes, num_nodes), jnp.float32)
    w = jnp.where(src == dst, 0.0, 1.0)
    a = a.at[dst, src].add(w)
    idx = jnp.arange(num_nodes)
    a = a.at[idx, idx].set(1.0)
    deg = a.sum(axis=1)
    dinv = lax.rsqrt(deg)
    return a * dinv[:, None] * dinv[None, :]


def pooling_matrix(batch, num_graphs):
    """Exact 0/1 membership matrix P[g, n] = (batch[n] == g); mean rescale is in-kernel."""
    return (batch[None, :] == jnp.arange(num_graphs)[:, None]).astype(jnp.float32)


def init_params(key, in_channels, hidden, out_channels):
    ks = jax.random.split(key, 12)

    def lin(k, fan_in, fan_out):
        return (jax.random.normal(k, (fan_in, fan_out), jnp.float32)
                * (1.0 / jnp.sqrt(fan_in)))

    p = {}
    dims = [(in_channels, hidden), (hidden, hidden), (hidden, hidden), (hidden, hidden)]
    for i, (fi, fo) in enumerate(dims, start=1):
        p[f"w{i}"] = lin(ks[i], fi, fo)
        p[f"b{i}"] = jnp.zeros((1, fo), jnp.float32)
        p[f"g{i}"] = jnp.ones((1, fo), jnp.float32)
        p[f"be{i}"] = jnp.zeros((1, fo), jnp.float32)
    p["g0"] = jnp.ones((1, in_channels), jnp.float32)
    p["be0"] = jnp.zeros((1, in_channels), jnp.float32)
    p["w5"] = lin(ks[9], hidden, hidden)
    p["b5"] = 0.01 * jnp.ones((1, hidden), jnp.float32)
    p["g5"] = jnp.ones((1, hidden), jnp.float32)
    p["be5"] = jnp.zeros((1, hidden), jnp.float32)
    p["w6"] = lin(ks[10], hidden, out_channels)
    p["b6"] = 0.01 * jnp.ones((1, out_channels), jnp.float32)
    return p


def pack_params(params, P):
    """Fold BN affines forward and pack weights / row params into two VMEM slabs.

    y = x_hat*g + be ; y @ W = x_hat @ (g[:,None]*W) + (be @ W).
    For GCNConv, (be @ W) must be added BEFORE the A_hat aggregation (c_k rows);
    for plain Linear (fc5, fc6) it folds exactly into the bias.
    """
    gam = [params["g0"][0], params["g1"][0], params["g2"][0], params["g3"][0]]
    bet = [params["be0"][0], params["be1"][0], params["be2"][0], params["be3"][0]]

    w_fold, c_rows, b_rows = [], [], []
    for i in range(4):
        W = params[f"w{i + 1}"]
        w_fold.append(W * gam[i][:, None])
        c_rows.append(bet[i] @ W)
        b_rows.append(params[f"b{i + 1}"][0])

    W5, W6 = params["w5"], params["w6"]
    W5f = W5 * params["g4"][0][:, None]
    b5f = params["b5"][0] + params["be4"][0] @ W5
    W6f = W6 * params["g5"][0][:, None]
    b6f = params["b6"][0] + params["be5"][0] @ W6

    wl = jnp.stack([_pad2(w, P, P) for w in (w_fold + [W5f, W6f])]).astype(jnp.bfloat16)

    slab = jnp.zeros((16, P), jnp.float32)
    for r, v in enumerate(c_rows + b_rows + [b5f, b6f]):
        slab = slab.at[r, :v.shape[0]].set(v)
    return wl, slab


def gcn_forward(params, pos, norm, edge_index, batch, num_graphs, selection=None):
    """Batched forward. pos/norm: (S,N,3), edge_index: (S,2,E), batch: (S,N)."""
    # x = cat([pos, norm], dim=1); data.x is None in this synthetic setup.
    x = jnp.concatenate([pos, norm], axis=-1).astype(jnp.float32)
    if selection is not None:
        x = (x * selection).astype(jnp.float32)

    s, n, in_c = x.shape
    hidden = params["w1"].shape[1]
    out_c = params["w6"].shape[1]
    g = num_graphs
    # Common lane-dense padded channel width. Padded channels carry zero weights/biases,
    # so they stay exactly zero through every layer and are sliced off at the end.
    P = max(_rup(in_c), _rup(hidden), _rup(out_c))

    a_hat = jax.vmap(lambda ei: normalized_adjacency(ei, n))(edge_index).astype(jnp.bfloat16)
    pool = jax.vmap(lambda b: pooling_matrix(b, g))(batch).astype(jnp.bfloat16)
    x0 = jnp.pad(x, ((0, 0), (0, 0), (0, P - in_c)))
    wl, pslab = pack_params(params, P)

    # Advisory cost estimate (per whole batched call).
    flops_per_s = 4 * (2 * n * P * P + 2 * n * n * P) + 2 * g * n * P + 2 * (2 * g * P * P)
    inputs = (a_hat, x0, pool, wl, pslab)
    bytes_acc = sum(int(t.size) * t.dtype.itemsize for t in inputs) + s * g * P * 4

    out = pl.pallas_call(
        fused_gcn_kernel,
        out_shape=jax.ShapeDtypeStruct((s, g, P), jnp.float32),
        grid=(s,),
        in_specs=[
            pl.BlockSpec((None, n, n), lambda i: (i, 0, 0)),   # per-sample A_hat
            pl.BlockSpec((None, n, P), lambda i: (i, 0, 0)),   # per-sample features
            pl.BlockSpec((None, g, n), lambda i: (i, 0, 0)),   # per-sample pool matrix
            pl.BlockSpec((6, P, P), lambda i: (0, 0, 0)),      # weights: resident
            pl.BlockSpec((16, P), lambda i: (0, 0)),           # param slab: resident
        ],
        out_specs=pl.BlockSpec((None, g, P), lambda i: (i, 0, 0)),
        compiler_params=pltpu.CompilerParams(dimension_semantics=("parallel",)),
        cost_estimate=pl.CostEstimate(flops=int(s * flops_per_s),
                                      transcendentals=int(6 * P * s),
                                      bytes_accessed=int(bytes_acc)),
    )(*inputs)

    return out[:, :, :out_c]


# ---------------------------------------------------------------- main

if __name__ == "__main__":
    key = jax.random.PRNGKey(0)
    k_pos, k_norm, k_edge, k_param = jax.random.split(key, 4)

    S = 2          # independent mini-batches -> grid axis ("parallel", uses both v7x TCs)
    G = 4          # graphs per mini-batch
    NPG = 64       # nodes per graph
    N = G * NPG    # 256 node rows per mini-batch -> fills the 256-wide v6e/v7x MXU
    IN_C = 6       # pos(3) + norm(3)
    HIDDEN = 32
    OUT_C = 8
    EPG = 256      # directed edges per graph

    pos = jax.random.normal(k_pos, (S, N, 3), jnp.float32)
    nrm = jax.random.normal(k_norm, (S, N, 3), jnp.float32)

    # Edges stay inside their graph block (block-diagonal adjacency, like a PyG Batch).
    e_local = jax.random.randint(k_edge, (S, G, 2, EPG), 0, NPG, dtype=jnp.int32)
    offsets = (jnp.arange(G, dtype=jnp.int32) * NPG)[None, :, None, None]
    edge_index = (e_local + offsets).transpose(0, 2, 1, 3).reshape(S, 2, G * EPG)

    batch_row = jnp.repeat(jnp.arange(G, dtype=jnp.int32), NPG)
    batch = jnp.tile(batch_row[None, :], (S, 1))

    params = init_params(k_param, IN_C, HIDDEN, OUT_C)

    out = gcn_forward(params, pos, nrm, edge_index, batch, G)
    out = jax.block_until_ready(out)

    assert out.shape == (S, G, OUT_C)
    assert bool(jnp.all(jnp.isfinite(out)))
    print("KERNEL_OK")
</pallas_src>

<mosaic_0001>
module attributes {stable_mosaic.version = 11 : i64} {
  func.func @fused_gcn_kernel(%arg0: i32, %arg1: memref<1x256x256xbf16, #tpu.memory_space<vmem>>, %arg2: memref<1x256x128xf32, #tpu.memory_space<vmem>>, %arg3: memref<1x4x256xbf16, #tpu.memory_space<vmem>>, %arg4: memref<6x128x128xbf16, #tpu.memory_space<vmem>>, %arg5: memref<16x128xf32, #tpu.memory_space<vmem>>, %arg6: memref<1x4x128xf32, #tpu.memory_space<vmem>>) attributes {dimension_semantics = [#tpu.dimension_semantics<parallel>], iteration_bounds = array<i64: 2>, scalar_prefetch = 0 : i64, scratch_operands = 0 : i64, tpu.core_type = #tpu.core_type<tc>, window_params = [{transform_indices = @transform_0, window_bounds = array<i64: 1, 256, 256>}, {transform_indices = @transform_1, window_bounds = array<i64: 1, 256, 128>}, {transform_indices = @transform_2, window_bounds = array<i64: 1, 4, 256>}, {pipeline_mode = #tpu.pipeline_mode<synchronous>, transform_indices = @transform_3, window_bounds = array<i64: 6, 128, 128>}, {pipeline_mode = #tpu.pipeline_mode<synchronous>, transform_indices = @transform_4, window_bounds = array<i64: 16, 128>}, {transform_indices = @transform_5, window_bounds = array<i64: 1, 4, 128>}]} {
    %c0 = arith.constant 0 : index
    %c0_0 = arith.constant 0 : index
    %0 = vector.load %arg5[%c0, %c0_0] : memref<16x128xf32, #tpu.memory_space<vmem>>, vector<16x128xf32>
    %c0_1 = arith.constant 0 : index
    %c0_2 = arith.constant 0 : index
    %c0_3 = arith.constant 0 : index
    %1 = vector.load %arg1[%c0_1, %c0_2, %c0_3] : memref<1x256x256xbf16, #tpu.memory_space<vmem>>, vector<1x256x256xbf16>
    %2 = vector.shape_cast %1 : vector<1x256x256xbf16> to vector<256x256xbf16>
    %c0_4 = arith.constant 0 : index
    %c0_5 = arith.constant 0 : index
    %c0_6 = arith.constant 0 : index
    %3 = vector.load %arg2[%c0_4, %c0_5, %c0_6] : memref<1x256x128xf32, #tpu.memory_space<vmem>>, vector<1x256x128xf32>
    %4 = vector.shape_cast %3 : vector<1x256x128xf32> to vector<256x128xf32>
    %cst = arith.constant dense<0.000000e+00> : vector<128xf32>
    %5 = vector.multi_reduction <add>, %4, %cst [0] : vector<256x128xf32> to vector<128xf32>
    %6 = vector.shape_cast %5 : vector<128xf32> to vector<1x128xf32>
    %cst_7 = arith.constant 2.560000e+02 : f32
    %7 = vector.broadcast %cst_7 : f32 to vector<1x128xf32>
    %8 = arith.divf %6, %7 : vector<1x128xf32>
    %9 = arith.mulf %4, %4 : vector<256x128xf32>
    %cst_8 = arith.constant dense<0.000000e+00> : vector<128xf32>
    %10 = vector.multi_reduction <add>, %9, %cst_8 [0] : vector<256x128xf32> to vector<128xf32>
    %11 = vector.shape_cast %10 : vector<128xf32> to vector<1x128xf32>
    %cst_9 = arith.constant 2.560000e+02 : f32
    %12 = vector.broadcast %cst_9 : f32 to vector<1x128xf32>
    %13 = arith.divf %11, %12 : vector<1x128xf32>
    %14 = arith.mulf %8, %8 : vector<1x128xf32>
    %15 = arith.subf %13, %14 : vector<1x128xf32>
    %cst_10 = arith.constant 0.000000e+00 : f32
    %16 = vector.broadcast %cst_10 : f32 to vector<1x128xf32>
    %17 = arith.maximumf %15, %16 : vector<1x128xf32>
    %18 = vector.broadcast %8 : vector<1x128xf32> to vector<256x128xf32>
    %19 = arith.subf %4, %18 : vector<256x128xf32>
    %cst_11 = arith.constant 9.99999974E-6 : f32
    %20 = vector.broadcast %cst_11 : f32 to vector<1x128xf32>
    %21 = arith.addf %17, %20 : vector<1x128xf32>
    %22 = math.rsqrt %21 : vector<1x128xf32>
    %23 = vector.broadcast %22 : vector<1x128xf32> to vector<256x128xf32>
    %24 = arith.mulf %19, %23 : vector<256x128xf32>
    %25 = arith.truncf %24 : vector<256x128xf32> to vector<256x128xbf16>
    %c0_12 = arith.constant 0 : index
    %c0_13 = arith.constant 0 : index
    %c0_14 = arith.constant 0 : index
    %26 = vector.load %arg4[%c0_12, %c0_13, %c0_14] : memref<6x128x128xbf16, #tpu.memory_space<vmem>>, vector<1x128x128xbf16>
    %27 = vector.shape_cast %26 : vector<1x128x128xbf16> to vector<128x128xbf16>
    %cst_15 = arith.constant dense<0.000000e+00> : vector<256x128xf32>
    %28 = tpu.matmul %25, %27, %cst_15 {dimension_numbers = #tpu.dot_dimension_numbers<[1], [0], [0], [1], [0, 0, 1, 1], [], []>} : vector<256x128xbf16>, vector<128x128xbf16>, vector<256x128xf32> -> vector<256x128xf32>
    %29 = vector.extract_strided_slice %0 {offsets = [0, 0], sizes = [1, 128], strides = [1, 1]} : vector<16x128xf32> to vector<1x128xf32>
    %30 = vector.broadcast %29 : vector<1x128xf32> to vector<256x128xf32>
    %31 = arith.addf %28, %30 : vector<256x128xf32>
    %32 = arith.truncf %31 : vector<256x128xf32> to vector<256x128xbf16>
    %cst_16 = arith.constant dense<0.000000e+00> : vector<256x128xf32>
    %33 = tpu.matmul %2, %32, %cst_16 {dimension_numbers = #tpu.dot_dimension_numbers<[1], [0], [0], [1], [0, 0, 1, 1], [], []>} : vector<256x256xbf16>, vector<256x128xbf16>, vector<256x128xf32> -> vector<256x128xf32>
    %34 = vector.extract_strided_slice %0 {offsets = [4, 0], sizes = [1, 128], strides = [1, 1]} : vector<16x128xf32> to vector<1x128xf32>
    %35 = vector.broadcast %34 : vector<1x128xf32> to vector<256x128xf32>
    %36 = arith.addf %33, %35 : vector<256x128xf32>
    %cst_17 = arith.constant 0.000000e+00 : f32
    %37 = vector.broadcast %cst_17 : f32 to vector<256x128xf32>
    %38 = arith.maximumf %36, %37 : vector<256x128xf32>
    %cst_18 = arith.constant dense<0.000000e+00> : vector<128xf32>
    %39 = vector.multi_reduction <add>, %38, %cst_18 [0] : vector<256x128xf32> to vector<128xf32>
    %40 = vector.shape_cast %39 : vector<128xf32> to vector<1x128xf32>
    %cst_19 = arith.constant 2.560000e+02 : f32
    %41 = vector.broadcast %cst_19 : f32 to vector<1x128xf32>
    %42 = arith.divf %40, %41 : vector<1x128xf32>
    %43 = arith.mulf %38, %38 : vector<256x128xf32>
    %cst_20 = arith.constant dense<0.000000e+00> : vector<128xf32>
    %44 = vector.multi_reduction <add>, %43, %cst_20 [0] : vector<256x128xf32> to vector<128xf32>
    %45 = vector.shape_cast %44 : vector<128xf32> to vector<1x128xf32>
    %cst_21 = arith.constant 2.560000e+02 : f32
    %46 = vector.broadcast %cst_21 : f32 to vector<1x128xf32>
    %47 = arith.divf %45, %46 : vector<1x128xf32>
    %48 = arith.mulf %42, %42 : vector<1x128xf32>
    %49 = arith.subf %47, %48 : vector<1x128xf32>
    %cst_22 = arith.constant 0.000000e+00 : f32
    %50 = vector.broadcast %cst_22 : f32 to vector<1x128xf32>
    %51 = arith.maximumf %49, %50 : vector<1x128xf32>
    %52 = vector.broadcast %42 : vector<1x128xf32> to vector<256x128xf32>
    %53 = arith.subf %38, %52 : vector<256x128xf32>
    %cst_23 = arith.constant 9.99999974E-6 : f32
    %54 = vector.broadcast %cst_23 : f32 to vector<1x128xf32>
    %55 = arith.addf %51, %54 : vector<1x128xf32>
    %56 = math.rsqrt %55 : vector<1x128xf32>
    %57 = vector.broadcast %56 : vector<1x128xf32> to vector<256x128xf32>
    %58 = arith.mulf %53, %57 : vector<256x128xf32>
    %59 = arith.truncf %58 : vector<256x128xf32> to vector<256x128xbf16>
    %c1 = arith.constant 1 : index
    %c0_24 = arith.constant 0 : index
    %c0_25 = arith.constant 0 : index
    %60 = vector.load %arg4[%c1, %c0_24, %c0_25] : memref<6x128x128xbf16, #tpu.memory_space<vmem>>, vector<1x128x128xbf16>
    %61 = vector.shape_cast %60 : vector<1x128x128xbf16> to vector<128x128xbf16>
    %cst_26 = arith.constant dense<0.000000e+00> : vector<256x128xf32>
    %62 = tpu.matmul %59, %61, %cst_26 {dimension_numbers = #tpu.dot_dimension_numbers<[1], [0], [0], [1], [0, 0, 1, 1], [], []>} : vector<256x128xbf16>, vector<128x128xbf16>, vector<256x128xf32> -> vector<256x128xf32>
    %63 = vector.extract_strided_slice %0 {offsets = [1, 0], sizes = [1, 128], strides = [1, 1]} : vector<16x128xf32> to vector<1x128xf32>
    %64 = vector.broadcast %63 : vector<1x128xf32> to vector<256x128xf32>
    %65 = arith.addf %62, %64 : vector<256x128xf32>
    %66 = arith.truncf %65 : vector<256x128xf32> to vector<256x128xbf16>
    %cst_27 = arith.constant dense<0.000000e+00> : vector<256x128xf32>
    %67 = tpu.matmul %2, %66, %cst_27 {dimension_numbers = #tpu.dot_dimension_numbers<[1], [0], [0], [1], [0, 0, 1, 1], [], []>} : vector<256x256xbf16>, vector<256x128xbf16>, vector<256x128xf32> -> vector<256x128xf32>
    %68 = vector.extract_strided_slice %0 {offsets = [5, 0], sizes = [1, 128], strides = [1, 1]} : vector<16x128xf32> to vector<1x128xf32>
    %69 = vector.broadcast %68 : vector<1x128xf32> to vector<256x128xf32>
    %70 = arith.addf %67, %69 : vector<256x128xf32>
    %cst_28 = arith.constant 0.000000e+00 : f32
    %71 = vector.broadcast %cst_28 : f32 to vector<256x128xf32>
    %72 = arith.maximumf %70, %71 : vector<256x128xf32>
    %cst_29 = arith.constant dense<0.000000e+00> : vector<128xf32>
    %73 = vector.multi_reduction <add>, %72, %cst_29 [0] : vector<256x128xf32> to vector<128xf32>
    %74 = vector.shape_cast %73 : vector<128xf32> to vector<1x128xf32>
    %cst_30 = arith.constant 2.560000e+02 : f32
    %75 = vector.broadcast %cst_30 : f32 to vector<1x128xf32>
    %76 = arith.divf %74, %75 : vector<1x128xf32>
    %77 = arith.mulf %72, %72 : vector<256x128xf32>
    %cst_31 = arith.constant dense<0.000000e+00> : vector<128xf32>
    %78 = vector.multi_reduction <add>, %77, %cst_31 [0] : vector<256x128xf32> to vector<128xf32>
    %79 = vector.shape_cast %78 : vector<128xf32> to vector<1x128xf32>
    %cst_32 = arith.constant 2.560000e+02 : f32
    %80 = vector.broadcast %cst_32 : f32 to vector<1x128xf32>
    %81 = arith.divf %79, %80 : vector<1x128xf32>
    %82 = arith.mulf %76, %76 : vector<1x128xf32>
    %83 = arith.subf %81, %82 : vector<1x128xf32>
    %cst_33 = arith.constant 0.000000e+00 : f32
    %84 = vector.broadcast %cst_33 : f32 to vector<1x128xf32>
    %85 = arith.maximumf %83, %84 : vector<1x128xf32>
    %86 = vector.broadcast %76 : vector<1x128xf32> to vector<256x128xf32>
    %87 = arith.subf %72, %86 : vector<256x128xf32>
    %cst_34 = arith.constant 9.99999974E-6 : f32
    %88 = vector.broadcast %cst_34 : f32 to vector<1x128xf32>
    %89 = arith.addf %85, %88 : vector<1x128xf32>
    %90 = math.rsqrt %89 : vector<1x128xf32>
    %91 = vector.broadcast %90 : vector<1x128xf32> to vector<256x128xf32>
    %92 = arith.mulf %87, %91 : vector<256x128xf32>
    %93 = arith.truncf %92 : vector<256x128xf32> to vector<256x128xbf16>
    %c2 = arith.constant 2 : index
    %c0_35 = arith.constant 0 : index
    %c0_36 = arith.constant 0 : index
    %94 = vector.load %arg4[%c2, %c0_35, %c0_36] : memref<6x128x128xbf16, #tpu.memory_space<vmem>>, vector<1x128x128xbf16>
    %95 = vector.shape_cast %94 : vector<1x128x128xbf16> to vector<128x128xbf16>
    %cst_37 = arith.constant dense<0.000000e+00> : vector<256x128xf32>
    %96 = tpu.matmul %93, %95, %cst_37 {dimension_numbers = #tpu.dot_dimension_numbers<[1], [0], [0], [1], [0, 0, 1, 1], [], []>} : vector<256x128xbf16>, vector<128x128xbf16>, vector<256x128xf32> -> vector<256x128xf32>
    %97 = vector.extract_strided_slice %0 {offsets = [2, 0], sizes = [1, 128], strides = [1, 1]} : vector<16x128xf32> to vector<1x128xf32>
    %98 = vector.broadcast %97 : vector<1x128xf32> to vector<256x128xf32>
    %99 = arith.addf %96, %98 : vector<256x128xf32>
    %100 = arith.truncf %99 : vector<256x128xf32> to vector<256x128xbf16>
    %cst_38 = arith.constant dense<0.000000e+00> : vector<256x128xf32>
    %101 = tpu.matmul %2, %100, %cst_38 {dimension_numbers = #tpu.dot_dimension_numbers<[1], [0], [0], [1], [0, 0, 1, 1], [], []>} : vector<256x256xbf16>, vector<256x128xbf16>, vector<256x128xf32> -> vector<256x128xf32>
    %102 = vector.extract_strided_slice %0 {offsets = [6, 0], sizes = [1, 128], strides = [1, 1]} : vector<16x128xf32> to vector<1x128xf32>
    %103 = vector.broadcast %102 : vector<1x128xf32> to vector<256x128xf32>
    %104 = arith.addf %101, %103 : vector<256x128xf32>
    %cst_39 = arith.constant 0.000000e+00 : f32
    %105 = vector.broadcast %cst_39 : f32 to vector<256x128xf32>
    %106 = arith.maximumf %104, %105 : vector<256x128xf32>
    %cst_40 = arith.constant dense<0.000000e+00> : vector<128xf32>
    %107 = vector.multi_reduction <add>, %106, %cst_40 [0] : vector<256x128xf32> to vector<128xf32>
    %108 = vector.shape_cast %107 : vector<128xf32> to vector<1x128xf32>
    %cst_41 = arith.constant 2.560000e+02 : f32
    %109 = vector.broadcast %cst_41 : f32 to vector<1x128xf32>
    %110 = arith.divf %108, %109 : vector<1x128xf32>
    %111 = arith.mulf %106, %106 : vector<256x128xf32>
    %cst_42 = arith.constant dense<0.000000e+00> : vector<128xf32>
    %112 = vector.multi_reduction <add>, %111, %cst_42 [0] : vector<256x128xf32> to vector<128xf32>
    %113 = vector.shape_cast %112 : vector<128xf32> to vector<1x128xf32>
    %cst_43 = arith.constant 2.560000e+02 : f32
    %114 = vector.broadcast %cst_43 : f32 to vector<1x128xf32>
    %115 = arith.divf %113, %114 : vector<1x128xf32>
    %116 = arith.mulf %110, %110 : vector<1x128xf32>
    %117 = arith.subf %115, %116 : vector<1x128xf32>
    %cst_44 = arith.constant 0.000000e+00 : f32
    %118 = vector.broadcast %cst_44 : f32 to vector<1x128xf32>
    %119 = arith.maximumf %117, %118 : vector<1x128xf32>
    %120 = vector.broadcast %110 : vector<1x128xf32> to vector<256x128xf32>
    %121 = arith.subf %106, %120 : vector<256x128xf32>
    %cst_45 = arith.constant 9.99999974E-6 : f32
    %122 = vector.broadcast %cst_45 : f32 to vector<1x128xf32>
    %123 = arith.addf %119, %122 : vector<1x128xf32>
    %124 = math.rsqrt %123 : vector<1x128xf32>
    %125 = vector.broadcast %124 : vector<1x128xf32> to vector<256x128xf32>
    %126 = arith.mulf %121, %125 : vector<256x128xf32>
    %127 = arith.truncf %126 : vector<256x128xf32> to vector<256x128xbf16>
    %c3 = arith.constant 3 : index
    %c0_46 = arith.constant 0 : index
    %c0_47 = arith.constant 0 : index
    %128 = vector.load %arg4[%c3, %c0_46, %c0_47] : memref<6x128x128xbf16, #tpu.memory_space<vmem>>, vector<1x128x128xbf16>
    %129 = vector.shape_cast %128 : vector<1x128x128xbf16> to vector<128x128xbf16>
    %cst_48 = arith.constant dense<0.000000e+00> : vector<256x128xf32>
    %130 = tpu.matmul %127, %129, %cst_48 {dimension_numbers = #tpu.dot_dimension_numbers<[1], [0], [0], [1], [0, 0, 1, 1], [], []>} : vector<256x128xbf16>, vector<128x128xbf16>, vector<256x128xf32> -> vector<256x128xf32>
    %131 = vector.extract_strided_slice %0 {offsets = [3, 0], sizes = [1, 128], strides = [1, 1]} : vector<16x128xf32> to vector<1x128xf32>
    %132 = vector.broadcast %131 : vector<1x128xf32> to vector<256x128xf32>
    %133 = arith.addf %130, %132 : vector<256x128xf32>
    %134 = arith.truncf %133 : vector<256x128xf32> to vector<256x128xbf16>
    %cst_49 = arith.constant dense<0.000000e+00> : vector<256x128xf32>
    %135 = tpu.matmul %2, %134, %cst_49 {dimension_numbers = #tpu.dot_dimension_numbers<[1], [0], [0], [1], [0, 0, 1, 1], [], []>} : vector<256x256xbf16>, vector<256x128xbf16>, vector<256x128xf32> -> vector<256x128xf32>
    %136 = vector.extract_strided_slice %0 {offsets = [7, 0], sizes = [1, 128], strides = [1, 1]} : vector<16x128xf32> to vector<1x128xf32>
    %137 = vector.broadcast %136 : vector<1x128xf32> to vector<256x128xf32>
    %138 = arith.addf %135, %137 : vector<256x128xf32>
    %cst_50 = arith.constant 0.000000e+00 : f32
    %139 = vector.broadcast %cst_50 : f32 to vector<256x128xf32>
    %140 = arith.maximumf %138, %139 : vector<256x128xf32>
    %cst_51 = arith.constant dense<0.000000e+00> : vector<128xf32>
    %141 = vector.multi_reduction <add>, %140, %cst_51 [0] : vector<256x128xf32> to vector<128xf32>
    %142 = vector.shape_cast %141 : vector<128xf32> to vector<1x128xf32>
    %cst_52 = arith.constant 2.560000e+02 : f32
    %143 = vector.broadcast %cst_52 : f32 to vector<1x128xf32>
    %144 = arith.divf %142, %143 : vector<1x128xf32>
    %145 = arith.mulf %140, %140 : vector<256x128xf32>
    %cst_53 = arith.constant dense<0.000000e+00> : vector<128xf32>
    %146 = vector.multi_reduction <add>, %145, %cst_53 [0] : vector<256x128xf32> to vector<128xf32>
    %147 = vector.shape_cast %146 : vector<128xf32> to vector<1x128xf32>
    %cst_54 = arith.constant 2.560000e+02 : f32
    %148 = vector.broadcast %cst_54 : f32 to vector<1x128xf32>
    %149 = arith.divf %147, %148 : vector<1x128xf32>
    %150 = arith.mulf %144, %144 : vector<1x128xf32>
    %151 = arith.subf %149, %150 : vector<1x128xf32>
    %cst_55 = arith.constant 0.000000e+00 : f32
    %152 = vector.broadcast %cst_55 : f32 to vector<1x128xf32>
    %153 = arith.maximumf %151, %152 : vector<1x128xf32>
    %154 = vector.broadcast %144 : vector<1x128xf32> to vector<256x128xf32>
    %155 = arith.subf %140, %154 : vector<256x128xf32>
    %cst_56 = arith.constant 9.99999974E-6 : f32
    %156 = vector.broadcast %cst_56 : f32 to vector<1x128xf32>
    %157 = arith.addf %153, %156 : vector<1x128xf32>
    %158 = math.rsqrt %157 : vector<1x128xf32>
    %159 = vector.broadcast %158 : vector<1x128xf32> to vector<256x128xf32>
    %160 = arith.mulf %155, %159 : vector<256x128xf32>
    %c0_57 = arith.constant 0 : index
    %c0_58 = arith.constant 0 : index
    %c0_59 = arith.constant 0 : index
    %161 = vector.load %arg3[%c0_57, %c0_58, %c0_59] : memref<1x4x256xbf16, #tpu.memory_space<vmem>>, vector<1x4x256xbf16>
    %162 = vector.shape_cast %161 : vector<1x4x256xbf16> to vector<4x256xbf16>
    %163 = arith.extf %162 : vector<4x256xbf16> to vector<4x256xf32>
    %cst_60 = arith.constant dense<0.000000e+00> : vector<4xf32>
    %164 = vector.multi_reduction <add>, %163, %cst_60 [1] : vector<4x256xf32> to vector<4xf32>
    %165 = vector.shape_cast %164 : vector<4xf32> to vector<4x1xf32>
    %166 = arith.truncf %160 : vector<256x128xf32> to vector<256x128xbf16>
    %cst_61 = arith.constant dense<0.000000e+00> : vector<4x128xf32>
    %167 = tpu.matmul %162, %166, %cst_61 {dimension_numbers = #tpu.dot_dimension_numbers<[1], [0], [0], [1], [0, 0, 1, 1], [], []>} : vector<4x256xbf16>, vector<256x128xbf16>, vector<4x128xf32> -> vector<4x128xf32>
    %cst_62 = arith.constant 1.000000e+00 : f32
    %168 = vector.broadcast %cst_62 : f32 to vector<4x1xf32>
    %169 = arith.maximumf %165, %168 : vector<4x1xf32>
    %170 = vector.broadcast %169 : vector<4x1xf32> to vector<4x128xf32>
    %171 = arith.divf %167, %170 : vector<4x128xf32>
    %172 = arith.truncf %171 : vector<4x128xf32> to vector<4x128xbf16>
    %c4 = arith.constant 4 : index
    %c0_63 = arith.constant 0 : index
    %c0_64 = arith.constant 0 : index
    %173 = vector.load %arg4[%c4, %c0_63, %c0_64] : memref<6x128x128xbf16, #tpu.memory_space<vmem>>, vector<1x128x128xbf16>
    %174 = vector.shape_cast %173 : vector<1x128x128xbf16> to vector<128x128xbf16>
    %cst_65 = arith.constant dense<0.000000e+00> : vector<4x128xf32>
    %175 = tpu.matmul %172, %174, %cst_65 {dimension_numbers = #tpu.dot_dimension_numbers<[1], [0], [0], [1], [0, 0, 1, 1], [], []>} : vector<4x128xbf16>, vector<128x128xbf16>, vector<4x128xf32> -> vector<4x128xf32>
    %176 = vector.extract_strided_slice %0 {offsets = [8, 0], sizes = [1, 128], strides = [1, 1]} : vector<16x128xf32> to vector<1x128xf32>
    %177 = vector.broadcast %176 : vector<1x128xf32> to vector<4x128xf32>
    %178 = arith.addf %175, %177 : vector<4x128xf32>
    %cst_66 = arith.constant 0.000000e+00 : f32
    %179 = vector.broadcast %cst_66 : f32 to vector<4x128xf32>
    %180 = arith.maximumf %178, %179 : vector<4x128xf32>
    %cst_67 = arith.constant dense<0.000000e+00> : vector<128xf32>
    %181 = vector.multi_reduction <add>, %180, %cst_67 [0] : vector<4x128xf32> to vector<128xf32>
    %182 = vector.shape_cast %181 : vector<128xf32> to vector<1x128xf32>
    %cst_68 = arith.constant 4.000000e+00 : f32
    %183 = vector.broadcast %cst_68 : f32 to vector<1x128xf32>
    %184 = arith.divf %182, %183 : vector<1x128xf32>
    %185 = arith.mulf %180, %180 : vector<4x128xf32>
    %cst_69 = arith.constant dense<0.000000e+00> : vector<128xf32>
    %186 = vector.multi_reduction <add>, %185, %cst_69 [0] : vector<4x128xf32> to vector<128xf32>
    %187 = vector.shape_cast %186 : vector<128xf32> to vector<1x128xf32>
    %cst_70 = arith.constant 4.000000e+00 : f32
    %188 = vector.broadcast %cst_70 : f32 to vector<1x128xf32>
    %189 = arith.divf %187, %188 : vector<1x128xf32>
    %190 = arith.mulf %184, %184 : vector<1x128xf32>
    %191 = arith.subf %189, %190 : vector<1x128xf32>
    %cst_71 = arith.constant 0.000000e+00 : f32
    %192 = vector.broadcast %cst_71 : f32 to vector<1x128xf32>
    %193 = arith.maximumf %191, %192 : vector<1x128xf32>
    %194 = vector.broadcast %184 : vector<1x128xf32> to vector<4x128xf32>
    %195 = arith.subf %180, %194 : vector<4x128xf32>
    %cst_72 = arith.constant 9.99999974E-6 : f32
    %196 = vector.broadcast %cst_72 : f32 to vector<1x128xf32>
    %197 = arith.addf %193, %196 : vector<1x128xf32>
    %198 = math.rsqrt %197 : vector<1x128xf32>
    %199 = vector.broadcast %198 : vector<1x128xf32> to vector<4x128xf32>
    %200 = arith.mulf %195, %199 : vector<4x128xf32>
    %201 = arith.truncf %200 : vector<4x128xf32> to vector<4x128xbf16>
    %c5 = arith.constant 5 : index
    %c0_73 = arith.constant 0 : index
    %c0_74 = arith.constant 0 : index
    %202 = vector.load %arg4[%c5, %c0_73, %c0_74] : memref<6x128x128xbf16, #tpu.memory_space<vmem>>, vector<1x128x128xbf16>
    %203 = vector.shape_cast %202 : vector<1x128x128xbf16> to vector<128x128xbf16>
    %cst_75 = arith.constant dense<0.000000e+00> : vector<4x128xf32>
    %204 = tpu.matmul %201, %203, %cst_75 {dimension_numbers = #tpu.dot_dimension_numbers<[1], [0], [0], [1], [0, 0, 1, 1], [], []>} : vector<4x128xbf16>, vector<128x128xbf16>, vector<4x128xf32> -> vector<4x128xf32>
    %205 = vector.extract_strided_slice %0 {offsets = [9, 0], sizes = [1, 128], strides = [1, 1]} : vector<16x128xf32> to vector<1x128xf32>
    %206 = vector.broadcast %205 : vector<1x128xf32> to vector<4x128xf32>
    %207 = arith.addf %204, %206 : vector<4x128xf32>
    %c0_76 = arith.constant 0 : index
    %c0_77 = arith.constant 0 : index
    %c0_78 = arith.constant 0 : index
    %208 = vector.load %arg6[%c0_76, %c0_77, %c0_78] : memref<1x4x128xf32, #tpu.memory_space<vmem>>, vector<1x4x128xf32>
    %209 = vector.shape_cast %208 : vector<1x4x128xf32> to vector<4x128xf32>
    %210 = vector.shape_cast %207 : vector<4x128xf32> to vector<1x4x128xf32>
    tpu.vector_store %arg6[%c0_76, %c0_77, %c0_78], %210 {strides = array<i32>} : memref<1x4x128xf32, #tpu.memory_space<vmem>>, vector<1x4x128xf32>,
    return
  }
  func.func @transform_0(%arg0: i32) -> (i32, i32, i32) {
    %c0_i32 = arith.constant 0 : i32
    %c0_i32_0 = arith.constant 0 : i32
    %c0_i32_1 = arith.constant 0 : i32
    return %arg0, %c0_i32, %c0_i32_0 : i32, i32, i32
  }
  func.func @transform_1(%arg0: i32) -> (i32, i32, i32) {
    %c0_i32 = arith.constant 0 : i32
    %c0_i32_0 = arith.constant 0 : i32
    %c0_i32_1 = arith.constant 0 : i32
    return %arg0, %c0_i32, %c0_i32_0 : i32, i32, i32
  }
  func.func @transform_2(%arg0: i32) -> (i32, i32, i32) {
    %c0_i32 = arith.constant 0 : i32
    %c0_i32_0 = arith.constant 0 : i32
    %c0_i32_1 = arith.constant 0 : i32
    return %arg0, %c0_i32, %c0_i32_0 : i32, i32, i32
  }
  func.func @transform_3(%arg0: i32) -> (i32, i32, i32) {
    %c0_i32 = arith.constant 0 : i32
    %c0_i32_0 = arith.constant 0 : i32
    %c0_i32_1 = arith.constant 0 : i32
    %c0_i32_2 = arith.constant 0 : i32
    return %c0_i32, %c0_i32_0, %c0_i32_1 : i32, i32, i32
  }
  func.func @transform_4(%arg0: i32) -> (i32, i32) {
    %c0_i32 = arith.constant 0 : i32
    %c0_i32_0 = arith.constant 0 : i32
    %c0_i32_1 = arith.constant 0 : i32
    return %c0_i32, %c0_i32_0 : i32, i32
  }
  func.func @transform_5(%arg0: i32) -> (i32, i32, i32) {
    %c0_i32 = arith.constant 0 : i32
    %c0_i32_0 = arith.constant 0 : i32
    %c0_i32_1 = arith.constant 0 : i32
    return %arg0, %c0_i32, %c0_i32_0 : i32, i32, i32
  }
}

</mosaic_0001>

<bundles_post_ra>
// kernel: tpu_custom_call.1
= control target key start
LH: loop header
LB: loop body
LE: loop exit
PB: predicated region body
PF: predicated region fallthrough
CT: control target
= control target key end

     0   :  { %s7030_s0 = inlined_call_operand.hbm [shape: bf16[2,256,256], index: 0, kind: input, shape index: {}]   ;;  %s7031_s1 = inlined_call_operand.hbm [shape: f32[2,256,128], index: 1, kind: input, shape index: {}]   ;;  %s7032_s2 = inlined_call_operand.hbm [shape: bf16[2,4,256], index: 2, kind: input, shape index: {}]   ;;  %s7033_s3 = inlined_call_operand.hbm [shape: bf16[6,128,128], index: 3, kind: input, shape index: {}]   ;;  %s7034_s4 = inlined_call_operand.hbm [shape: f32[16,128], index: 4, kind: input, shape index: {}]   ;;  %s7035_s5 = inlined_call_operand.hbm [shape: f32[2,4,128], index: 5, kind: output, shape index: {}]  }
   0x1   :  { %7083 = sst [smem:[#allocation40_spill]] %s7031_s1 }
   0x2   :  { %7084 = sst [smem:[#allocation41_spill]] %s7033_s3 }
   0x3   :  { %10 = vsyncpa [#allocation3], 0 }
   0x4   :  { %12 = vsyncpa [#allocation3 + $0x1], 0 }
   0x5   :  { %13 = vsyncpa [#allocation6], 0 }
   0x6   :  { %15 = vsyncpa [#allocation6 + $0x1], 0 }
   0x7   :  { %16 = vsyncpa [#allocation9], 0 }
   0x8   :  { %17 = vsyncpa [#allocation4], 0 }
   0x9   :  { %19 = vsyncpa [#allocation4 + $0x1], 0  ;;  %s4335_s18 = smov 0   ;;  %s4337_s19 = smov 0  }
   0xa   :  { %s4339_s20 = smov 0   ;;  %s4341_s21 = smov 0  }
   0xb LB: > { %7085 = sst [smem:[#allocation16_spill]] %s4291_s20  ;;  %s4356_s22 = sadd.s32 4294967295, %s4295_s21   ;;  %s4295_s21 = sphi %s4341_s21, %s7184_s21   ;;  %s4291_s20 = sphi %s4339_s20, %s7186_s20   ;;  %s4287_s19 = sphi %s4337_s19, %s7188_s19   ;;  %s4283_s18 = sphi %s4335_s18, %s7187_s18  }
   0xc   : > { %s3539_s23 = sadd.s32 4294967294, %s4295_s21   ;;  %p45_p0 = scmp.ne.s32.totalorder %s4287_s19, %s4283_s18 }
   0xd   : > { %p7040_p1 = scmp.eq.s32.totalorder %s4356_s22, 0  ;;  %p163_p2 = scmp.eq.s32.totalorder %s4356_s22, 1 }
   0xe   : > { %p169_p3 = scmp.eq.s32.totalorder %s3539_s23, 1  ;;  %p3540_p5 = scmp.ge.s32.totalorder %s4295_s21, 1 }
   0xf   : > { %p4365_p4 = por %p7040_p1, %p45_p0  ;;  %p176_p7 = scmp.lt.s32.totalorder %s4295_s21, 3 }
  0x10   : > { %p4370_p6 = por %p169_p3, %p45_p0  ;;  %s7088_s3 = sld [smem:[#allocation41_spill]] }
  0x11   : > { %p4378_p8 = pnand %p3540_p5, %p176_p7  ;;  %s4297_s30 = smov [#allocation8]  }
  0x12   : > { %s189_s6 = sshll.u32 %s4297_s30, 4  ;;  %s4392_s8 = sadd.s32 1, %s4295_s21   ;;  %s190_s6 = int_to_ptr.vmem [resolvable:$true] %s189_s6 }
  0x13   : > { %p3983_p9 = pneg %p4378_p8  ;;  %7091 = sst [smem:[#allocation17_spill]] %s4392_s8 }
  0x14   : > { %s4298_s9 = smov 64   ;;  %s4299_s10 = smov 4  }
  0x15   : > { %p4386_p10 = pnand %p3983_p9, %p7040_p1  ;;  %s29_s11 = ssub.s32 %s4295_s21, %s4392_s8 }
  0x16   : > { %s187_s28 = sshll.u32 %s7088_s3, 4  ;;  %s32_s12 = sadd.s32 1, %s4291_s20  ;;  %s188_s28 = int_to_ptr.hbm [resolvable:$true] %s187_s28 }
  0x17   : > { %3986 = dma.hbm_to_vmem [thread:$0]  (!%p4386_p10), %s188_s28, 6144, %s190_s6, [#allocation9], %s4298_s9, %s4298_s9, %s4299_s10  }
  0x18   : > { %p30_p12 = scmp.eq.s32.totalorder %s29_s11, 0  ;;  %p39_p13 = scmp.ne.s32.totalorder %s4291_s20, %s4287_s19 }
  0x19   : > { %p40_p0 = scmp.eq.s32.totalorder %s4295_s21, 0  ;;  %p4006_p7 = scmp.lt.s32.totalorder %s4295_s21, 2 }
  0x1a   : > { %s4403_s13 = scalar_select %p30_p12, %s4291_s20, %s32_s12  }
  0x1b   : > { %p41_p3 = por %p40_p0, %p39_p13  ;;  %p4407_p5 = por %p163_p2, %p39_p13 }
  0x1c   : > { %7092 = sst [smem:[#allocation18_spill]] %s4403_s13  ;;  %s4413_s15 = sand.u32 1, %s4291_s20  }
  0x1d   : > { %s3884_s16 = sshll.u32 %s4295_s21, 8  ;;  %s7039_s17 = sshll.u32 %s4413_s15, 8 }
  0x1e   : > { %p4417_p9 = pnand %p4006_p7, %p41_p3  ;;  %s239_s26 = sand.u32 1, %s4295_s21  }
  0x1f   : > { %s7095_s1 = sld [smem:[#allocation40_spill]]  ;;  %s243_s6 = scalar_lea.vmem [#allocation5], %s7039_s17 }
  0x20   : > { %s251_s9 = sshll.u32 %s243_s6, 4  ;;  %s201_s3 = sshll.u32 %s7034_s4, 4  ;;  %s252_s9 = int_to_ptr.vmem [resolvable:$true] %s251_s9  ;;  %s202_s3 = int_to_ptr.hbm [resolvable:$true] %s201_s3 }
  0x21   : > { %s4432_s13 = scalar_lea.sflag [#allocation6], %s239_s26  ;;  %p4105_p12 = pneg %p4417_p9 }
  0x25   : > { %s248_s30 = scalar_lea.hbm %s7095_s1, %s3884_s16 }
  0x26   : > { %s249_s10 = sshll.u32 %s248_s30, 4  ;;  %s4108_s30 = scalar_lea.hbm %s7095_s1, 512  ;;  %s250_s10 = int_to_ptr.hbm [resolvable:$true] %s249_s10 }
  0x27   : > { %s4101_s20 = sshra.s32 %s250_s10, 4  ;;  %s4102_s20 = int_to_ptr.hbm [resolvable:$true] %s4101_s20 }
  0x28   : > { %s4103_s8 = scalar_lea.hbm %s4102_s20, 256  ;;  %p4109_p3 = scmp.lt.s32.totalorder %s4102_s20, %s7095_s1 }
  0x29   : > { %p4104_p2 = scmp.ne.s32.totalorder %s4102_s20, %s4103_s8  ;;  %p4110_p7 = scmp.lt.s32.totalorder %s4108_s30, %s4103_s8 }
  0x2b   : > { %p4106_p13 = pnand %p4105_p12, %p4104_p2  ;;  %p4111_p11 = por %p4110_p7, %p4109_p3 }
  0x2d   : > { %p4107_p0 = pneg %p4106_p13 }
  0x2f   : > { %p4112_p1 = pnand %p4111_p11, %p4107_p0 }
  0x31   : > { %4115 = shalt.err (!%p4112_p1)
}
  0x32   : > { %s4300_s26 = smov 128   ;;  %s4301_s11 = smov 8  }
  0x33   : > { %3996 = dma.hbm_to_vmem [thread:$0]  (!%p4417_p9), %s250_s10, 4096, %s252_s9, %s4432_s13, %s4300_s26, %s4300_s26, %s4301_s11  }
  0x34   : > { %s4302_s20 = smov [#allocation10]   ;;  %s226_s27 = scalar_lea.hbm %s7030_s0, %s3884_s16 }
  0x35   : > { %s203_s8 = sshll.u32 %s4302_s20, 4  ;;  %s7096_s28 = sshll.u32 %s4413_s15, 8  ;;  %s204_s8 = int_to_ptr.vmem [resolvable:$true] %s203_s8 }
  0x36   : > { %3989 = dma.hbm_to_vmem [thread:$0]  (!%p4386_p10), %s202_s3, 256, %s204_s8, [#allocation9], %s4300_s26, %s4300_s26, %s4301_s11  }
  0x37   : > { %s221_s30 = scalar_lea.vmem [#allocation2], %s7096_s28  ;;  %s227_s1 = sshll.u32 %s226_s27, 4  ;;  %s228_s1 = int_to_ptr.hbm [resolvable:$true] %s227_s1 }
  0x38   : > { %s229_s6 = sshll.u32 %s221_s30, 4  ;;  %s3550_s9 = sshll.u32 %s4413_s15, 2  ;;  %s230_s6 = int_to_ptr.vmem [resolvable:$true] %s229_s6 }
  0x39   : > { %s218_s10 = scalar_lea.sflag [#allocation3], %s4413_s15  ;;  %s4161_s20 = sshra.s32 %s228_s1, 4  ;;  %s4162_s20 = int_to_ptr.hbm [resolvable:$true] %s4161_s20 }
  0x3a   : > { %s4163_s7 = scalar_lea.hbm %s4162_s20, 256  ;;  %s4168_s16 = scalar_lea.hbm %s7030_s0, 512 }
  0x3b   : > { %p4164_p1 = scmp.ne.s32.totalorder %s4162_s20, %s4163_s7  ;;  %p4169_p2 = scmp.lt.s32.totalorder %s4162_s20, %s7030_s0 }
  0x3c   : > { %p4170_p13 = scmp.lt.s32.totalorder %s4168_s16, %s4163_s7 }
  0x3d   : > { %p4166_p10 = pnand %p4164_p1, %p4105_p12 }
  0x3e   : > { %p4171_p0 = por %p4170_p13, %p4169_p2 }
  0x3f   : > { %p4167_p11 = pneg %p4166_p10 }
  0x41   : > { %p4172_p3 = pnand %p4171_p0, %p4167_p11 }
  0x43   : > { %4175 = shalt.err (!%p4172_p3)
}
  0x44   : > { %3993 = dma.hbm_to_vmem [thread:$0]  (!%p4417_p9), %s228_s1, 4096, %s230_s6, %s218_s10, %s4300_s26, %s4300_s26, %s4301_s11  }
  0x45   : > { %s3886_s15 = sshll.u32 %s4295_s21, 2  ;;  %s265_s3 = scalar_lea.vmem [#allocation7], %s3550_s9 }
  0x46   : > { %s270_s30 = scalar_lea.hbm %s7032_s2, %s3886_s15  ;;  %s274_s8 = sshll.u32 %s265_s3, 4  ;;  %s275_s8 = int_to_ptr.vmem [resolvable:$true] %s274_s8 }
  0x47   : > { %s272_s20 = sshll.u32 %s270_s30, 4  ;;  %s4198_s26 = scalar_lea.hbm %s7032_s2, 8  ;;  %s273_s20 = int_to_ptr.hbm [resolvable:$true] %s272_s20 }
  0x48   : > { %s4191_s7 = sshra.s32 %s273_s20, 4  ;;  %s4192_s7 = int_to_ptr.hbm [resolvable:$true] %s4191_s7 }
  0x49   : > { %s4193_s16 = scalar_lea.hbm %s4192_s7, 4  ;;  %p4199_p11 = scmp.lt.s32.totalorder %s4192_s7, %s7032_s2 }
  0x4a   : > { %p4194_p7 = scmp.ne.s32.totalorder %s4192_s7, %s4193_s16  ;;  %p4200_p2 = scmp.lt.s32.totalorder %s4198_s26, %s4193_s16 }
  0x4c   : > { %p4196_p1 = pnand %p4194_p7, %p4105_p12  ;;  %p4201_p13 = por %p4200_p2, %p4199_p11 }
  0x4e   : > { %p4197_p10 = pneg %p4196_p1 }
  0x50   : > { %p4202_p0 = pnand %p4201_p13, %p4197_p10 }
  0x52   : > { %4205 = shalt.err (!%p4202_p0)
}
  0x53   : > { %3999 = dma.hbm_to_vmem [thread:$0]  (!%p4417_p9), %s273_s20, 64, %s275_s8, %s4432_s13  }
  0x54   : > { %283 = sbr.rel (%p4378_p8) target bundleno = 4047 (0xfcf), region = 40 }
  0x59   : > { %s4498_s9 = sand.u32 1, %s4287_s19  }
  0x5a   : > { %s3554_s10 = sshll.u32 %s4498_s9, 8  ;;  %s286_s12 = scalar_lea.sflag [#allocation3], %s4498_s9 }
  0x5b   : > { %s4502_s15 = scalar_lea.vmem [#allocation2], %s3554_s10 }
  0x5c   : > { %4266 = dma.done.wait (%p4365_p4), %s286_s12, 4096  }
  0x5d   : > { %4268 = vsyncadd (%p4365_p4), %s286_s12, 4294963200  ;;  %s295_s13 = sand.u32 1, %s4356_s22   ;;  %s4509_s23 = scalar_lea.vmem [#allocation5], %s3554_s10 }
  0x5e   : > { %s296_s29 = scalar_lea.sflag [#allocation6], %s295_s13 }
  0x5f   : > { %4270 = dma.done.wait (%p4365_p4), %s296_s29, 4160  }
  0x60   : > { %4272 = vsyncadd (%p4365_p4), %s296_s29, 4294963136  ;;  %s3556_s27 = sshll.u32 %s4498_s9, 2  ;;  %p7097_p8 = scmp.eq.s32.totalorder %s4356_s22, 0 }
  0x61   : > { %s4518_s28 = scalar_lea.vmem [#allocation7], %s3556_s27 }
  0x62   : > { %4274 = dma.done.wait (%p7097_p8), [#allocation9], 6400   ;;  %p7098_p9 = pmov %p7097_p8 }
  0x63   : > { %v3926_v0 = vld [vmem:[#allocation8 + $0x38] sm:$0xff]  ;;  %v3925_v1 = vld [vmem:[#allocation8 + $0x30] sm:$0xff]  ;;  %v4528_v3 = vld [vmem:[%s4509_s23 + $0x8] sm:$0xff]  ;;  %vm3119_vm13 = vcmask 1043456   ;;  %s3881_s24 = sshll.u32 %s4356_s22, 2  ;;  %s356_s20 = scalar_lea.vmem [#allocation11], %s3556_s27 }
  0x64   : > { %4276 = vsyncadd (%p7098_p9), [#allocation9], 4294960896  ;;  %697 = vmatpush.bf16.msra.mxu0 %v3926_v0  ;;  %v4525_v2 = vld [vmem:[%s4509_s23] sm:$0xff]  ;;  %v4531_v4 = vld [vmem:[%s4509_s23 + $0x10] sm:$0xff]  ;;  %v469_v8 = vmul.f32 %v4528_v3, %v4528_v3  ;;  %s3402_s8 = scalar_lea.hbm %s7035_s5, %s3881_s24  ;;  %s3404_s7 = sshll.u32 %s356_s20, 4  ;;  %s3405_s7 = int_to_ptr.vmem [resolvable:$true] %s3404_s7 }
  0x65   : > { %v468_v5 = vmul.f32 %v4525_v2, %v4525_v2  ;;  %v4536_v6 = vld [vmem:[%s4509_s23 + $0x18] sm:$0xff]  ;;  %v423_v7 = vadd.f32 %v4528_v3, %v4525_v2  ;;  %v470_v9 = vmul.f32 %v4531_v4, %v4531_v4  ;;  %v3924_v10 = vld [vmem:[#allocation8 + $0x28] sm:$0xff]  ;;  %v4545_v11 = vld [vmem:[%s4509_s23 + $0x20] sm:$0xff]  ;;  %s3406_s16 = sshll.u32 %s3402_s8, 4  ;;  %s3392_s17 = scalar_lea.sflag [#allocation4], %s4498_s9  ;;  %s3407_s16 = int_to_ptr.hbm [resolvable:$true] %s3406_s16 }
  0x66   : > { %v471_v13 = vmul.f32 %v4536_v6, %v4536_v6  ;;  %v4551_v15 = vld [vmem:[%s4509_s23 + $0x28] sm:$0xff]  ;;  %v472_v17 = vmul.f32 %v4545_v11, %v4545_v11  ;;  %v4557_v20 = vld [vmem:[%s4509_s23 + $0x30] sm:$0xff]  ;;  %v4563_v24 = vld [vmem:[%s4509_s23 + $0x38] sm:$0xff]  ;;  %s4235_s1 = sshra.s32 %s3407_s16, 4  ;;  %s4241_s6 = scalar_lea.hbm %s7035_s5, 8  ;;  %s4236_s1 = int_to_ptr.hbm [resolvable:$true] %s4235_s1 }
  0x67   : > { %v424_v12 = vadd.f32 %v423_v7, %v4531_v4  ;;  %v500_v14 = vadd.f32 %v469_v8, %v468_v5  ;;  %v3923_v19 = vld [vmem:[#allocation8 + $0x20] sm:$0xff]  ;;  %v473_v22 = vmul.f32 %v4551_v15, %v4551_v15  ;;  %v474_v26 = vmul.f32 %v4557_v20, %v4557_v20  ;;  %v3922_v28 = vld [vmem:[#allocation8 + $0x18] sm:$0xff]  ;;  %v3921_v37 = vld [vmem:[#allocation8 + $0x10] sm:$0xff]  ;;  %s4237_s22 = scalar_lea.hbm %s4236_s1, 4  ;;  %p4242_p7 = scmp.lt.s32.totalorder %s4236_s1, %s7035_s5 }
  0x68   : > { %698 = vmatpush.bf16.msra.mxu0 %v3925_v1  ;;  %v4569_v29 = vld [vmem:[%s4509_s23 + $0x40] sm:$0xff]  ;;  %v475_v31 = vmul.f32 %v4563_v24, %v4563_v24  ;;  %v4575_v33 = vld [vmem:[%s4509_s23 + $0x48] sm:$0xff]  ;;  %v4581_v38 = vld [vmem:[%s4509_s23 + $0x50] sm:$0xff]  ;;  %p4238_p4 = scmp.ne.s32.totalorder %s4236_s1, %s4237_s22  ;;  %p4243_p1 = scmp.lt.s32.totalorder %s4241_s6, %s4237_s22 }
  0x69   : > { %v425_v16 = vadd.f32 %v424_v12, %v4536_v6  ;;  %v501_v18 = vadd.f32 %v500_v14, %v470_v9  ;;  %v476_v35 = vmul.f32 %v4569_v29, %v4569_v29  ;;  %v477_v40 = vmul.f32 %v4575_v33, %v4575_v33  ;;  %v4587_v42 = vld [vmem:[%s4509_s23 + $0x58] sm:$0xff]  ;;  %v3920_v46 = vld [vmem:[#allocation8 + $0x8] sm:$0xff]  ;;  %v4593_v47 = vld [vmem:[%s4509_s23 + $0x60] sm:$0xff] }
  0x6a   : > { %v478_v44 = vmul.f32 %v4581_v38, %v4581_v38  ;;  %v479_v49 = vmul.f32 %v4587_v42, %v4587_v42  ;;  %v4599_v51 = vld [vmem:[%s4509_s23 + $0x68] sm:$0xff]  ;;  %v480_v53 = vmul.f32 %v4593_v47, %v4593_v47  ;;  %v4605_v56 = vld [vmem:[%s4509_s23 + $0x70] sm:$0xff]  ;;  %v4611_v60 = vld [vmem:[%s4509_s23 + $0x78] sm:$0xff]  ;;  %p4239_p12 = pnand %p4238_p4, %p4407_p5  ;;  %p4244_p10 = por %p4243_p1, %p4242_p7 }
  0x6b   : > { %v426_v21 = vadd.f32 %v425_v16, %v4545_v11  ;;  %v502_v23 = vadd.f32 %v501_v18, %v471_v13  ;;  %v3919_v55 = vld [vmem:[#allocation8] sm:$0xff]  ;;  %v481_v58 = vmul.f32 %v4599_v51, %v4599_v51  ;;  %v482_v62 = vmul.f32 %v4605_v56, %v4605_v56  ;;  %v4617_v0 = vld [vmem:[%s4509_s23 + $0x80] sm:$0xff]  ;;  %v4629_v13 = vld [vmem:[%s4509_s23 + $0x90] sm:$0xff] }
  0x6c   : > { %699 = vmatpush.bf16.msra.mxu0 %v3924_v10  ;;  %v483_v5 = vmul.f32 %v4611_v60, %v4611_v60  ;;  %v4623_v8 = vld [vmem:[%s4509_s23 + $0x88] sm:$0xff]  ;;  %v484_v10 = vmul.f32 %v4617_v0, %v4617_v0  ;;  %v4635_v18 = vld [vmem:[%s4509_s23 + $0x98] sm:$0xff]  ;;  %p4240_p3 = pneg %p4239_p12 }
  0x6d   : > { %v427_v25 = vadd.f32 %v426_v21, %v4551_v15  ;;  %v503_v27 = vadd.f32 %v502_v23, %v472_v17  ;;  %v485_v16 = vmul.f32 %v4623_v8, %v4623_v8  ;;  %v486_v21 = vmul.f32 %v4629_v13, %v4629_v13  ;;  %v4641_v23 = vld [vmem:[%s4509_s23 + $0xa0] sm:$0xff] }
  0x6e   : > { %p4245_p11 = pnand %p4244_p10, %p4240_p3 }
  0x6f   : > { %v428_v30 = vadd.f32 %v427_v25, %v4557_v20  ;;  %v504_v32 = vadd.f32 %v503_v27, %v473_v22 }
  0x70   : > { %700 = vmatpush.bf16.msra.mxu0 %v3923_v19 }
  0x71   : > { %v429_v34 = vadd.f32 %v428_v30, %v4563_v24  ;;  %v505_v36 = vadd.f32 %v504_v32, %v474_v26  ;;  %v487_v26 = vmul.f32 %v4635_v18, %v4635_v18 }
  0x73   : > { %v430_v39 = vadd.f32 %v429_v34, %v4569_v29  ;;  %v506_v41 = vadd.f32 %v505_v36, %v475_v31  ;;  %v488_v31 = vmul.f32 %v4641_v23, %v4641_v23  ;;  %v4653_v34 = vld [vmem:[%s4509_s23 + $0xb0] sm:$0xff] }
  0x74   : > { %701 = vmatpush.bf16.msra.mxu0 %v3922_v28  ;;  %v4647_v28 = vld [vmem:[%s4509_s23 + $0xa8] sm:$0xff] }
  0x75   : > { %v431_v43 = vadd.f32 %v430_v39, %v4575_v33  ;;  %v507_v45 = vadd.f32 %v506_v41, %v476_v35  ;;  %v489_v36 = vmul.f32 %v4647_v28, %v4647_v28  ;;  %v4659_v39 = vld [vmem:[%s4509_s23 + $0xb8] sm:$0xff]  ;;  %v490_v41 = vmul.f32 %v4653_v34, %v4653_v34 }
  0x77   : > { %v432_v48 = vadd.f32 %v431_v43, %v4581_v38  ;;  %v508_v50 = vadd.f32 %v507_v45, %v477_v40 }
  0x78   : > { %702 = vmatpush.bf16.msra.mxu0 %v3921_v37 }
  0x79   : > { %v433_v52 = vadd.f32 %v432_v48, %v4587_v42  ;;  %v509_v54 = vadd.f32 %v508_v50, %v478_v44  ;;  %v4665_v44 = vld [vmem:[%s4509_s23 + $0xc0] sm:$0xff] }
  0x7b   : > { %v434_v57 = vadd.f32 %v433_v52, %v4593_v47  ;;  %v510_v59 = vadd.f32 %v509_v54, %v479_v49  ;;  %v4671_v49 = vld [vmem:[%s4509_s23 + $0xc8] sm:$0xff]  ;;  %v492_v52 = vmul.f32 %v4665_v44, %v4665_v44  ;;  %v4677_v54 = vld [vmem:[%s4509_s23 + $0xd0] sm:$0xff] }
  0x7c   : > { %703 = vmatpush.bf16.msra.mxu0 %v3920_v46  ;;  %v491_v46 = vmul.f32 %v4659_v39, %v4659_v39 }
  0x7d   : > { %v435_v61 = vadd.f32 %v434_v57, %v4599_v51  ;;  %v511_v63 = vadd.f32 %v510_v59, %v480_v53  ;;  %v4303_v57 = vmov 256.0  }
  0x7e   : > { %4050 = vrcp.f32 %v4303_v57 }
  0x7f   : > { %v436_v1 = vadd.f32 %v435_v61, %v4605_v56  ;;  %v512_v7 = vadd.f32 %v511_v63, %v481_v58  ;;  %v493_v58 = vmul.f32 %v4671_v49, %v4671_v49  ;;  %v4683_v61 = vld [vmem:[%s4509_s23 + $0xd8] sm:$0xff]  ;;  %v494_v63 = vmul.f32 %v4677_v54, %v4677_v54 }
  0x80   : > { %704 = vmatpush.bf16.msra.mxu0 %v3919_v55 }
  0x81   : > { %v437_v9 = vadd.f32 %v436_v1, %v4611_v60  ;;  %v513_v12 = vadd.f32 %v512_v7, %v482_v62 }
  0x83   : > { %v438_v14 = vadd.f32 %v437_v9, %v4617_v0  ;;  %v514_v17 = vadd.f32 %v513_v12, %v483_v5  ;;  %v4689_v5 = vld [vmem:[%s4509_s23 + $0xe0] sm:$0xff]  ;;  %v495_v9 = vmul.f32 %v4683_v61, %v4683_v61 }
  0x84   : > { %v4051_v12 = vpop.eup %4050 }
  0x85   : > { %v439_v19 = vadd.f32 %v438_v14, %v4623_v8  ;;  %v515_v22 = vadd.f32 %v514_v17, %v484_v10  ;;  %v4695_v14 = vld [vmem:[%s4509_s23 + $0xe8] sm:$0xff]  ;;  %v496_v17 = vmul.f32 %v4689_v5, %v4689_v5  ;;  %vm465_vm0 = vweird.f32 %v4051_v12 }
  0x87   : > { %v440_v25 = vadd.f32 %v439_v19, %v4629_v13  ;;  %v516_v27 = vadd.f32 %v515_v22, %v485_v16 }
  0x89   : > { %v441_v30 = vadd.f32 %v440_v25, %v4635_v18  ;;  %v517_v32 = vadd.f32 %v516_v27, %v486_v21  ;;  %v4701_v21 = vld [vmem:[%s4509_s23 + $0xf0] sm:$0xff]  ;;  %v461_v25 = vmul.f32 256.0, %v4051_v12 }
  0x8b   : > { %v442_v35 = vadd.f32 %v441_v30, %v4641_v23  ;;  %v518_v37 = vadd.f32 %v517_v32, %v487_v26  ;;  %v497_v26 = vmul.f32 %v4695_v14, %v4695_v14  ;;  %v4707_v30 = vld [vmem:[%s4509_s23 + $0xf8] sm:$0xff]  ;;  %v498_v32 = vmul.f32 %v4701_v21, %v4701_v21 }
  0x8d   : > { %v443_v40 = vadd.f32 %v442_v35, %v4647_v28  ;;  %v519_v43 = vadd.f32 %v518_v37, %v488_v31  ;;  %v462_v37 = vsub.f32 1.0, %v461_v25 }
  0x8f   : > { %v444_v45 = vadd.f32 %v443_v40, %v4653_v34  ;;  %v520_v48 = vadd.f32 %v519_v43, %v489_v36  ;;  %v499_v40 = vmul.f32 %v4707_v30, %v4707_v30 }
  0x91   : > { %v445_v50 = vadd.f32 %v444_v45, %v4659_v39  ;;  %v521_v53 = vadd.f32 %v520_v48, %v490_v41  ;;  %v463_v48 = vmul.f32 %v4051_v12, %v462_v37 }
  0x93   : > { %v446_v55 = vadd.f32 %v445_v50, %v4665_v44  ;;  %v522_v59 = vadd.f32 %v521_v53, %v491_v46  ;;  %v464_v57 = vadd.f32 %v4051_v12, %v463_v48 }
  0x95   : > { %v447_v62 = vadd.f32 %v446_v55, %v4671_v49  ;;  %v523_v1 = vadd.f32 %v522_v59, %v492_v52 }
  0x97   : > { %v448_v7 = vadd.f32 %v447_v62, %v4677_v54  ;;  %v524_v10 = vadd.f32 %v523_v1, %v493_v58  ;;  %v4716_v1 = vsel %vm465_vm0, %v4051_v12, %v464_v57 }
  0x99   : > { %v449_v16 = vadd.f32 %v448_v7, %v4683_v61  ;;  %v525_v19 = vadd.f32 %v524_v10, %v494_v63 }
  0x9b   : > { %v450_v22 = vadd.f32 %v449_v16, %v4689_v5  ;;  %v526_v27 = vadd.f32 %v525_v19, %v495_v9 }
  0x9d   : > { %v451_v31 = vadd.f32 %v450_v22, %v4695_v14  ;;  %v527_v35 = vadd.f32 %v526_v27, %v496_v17 }
  0x9f   : > { %v452_v36 = vadd.f32 %v451_v31, %v4701_v21  ;;  %v528_v41 = vadd.f32 %v527_v35, %v497_v26 }
  0xa1   : > { %v453_v43 = vadd.f32 %v452_v36, %v4707_v30  ;;  %v529_v45 = vadd.f32 %v528_v41, %v498_v32 }
  0xa3   : > { %v454_v46 = vrot.slane %v453_v43, 4  ;;  %v530_v50 = vadd.f32 %v529_v45, %v499_v40 }
  0xa5   : > { %v455_v52 = vadd.f32 %v454_v46, %v453_v43  ;;  %v531_v53 = vrot.slane %v530_v50, 4 }
  0xa7   : > { %v456_v55 = vrot.slane %v455_v52, 2  ;;  %v532_v58 = vadd.f32 %v531_v53, %v530_v50 }
  0xa9   : > { %v457_v59 = vadd.f32 %v456_v55, %v455_v52  ;;  %v533_v62 = vrot.slane %v532_v58, 2 }
  0xab   : > { %v458_v63 = vrot.slane %v457_v59, 1  ;;  %v534_v7 = vadd.f32 %v533_v62, %v532_v58 }
  0xad   : > { %v459_v9 = vadd.f32 %v458_v63, %v457_v59  ;;  %v535_v10 = vrot.slane %v534_v7, 1 }
  0xaf   : > { %v4719_v16 = vmul.f32 %v4716_v1, %v459_v9  ;;  %v536_v17 = vadd.f32 %v535_v10, %v534_v7 }
  0xb1   : > { %v538_v19 = vmul.f32 %v4719_v16, %v4719_v16  ;;  %v537_v22 = vmul.f32 %v536_v17, %v4716_v1  ;;  %v541_v37 = vsub.f32 %v4525_v2, %v4719_v16  ;;  %v542_v40 = vsub.f32 %v4528_v3, %v4719_v16 }
  0xb2   : > { %v543_v50 = vsub.f32 %v4531_v4, %v4719_v16  ;;  %v544_v52 = vsub.f32 %v4536_v6, %v4719_v16  ;;  %v545_v55 = vsub.f32 %v4545_v11, %v4719_v16  ;;  %v546_v57 = vsub.f32 %v4551_v15, %v4719_v16 }
  0xb3   : > { %v539_v25 = vsub.f32 %v537_v22, %v538_v19  ;;  %v547_v6 = vsub.f32 %v4557_v20, %v4719_v16  ;;  %v548_v62 = vsub.f32 %v4563_v24, %v4719_v16  ;;  %v549_v15 = vsub.f32 %v4569_v29, %v4719_v16 }
  0xb4   : > { %v550_v9 = vsub.f32 %v4575_v33, %v4719_v16  ;;  %v551_v24 = vsub.f32 %v4581_v38, %v4719_v16  ;;  %v552_v19 = vsub.f32 %v4587_v42, %v4719_v16  ;;  %v553_v33 = vsub.f32 %v4593_v47, %v4719_v16 }
  0xb5   : > { %v540_v26 = vmax.f32 %v539_v25, 0.0  ;;  %v555_v42 = vsub.f32 %v4605_v56, %v4719_v16 }
  0xb7   : > { %v573_v27 = vadd.f32 1e-05, %v540_v26  ;;  %v554_v26 = vsub.f32 %v4599_v51, %v4719_v16  ;;  %v557_v51 = vsub.f32 %v4617_v0, %v4719_v16  ;;  %v560_v0 = vsub.f32 %v4635_v18, %v4719_v16 }
  0xb8   : > { %v562_v18 = vsub.f32 %v4647_v28, %v4719_v16  ;;  %v564_v28 = vsub.f32 %v4659_v39, %v4719_v16  ;;  %v566_v39 = vsub.f32 %v4671_v49, %v4719_v16 }
  0xb9   : > { %4052 = vrsqrt.f32 %v573_v27  ;;  %vm580_vm1 = vweird.f32 %v573_v27 }
  0xbf   : > { %v4053_v31 = vpop.eup %4052 }
  0xc0   : > { %v575_v32 = vmul.f32 %v4053_v31, %v573_v27  ;;  %vm581_vm2 = vweird.f32 %v4053_v31 }
  0xc1   : > { %vm582_vm3 = vmor %vm580_vm1, %vm581_vm2 }
  0xc2   : > { %v576_v12 = vmul.f32 %v4053_v31, %v575_v32  ;;  %v556_v32 = vsub.f32 %v4611_v60, %v4719_v16 }
  0xc4   : > { %v577_v35 = vmul.f32 0.5, %v576_v12 }
  0xc6   : > { %v578_v36 = vsub.f32 1.5, %v577_v35 }
  0xc8   : > { %v579_v41 = vmul.f32 %v4053_v31, %v578_v36  ;;  %v558_v36 = vsub.f32 %v4623_v8, %v4719_v16 }
  0xca   : > { %v4728_v43 = vsel %vm582_vm3, %v4053_v31, %v579_v41 }
  0xcb   : > { %v584_v45 = vmul.f32 %v4728_v43, %v541_v37  ;;  %v585_v46 = vmul.f32 %v4728_v43, %v542_v40  ;;  %v586_v2 = vmul.f32 %v4728_v43, %v543_v50  ;;  %v587_v3 = vmul.f32 %v4728_v43, %v544_v52 }
  0xcc   : > { %v588_v58 = vmul.f32 %v4728_v43, %v545_v55  ;;  %v589_v59 = vmul.f32 %v4728_v43, %v546_v57  ;;  %v590_v63 = vmul.f32 %v4728_v43, %v547_v6  ;;  %v591_v7 = vmul.f32 %v4728_v43, %v548_v62 }
  0xcd   : > { %v616_v48 = vpack.c.bf16 %v585_v46, %v584_v45  ;;  %v617_v53 = vpack.c.bf16 %v587_v3, %v586_v2  ;;  %v592_v10 = vmul.f32 %v4728_v43, %v549_v15  ;;  %v593_v17 = vmul.f32 %v4728_v43, %v550_v9  ;;  %v4780_v45 = vld [vmem:[#allocation10] sm:$0xff] }
  0xce   : > { %v618_v4 = vpack.c.bf16 %v589_v59, %v588_v58  ;;  %v619_v11 = vpack.c.bf16 %v591_v7, %v590_v63  ;;  %v594_v22 = vmul.f32 %v4728_v43, %v551_v24  ;;  %v595_v25 = vmul.f32 %v4728_v43, %v552_v19 }
  0xcf   : > { %705 = vmatmul.bf16.vlgmr.msra.gmra.mxu0 %v616_v48  ;;  %v620_v20 = vpack.c.bf16 %v593_v17, %v592_v10  ;;  %v596_v27 = vmul.f32 %v4728_v43, %v553_v33  ;;  %v597_v31 = vmul.f32 %v4728_v43, %v554_v26  ;;  %v598_v12 = vmul.f32 %v4728_v43, %v555_v42 }
  0xd0   : > { %v621_v29 = vpack.c.bf16 %v595_v25, %v594_v22  ;;  %v599_v35 = vmul.f32 %v4728_v43, %v556_v32  ;;  %v600_v37 = vmul.f32 %v4728_v43, %v557_v51  ;;  %v601_v40 = vmul.f32 %v4728_v43, %v558_v36 }
  0xd1   : > { %v622_v38 = vpack.c.bf16 %v597_v31, %v596_v27  ;;  %v4783_v60 = vperm.slane %v4780_v45, 0  ;;  %v559_v46 = vsub.f32 %v4629_v13, %v4719_v16  ;;  %v603_v2 = vmul.f32 %v4728_v43, %v560_v0 }
  0xd2   : > { %v623_v47 = vpack.c.bf16 %v599_v35, %v598_v12  ;;  %v624_v56 = vpack.c.bf16 %v601_v40, %v600_v37  ;;  %v561_v13 = vsub.f32 %v4641_v23, %v4719_v16  ;;  %v605_v6 = vmul.f32 %v4728_v43, %v562_v18 }
  0xd3   : > { %v602_v52 = vmul.f32 %v4728_v43, %v559_v46  ;;  %v563_v23 = vsub.f32 %v4653_v34, %v4719_v16  ;;  %v607_v17 = vmul.f32 %v4728_v43, %v564_v28  ;;  %v565_v34 = vsub.f32 %v4665_v44, %v4719_v16 }
  0xd4   : > { %v609_v26 = vmul.f32 %v4728_v43, %v566_v39  ;;  %v567_v42 = vsub.f32 %v4677_v54, %v4719_v16  ;;  %v568_v44 = vsub.f32 %v4683_v61, %v4719_v16  ;;  %v569_v51 = vsub.f32 %v4689_v5, %v4719_v16 }
  0xd5   : > { %v606_v10 = vmul.f32 %v4728_v43, %v563_v23  ;;  %v608_v33 = vmul.f32 %v4728_v43, %v565_v34  ;;  %v570_v36 = vsub.f32 %v4695_v14, %v4719_v16  ;;  %v572_v46 = vsub.f32 %v4707_v30, %v4719_v16 }
  0xd6   : > { %v610_v32 = vmul.f32 %v4728_v43, %v567_v42  ;;  %v611_v12 = vmul.f32 %v4728_v43, %v568_v44  ;;  %v612_v54 = vmul.f32 %v4728_v43, %v569_v51  ;;  %v3602_v42 = vld [vmem:[%s4502_s15 + $0x10] sm:$0xf]  ;;  %v3890_v44 = vld [vmem:[%s4502_s15 + $0x14] sm:$0xf0] }
  0xd7   : > { %v627_v24 = vpack.c.bf16 %v607_v17, %v606_v10  ;;  %v628_v31 = vpack.c.bf16 %v609_v26, %v608_v33  ;;  %v613_v40 = vmul.f32 %v4728_v43, %v570_v36 }
  0xd8   : > { %v629_v35 = vpack.c.bf16 %v611_v12, %v610_v32  ;;  %v4883_v12 = vor.u32 %v3890_v44, %v3602_v42 }
  0xd9   : > { %v630_v61 = vpack.c.bf16 %v613_v40, %v612_v54 }
  0xdf   : > { %710 = vmatmul.bf16.gmra.mxu0 %v617_v53  ;;  %v625_v53 = vpack.c.bf16 %v603_v2, %v602_v52 }
  0xef   : > { %715 = vmatmul.bf16.gmra.mxu0 %v618_v4  ;;  %v604_v4 = vmul.f32 %v4728_v43, %v561_v13 }
  0xf1   : > { %v626_v63 = vpack.c.bf16 %v605_v6, %v604_v4 }
  0xff   : > { %720 = vmatmul.bf16.gmra.mxu0 %v619_v11 }
 0x10f   : > { %725 = vmatmul.bf16.gmra.mxu0 %v620_v20 }
 0x11f   : > { %730 = vmatmul.bf16.gmra.mxu0 %v621_v29 }
 0x12f   : > { %735 = vmatmul.bf16.gmra.mxu0 %v622_v38 }
 0x13f   : > { %740 = vmatmul.bf16.gmra.mxu0 %v623_v47 }
 0x14c   : > { %v706_v41 = vpop.f32.mrf.mxu0 }
 0x14d   : > { %v4790_v8 = vadd.f32 %v706_v41, %v4783_v60  ;;  %v571_v41 = vsub.f32 %v4701_v21, %v4719_v16 }
 0x14f   : > { %745 = vmatmul.bf16.gmra.mxu0 %v624_v56  ;;  %v614_v5 = vmul.f32 %v4728_v43, %v571_v41 }
 0x154   : > { %v708_v48 = vpop.f32.mrf.mxu0 }
 0x155   : > { %v4793_v50 = vadd.f32 %v708_v48, %v4783_v60  ;;  %v615_v48 = vmul.f32 %v4728_v43, %v572_v46  ;;  %v3610_v46 = vld [vmem:[%s4502_s15 + $0x20] sm:$0xf] }
 0x157   : > { %v786_v3 = vpack.c.bf16 %v4793_v50, %v4790_v8  ;;  %v631_v14 = vpack.c.bf16 %v615_v48, %v614_v5 }
 0x15c   : > { %v711_v55 = vpop.f32.mrf.mxu0 }
 0x15d   : > { %v4804_v58 = vadd.f32 %v711_v55, %v4783_v60 }
 0x15f   : > { %750 = vmatmul.bf16.gmra.mxu0 %v625_v53 }
 0x164   : > { %v713_v57 = vpop.f32.mrf.mxu0 }
 0x165   : > { %v4807_v59 = vadd.f32 %v713_v57, %v4783_v60 }
 0x167   : > { %v787_v62 = vpack.c.bf16 %v4807_v59, %v4804_v58  ;;  %v3594_v58 = vld [vmem:[%s4502_s15] sm:$0xf]  ;;  %v3888_v59 = vld [vmem:[%s4502_s15 + $0x4] sm:$0xf0] }
 0x16c   : > { %v716_v7 = vpop.f32.mrf.mxu0 }
 0x16d   : > { %v4818_v15 = vadd.f32 %v716_v7, %v4783_v60 }
 0x16f   : > { %755 = vmatmul.bf16.gmra.mxu0 %v626_v63 }
 0x174   : > { %v718_v11 = vpop.f32.mrf.mxu0 }
 0x175   : > { %v4821_v9 = vadd.f32 %v718_v11, %v4783_v60 }
 0x177   : > { %v788_v20 = vpack.c.bf16 %v4821_v9, %v4818_v15 }
 0x17c   : > { %v721_v19 = vpop.f32.mrf.mxu0 }
 0x17d   : > { %v722_v25 = vadd.f32 %v721_v19, %v4783_v60 }
 0x17f   : > { %760 = vmatmul.bf16.gmra.mxu0 %v627_v24 }
 0x184   : > { %v723_v22 = vpop.f32.mrf.mxu0 }
 0x185   : > { %v724_v29 = vadd.f32 %v723_v22, %v4783_v60 }
 0x187   : > { %v789_v27 = vpack.c.bf16 %v724_v29, %v722_v25 }
 0x18c   : > { %v726_v38 = vpop.f32.mrf.mxu0 }
 0x18d   : > { %v727_v63 = vadd.f32 %v726_v38, %v4783_v60 }
 0x18f   : > { %765 = vmatmul.bf16.gmra.mxu0 %v628_v31 }
 0x194   : > { %v728_v49 = vpop.f32.mrf.mxu0 }
 0x195   : > { %v729_v4 = vadd.f32 %v728_v49, %v4783_v60 }
 0x197   : > { %v790_v7 = vpack.c.bf16 %v729_v4, %v727_v63  ;;  %v3896_v4 = vld [vmem:[%s4502_s15 + $0x44] sm:$0xf0]  ;;  %v3891_v63 = vld [vmem:[%s4502_s15 + $0x24] sm:$0xf] }
 0x19c   : > { %v731_v47 = vpop.f32.mrf.mxu0 }
 0x19d   : > { %v732_v43 = vadd.f32 %v731_v47, %v4783_v60 }
 0x19f   : > { %770 = vmatmul.bf16.gmra.mxu0 %v629_v35 }
 0x1a4   : > { %v733_v37 = vpop.f32.mrf.mxu0 }
 0x1a5   : > { %v734_v30 = vadd.f32 %v733_v37, %v4783_v60 }
 0x1a7   : > { %v791_v6 = vpack.c.bf16 %v734_v30, %v732_v43  ;;  %v3889_v30 = vld [vmem:[%s4502_s15 + $0x14] sm:$0xf]  ;;  %v3626_v43 = vld [vmem:[%s4502_s15 + $0x40] sm:$0xf] }
 0x1ac   : > { %v736_v56 = vpop.f32.mrf.mxu0 }
 0x1ad   : > { %v737_v21 = vadd.f32 %v736_v56, %v4783_v60 }
 0x1af   : > { %775 = vmatmul.bf16.gmra.mxu0 %v630_v61 }
 0x1b4   : > { %v738_v0 = vpop.f32.mrf.mxu0 }
 0x1b5   : > { %v739_v13 = vadd.f32 %v738_v0, %v4783_v60  ;;  %v3892_v0 = vld [vmem:[%s4502_s15 + $0x24] sm:$0xf0] }
 0x1b7   : > { %v792_v16 = vpack.c.bf16 %v739_v13, %v737_v21  ;;  %v3894_v21 = vld [vmem:[%s4502_s15 + $0x34] sm:$0xf0] }
 0x1bc   : > { %v741_v52 = vpop.f32.mrf.mxu0 }
 0x1bd   : > { %v742_v53 = vadd.f32 %v741_v52, %v4783_v60 }
 0x1bf   : > { %780 = vmatmul.bf16.gmra.mxu0 %v631_v14  ;;  %v4896_v14 = vor.u32 %v3892_v0, %v3610_v46  ;;  %v3908_v46 = vld [vmem:[%s4502_s15 + $0xa4] sm:$0xf0] }
 0x1c4   : > { %v743_v2 = vpop.f32.mrf.mxu0 }
 0x1c5   : > { %v744_v55 = vadd.f32 %v743_v2, %v4783_v60  ;;  %v3887_v2 = vld [vmem:[%s4502_s15 + $0x4] sm:$0xf] }
 0x1c7   : > { %v793_v18 = vpack.c.bf16 %v744_v55, %v742_v53  ;;  %v3596_v53 = vld [vmem:[%s4502_s15 + $0x8] sm:$0xf0] }
 0x1c8   : > { %v4902_v13 = vor.u32 %v3887_v2, %v3596_v53 }
 0x1c9   : > { %963 = vmatpush.bf16.msra.mxu1 %v793_v18  ;;  %v3618_v18 = vld [vmem:[%s4502_s15 + $0x30] sm:$0xf] }
 0x1cc   : > { %v4858_v57 = vpop.f32.mrf.mxu0 }
 0x1cd   : > { %964 = vmatpush.bf16.msra.mxu1 %v792_v16  ;;  %v747_v52 = vadd.f32 %v4858_v57, %v4783_v60  ;;  %v3604_v16 = vld [vmem:[%s4502_s15 + $0x18] sm:$0xf0] }
 0x1ce   : > { %v4912_v57 = vor.u32 %v3889_v30, %v3604_v16  ;;  %v3682_v16 = vld [vmem:[%s4502_s15 + $0xb0] sm:$0xf] }
 0x1d1   : > { %965 = vmatpush.bf16.msra.mxu1 %v791_v6  ;;  %v4918_v6 = vor.u32 %v3896_v4, %v3626_v43 }
 0x1d4   : > { %v748_v23 = vpop.f32.mrf.mxu0 }
 0x1d5   : > { %966 = vmatpush.bf16.msra.mxu1 %v790_v7  ;;  %v749_v5 = vadd.f32 %v748_v23, %v4783_v60  ;;  %v3612_v7 = vld [vmem:[%s4502_s15 + $0x28] sm:$0xf0] }
 0x1d6   : > { %v4922_v23 = vor.u32 %v3891_v63, %v3612_v7 }
 0x1d7   : > { %v794_v55 = vpack.c.bf16 %v749_v5, %v747_v52  ;;  %v4983_v5 = vperm.slane %v4780_v45, 4  ;;  %v3910_v45 = vld [vmem:[%s4502_s15 + $0xb4] sm:$0xf0] }
 0x1d8   : > { %7099 = vst [vmem:[#allocation19_spill] sm:$0xff] %v4922_v23  ;;  %v4997_v4 = vor.u32 %v3910_v45, %v3682_v16  ;;  %v3911_v16 = vld [vmem:[%s4502_s15 + $0xc4] sm:$0xf] }
 0x1d9   : > { %967 = vmatpush.bf16.msra.mxu1 %v789_v27 }
 0x1da   : > { %7108 = vst [vmem:[#allocation28_spill] sm:$0xff] %v4997_v4 }
 0x1dc   : > { %v751_v28 = vpop.f32.mrf.mxu0 }
 0x1dd   : > { %968 = vmatpush.bf16.msra.mxu1 %v788_v20  ;;  %v752_v41 = vadd.f32 %v751_v28, %v4783_v60  ;;  %v3634_v28 = vld [vmem:[%s4502_s15 + $0x50] sm:$0xf] }
 0x1e1   : > { %969 = vmatpush.bf16.msra.mxu1 %v787_v62  ;;  %v4871_v62 = vor.u32 %v3888_v59, %v3594_v58  ;;  %v3902_v58 = vld [vmem:[%s4502_s15 + $0x74] sm:$0xf0] }
 0x1e4   : > { %v753_v11 = vpop.f32.mrf.mxu0 }
 0x1e5   : > { %970 = vmatpush.bf16.msra.mxu1 %v786_v3  ;;  %v754_v61 = vadd.f32 %v753_v11, %v4783_v60  ;;  %v3898_v11 = vld [vmem:[%s4502_s15 + $0x54] sm:$0xf0] }
 0x1e7   : > { %v795_v48 = vpack.c.bf16 %v754_v61, %v752_v41  ;;  %v3660_v61 = vld [vmem:[%s4502_s15 + $0x88] sm:$0xf0]  ;;  %v3674_v41 = vld [vmem:[%s4502_s15 + $0xa0] sm:$0xf] }
 0x1e8   : > { %971 = vmatmul.bf16.vlgmr.msra.gmra.mxu1 %v4871_v62  ;;  %v4980_v0 = vor.u32 %v3908_v46, %v3674_v41 }
 0x1ea   : > { %7106 = vst [vmem:[#allocation26_spill] sm:$0xff] %v4980_v0 }
 0x1ec   : > { %v756_v15 = vpop.f32.mrf.mxu0 }
 0x1ed   : > { %v757_v40 = vadd.f32 %v756_v15, %v4783_v60  ;;  %v4928_v15 = vor.u32 %v3898_v11, %v3634_v28 }
 0x1f4   : > { %v758_v9 = vpop.f32.mrf.mxu0 }
 0x1f5   : > { %v759_v37 = vadd.f32 %v758_v9, %v4783_v60  ;;  %v3893_v9 = vld [vmem:[%s4502_s15 + $0x34] sm:$0xf] }
 0x1f7   : > { %v796_v56 = vpack.c.bf16 %v759_v37, %v757_v40  ;;  %v3903_v40 = vld [vmem:[%s4502_s15 + $0x84] sm:$0xf] }
 0x1f8   : > { %976 = vmatmul.bf16.gmra.mxu1 %v4883_v12 }
 0x1fc   : > { %v761_v10 = vpop.f32.mrf.mxu0 }
 0x1fd   : > { %v762_v36 = vadd.f32 %v761_v10, %v4783_v60  ;;  %v3620_v10 = vld [vmem:[%s4502_s15 + $0x38] sm:$0xf0] }
 0x204   : > { %v763_v17 = vpop.f32.mrf.mxu0 }
 0x205   : > { %v764_v47 = vadd.f32 %v763_v17, %v4783_v60  ;;  %v4932_v17 = vor.u32 %v3893_v9, %v3620_v10 }
 0x207   : > { %v797_v54 = vpack.c.bf16 %v764_v47, %v762_v36  ;;  %7100 = vst [vmem:[#allocation20_spill] sm:$0xff] %v4932_v17  ;;  %v3666_v47 = vld [vmem:[%s4502_s15 + $0x90] sm:$0xf] }
 0x208   : > { %981 = vmatmul.bf16.gmra.mxu1 %v4896_v14 }
 0x20c   : > { %v766_v24 = vpop.f32.mrf.mxu0 }
 0x20d   : > { %v767_v35 = vadd.f32 %v766_v24, %v4783_v60  ;;  %v3642_v24 = vld [vmem:[%s4502_s15 + $0x60] sm:$0xf] }
 0x214   : > { %v768_v19 = vpop.f32.mrf.mxu0 }
 0x215   : > { %v769_v49 = vadd.f32 %v768_v19, %v4783_v60  ;;  %v3900_v19 = vld [vmem:[%s4502_s15 + $0x64] sm:$0xf0] }
 0x217   : > { %v798_v51 = vpack.c.bf16 %v769_v49, %v767_v35  ;;  %v3901_v49 = vld [vmem:[%s4502_s15 + $0x74] sm:$0xf] }
 0x21c   : > { %v771_v34 = vpop.f32.mrf.mxu0 }
 0x21d   : > { %v772_v38 = vadd.f32 %v771_v34, %v4783_v60  ;;  %v4938_v34 = vor.u32 %v3900_v19, %v3642_v24  ;;  %v3907_v19 = vld [vmem:[%s4502_s15 + $0xa4] sm:$0xf] }
 0x224   : > { %v773_v39 = vpop.f32.mrf.mxu0 }
 0x225   : > { %v774_v27 = vadd.f32 %v773_v39, %v4783_v60  ;;  %v3895_v39 = vld [vmem:[%s4502_s15 + $0x44] sm:$0xf] }
 0x227   : > { %v799_v32 = vpack.c.bf16 %v774_v27, %v772_v38  ;;  %v3899_v27 = vld [vmem:[%s4502_s15 + $0x64] sm:$0xf] }
 0x22c   : > { %v776_v22 = vpop.f32.mrf.mxu0 }
 0x22d   : > { %v777_v26 = vadd.f32 %v776_v22, %v4783_v60  ;;  %v3628_v22 = vld [vmem:[%s4502_s15 + $0x48] sm:$0xf0] }
 0x234   : > { %v778_v20 = vpop.f32.mrf.mxu0 }
 0x235   : > { %v779_v3 = vadd.f32 %v778_v20, %v4783_v60  ;;  %v4942_v20 = vor.u32 %v3895_v39, %v3628_v22  ;;  %v3676_v39 = vld [vmem:[%s4502_s15 + $0xa8] sm:$0xf0] }
 0x237   : > { %v800_v31 = vpack.c.bf16 %v779_v3, %v777_v26  ;;  %7101 = vst [vmem:[#allocation21_spill] sm:$0xff] %v4942_v20  ;;  %v3658_v3 = vld [vmem:[%s4502_s15 + $0x80] sm:$0xf] }
 0x23c   : > { %v781_v25 = vpop.f32.mrf.mxu0 }
 0x23d   : > { %v782_v8 = vadd.f32 %v781_v25, %v4783_v60  ;;  %v3650_v25 = vld [vmem:[%s4502_s15 + $0x70] sm:$0xf] }
 0x23e   : > { %v4948_v59 = vor.u32 %v3902_v58, %v3650_v25  ;;  %v3690_v25 = vld [vmem:[%s4502_s15 + $0xc0] sm:$0xf]  ;;  %v3912_v58 = vld [vmem:[%s4502_s15 + $0xc4] sm:$0xf0] }
 0x244   : > { %v783_v29 = vpop.f32.mrf.mxu0 }
 0x245   : > { %v784_v50 = vadd.f32 %v783_v29, %v4783_v60  ;;  %v4908_v60 = vor.u32 %v3894_v21, %v3618_v18  ;;  %v3897_v29 = vld [vmem:[%s4502_s15 + $0x54] sm:$0xf]  ;;  %v3668_v21 = vld [vmem:[%s4502_s15 + $0x98] sm:$0xf0] }
 0x246   : > { %v3905_v18 = vld [vmem:[%s4502_s15 + $0x94] sm:$0xf] }
 0x247   : > { %v801_v33 = vpack.c.bf16 %v784_v50, %v782_v8  ;;  %986 = vmatmul.bf16.gmra.mxu1 %v4908_v60  ;;  %v3636_v8 = vld [vmem:[%s4502_s15 + $0x58] sm:$0xf0]  ;;  %v5001_v28 = vor.u32 %v3905_v18, %v3668_v21 }
 0x248   : > { %v4952_v50 = vor.u32 %v3897_v29, %v3636_v8  ;;  %v5013_v8 = vor.u32 %v3912_v58, %v3690_v25 }
 0x249   : > { %1052 = vmatpush.bf16.msra.mxu2 %v801_v33  ;;  %v3904_v33 = vld [vmem:[%s4502_s15 + $0x84] sm:$0xf0]  ;;  %7109 = vst [vmem:[#allocation29_spill] sm:$0xff] %v5001_v28 }
 0x24a   : > { %7102 = vst [vmem:[#allocation22_spill] sm:$0xff] %v4952_v50  ;;  %v4958_v26 = vor.u32 %v3904_v33, %v3658_v3 }
 0x24b   : > { %7110 = vst [vmem:[#allocation30_spill] sm:$0xff] %v5013_v8 }
 0x24d   : > { %1053 = vmatpush.bf16.msra.mxu2 %v800_v31  ;;  %v3644_v31 = vld [vmem:[%s4502_s15 + $0x68] sm:$0xf0] }
 0x24e   : > { %v4962_v42 = vor.u32 %v3899_v27, %v3644_v31  ;;  %v5017_v27 = vor.u32 %v3907_v19, %v3676_v39 }
 0x250   : > { %7103 = vst [vmem:[#allocation23_spill] sm:$0xff] %v4962_v42 }
 0x251   : > { %1054 = vmatpush.bf16.msra.mxu2 %v799_v32  ;;  %v3652_v32 = vld [vmem:[%s4502_s15 + $0x78] sm:$0xf0]  ;;  %7111 = vst [vmem:[#allocation31_spill] sm:$0xff] %v5017_v27 }
 0x252   : > { %v4972_v37 = vor.u32 %v3901_v49, %v3652_v32  ;;  %v3909_v32 = vld [vmem:[%s4502_s15 + $0xb4] sm:$0xf] }
 0x254   : > { %7105 = vst [vmem:[#allocation25_spill] sm:$0xff] %v4972_v37 }
 0x255   : > { %1055 = vmatpush.bf16.msra.mxu2 %v798_v51  ;;  %v3906_v51 = vld [vmem:[%s4502_s15 + $0x94] sm:$0xf0] }
 0x256   : > { %v4970_v36 = vor.u32 %v3906_v51, %v3666_v47  ;;  %v3698_v51 = vld [vmem:[%s4502_s15 + $0xd0] sm:$0xf] }
 0x257   : > { %991 = vmatmul.bf16.gmra.mxu1 %v4918_v6 }
 0x258   : > { %7104 = vst [vmem:[#allocation24_spill] sm:$0xff] %v4970_v36 }
 0x259   : > { %1056 = vmatpush.bf16.msra.mxu2 %v797_v54 }
 0x25d   : > { %1057 = vmatpush.bf16.msra.mxu2 %v796_v56 }
 0x261   : > { %1058 = vmatpush.bf16.msra.mxu2 %v795_v48  ;;  %v4985_v48 = vor.u32 %v3903_v40, %v3660_v61 }
 0x263   : > { %7107 = vst [vmem:[#allocation27_spill] sm:$0xff] %v4985_v48 }
 0x265   : > { %1059 = vmatpush.bf16.msra.mxu2 %v794_v55  ;;  %v972_v38 = vpop.f32.mrf.mxu1 }
 0x266   : > { %v973_v52 = vadd.f32 %v972_v38, %v4983_v5 }
 0x267   : > { %996 = vmatmul.bf16.gmra.mxu1 %v4928_v15 }
 0x268   : > { %1060 = vmatmul.bf16.vlgmr.msra.gmra.mxu2 %v4902_v13 }
 0x26d   : > { %v974_v44 = vpop.f32.mrf.mxu1 }
 0x26e   : > { %v975_v43 = vadd.f32 %v974_v44, %v4983_v5 }
 0x275   : > { %v977_v35 = vpop.f32.mrf.mxu1 }
 0x276   : > { %v978_v11 = vadd.f32 %v977_v35, %v4983_v5  ;;  %v3684_v35 = vld [vmem:[%s4502_s15 + $0xb8] sm:$0xf0] }
 0x277   : > { %1001 = vmatmul.bf16.gmra.mxu1 %v4938_v34  ;;  %v5035_v46 = vor.u32 %v3909_v32, %v3684_v35  ;;  %v3918_v32 = vld [vmem:[%s4502_s15 + $0xf4] sm:$0xf0] }
 0x278   : > { %1065 = vmatmul.bf16.gmra.mxu2 %v4912_v57 }
 0x279   : > { %7113 = vst [vmem:[#allocation33_spill] sm:$0xff] %v5035_v46 }
 0x27d   : > { %v979_v54 = vpop.f32.mrf.mxu1 }
 0x27e   : > { %v980_v29 = vadd.f32 %v979_v54, %v4983_v5  ;;  %v3914_v54 = vld [vmem:[%s4502_s15 + $0xd4] sm:$0xf0] }
 0x27f   : > { %v5031_v61 = vor.u32 %v3914_v54, %v3698_v51 }
 0x281   : > { %7112 = vst [vmem:[#allocation32_spill] sm:$0xff] %v5031_v61 }
 0x285   : > { %v982_v56 = vpop.f32.mrf.mxu1 }
 0x286   : > { %v983_v31 = vadd.f32 %v982_v56, %v4983_v5 }
 0x287   : > { %1006 = vmatmul.bf16.gmra.mxu1 %v4948_v59 }
 0x288   : > { %1070 = vmatmul.bf16.gmra.mxu2 %v4922_v23 }
 0x28d   : > { %v984_v2 = vpop.f32.mrf.mxu1 }
 0x28e   : > { %v985_v40 = vadd.f32 %v984_v2, %v4983_v5  ;;  %v3692_v2 = vld [vmem:[%s4502_s15 + $0xc8] sm:$0xf0] }
 0x28f   : > { %v5053_v39 = vor.u32 %v3911_v16, %v3692_v2  ;;  %v3915_v16 = vld [vmem:[%s4502_s15 + $0xe4] sm:$0xf]  ;;  %v3708_v2 = vld [vmem:[%s4502_s15 + $0xe8] sm:$0xf0] }
 0x291   : > { %7115 = vst [vmem:[#allocation35_spill] sm:$0xff] %v5053_v39 }
 0x297   : > { %1011 = vmatmul.bf16.gmra.mxu1 %v4958_v26 }
 0x298   : > { %1075 = vmatmul.bf16.gmra.mxu2 %v4932_v17 }
 0x2a7   : > { %1016 = vmatmul.bf16.gmra.mxu1 %v4970_v36 }
 0x2a8   : > { %1080 = vmatmul.bf16.gmra.mxu2 %v4942_v20 }
 0x2b7   : > { %1021 = vmatmul.bf16.gmra.mxu1 %v4980_v0 }
 0x2b8   : > { %1085 = vmatmul.bf16.gmra.mxu2 %v4952_v50 }
 0x2c4   : > { %v987_v30 = vpop.f32.mrf.mxu1 }
 0x2c7   : > { %1026 = vmatmul.bf16.gmra.mxu1 %v4997_v4 }
 0x2c8   : > { %1090 = vmatmul.bf16.gmra.mxu2 %v4962_v42 }
 0x2cc   : > { %v989_v9 = vpop.f32.mrf.mxu1 }
 0x2d4   : > { %v992_v22 = vpop.f32.mrf.mxu1 }
 0x2d5   : > { %v993_v25 = vadd.f32 %v992_v22, %v4983_v5 }
 0x2d7   : > { %1031 = vmatmul.bf16.gmra.mxu1 %v5013_v8 }
 0x2d8   : > { %1095 = vmatmul.bf16.gmra.mxu2 %v4972_v37 }
 0x2dc   : > { %v5022_v38 = vpop.f32.mrf.mxu1 }
 0x2e4   : > { %v997_v47 = vpop.f32.mrf.mxu1 }
 0x2e7   : > { %1036 = vmatmul.bf16.gmra.mxu1 %v5031_v61 }
 0x2e8   : > { %1100 = vmatmul.bf16.gmra.mxu2 %v4985_v48 }
 0x2eb   : > { %v1061_v53 = vpop.f32.mrf.mxu2 }
 0x2ec   : > { %v4990_v55 = vadd.f32 %v1061_v53, %v973_v52  ;;  %v988_v52 = vadd.f32 %v987_v30, %v4983_v5  ;;  %v5040_v53 = vpop.f32.mrf.mxu1 }
 0x2f3   : > { %v1063_v63 = vpop.f32.mrf.mxu2 }
 0x2f4   : > { %v4999_v7 = vadd.f32 %v1063_v63, %v975_v43  ;;  %v1002_v45 = vpop.f32.mrf.mxu1  ;;  %v3706_v43 = vld [vmem:[%s4502_s15 + $0xe0] sm:$0xf]  ;;  %v3916_v63 = vld [vmem:[%s4502_s15 + $0xe4] sm:$0xf0] }
 0x2f8   : > { %1105 = vmatmul.bf16.gmra.mxu2 %v5001_v28 }
 0x2fb   : > { %v1066_v10 = vpop.f32.mrf.mxu2 }
 0x2fc   : > { %v5006_v24 = vadd.f32 %v1066_v10, %v978_v11  ;;  %v990_v11 = vadd.f32 %v989_v9, %v4983_v5  ;;  %v5049_v10 = vor.u32 %v3916_v63, %v3706_v43  ;;  %v3913_v9 = vld [vmem:[%s4502_s15 + $0xd4] sm:$0xf]  ;;  %v5083_v63 = vor.u32 %v3915_v16, %v3708_v2 }
 0x2fe   : > { %7114 = vst [vmem:[#allocation34_spill] sm:$0xff] %v5049_v10  ;;  %1041 = vmatmul.bf16.gmra.mxu1 %v5049_v10 }
 0x2ff   : > { %7118 = vst [vmem:[#allocation38_spill] sm:$0xff] %v5083_v63 }
 0x303   : > { %v1068_v3 = vpop.f32.mrf.mxu2 }
 0x304   : > { %v5015_v33 = vadd.f32 %v1068_v3, %v980_v29  ;;  %v5058_v29 = vpop.f32.mrf.mxu1 }
 0x306   : > { %v5146_v10 = vmax.f32 %v5015_v33, 0.0 }
 0x308   : > { %1110 = vmatmul.bf16.gmra.mxu2 %v5017_v27  ;;  %v1214_v42 = vmul.f32 %v5146_v10, %v5146_v10 }
 0x30b   : > { %v1071_v44 = vpop.f32.mrf.mxu2 }
 0x30c   : > { %v5024_v49 = vadd.f32 %v1071_v44, %v983_v31  ;;  %v3700_v31 = vld [vmem:[%s4502_s15 + $0xd8] sm:$0xf0]  ;;  %v3714_v44 = vld [vmem:[%s4502_s15 + $0xf0] sm:$0xf]  ;;  %v1007_v22 = vpop.f32.mrf.mxu1 }
 0x30d   : > { %v5066_v35 = vor.u32 %v3918_v32, %v3714_v44  ;;  %v5070_v54 = vor.u32 %v3913_v9, %v3700_v31  ;;  %v3716_v9 = vld [vmem:[%s4502_s15 + $0xf8] sm:$0xf0] }
 0x30e   : > { %v5153_v61 = vmax.f32 %v5024_v49, 0.0 }
 0x30f   : > { %7116 = vst [vmem:[#allocation36_spill] sm:$0xff] %v5066_v35  ;;  %1046 = vmatmul.bf16.gmra.mxu1 %v5066_v35 }
 0x310   : > { %7117 = vst [vmem:[#allocation37_spill] sm:$0xff] %v5070_v54  ;;  %v1215_v4 = vmul.f32 %v5153_v61, %v5153_v61 }
 0x313   : > { %v1073_v56 = vpop.f32.mrf.mxu2 }
 0x314   : > { %v5033_v41 = vadd.f32 %v1073_v56, %v985_v40  ;;  %v998_v40 = vadd.f32 %v997_v47, %v4983_v5 }
 0x316   : > { %v5160_v8 = vmax.f32 %v5033_v41, 0.0 }
 0x318   : > { %1115 = vmatmul.bf16.gmra.mxu2 %v5035_v46  ;;  %v1216_v0 = vmul.f32 %v5160_v8, %v5160_v8 }
 0x31b   : > { %v1076_v18 = vpop.f32.mrf.mxu2 }
 0x31c   : > { %v5042_v21 = vadd.f32 %v1076_v18, %v988_v52  ;;  %v5077_v18 = vpop.f32.mrf.mxu1 }
 0x31e   : > { %v5168_v49 = vmax.f32 %v5042_v21, 0.0 }
 0x320   : > { %v1217_v23 = vmul.f32 %v5168_v49, %v5168_v49 }
 0x323   : > { %v1078_v30 = vpop.f32.mrf.mxu2 }
 0x324   : > { %v5051_v19 = vadd.f32 %v1078_v30, %v990_v11  ;;  %v1003_v11 = vadd.f32 %v1002_v45, %v4983_v5  ;;  %v1012_v30 = vpop.f32.mrf.mxu1 }
 0x328   : > { %1120 = vmatmul.bf16.gmra.mxu2 %v5053_v39 }
 0x32b   : > { %v1081_v58 = vpop.f32.mrf.mxu2 }
 0x32c   : > { %v5060_v3 = vadd.f32 %v1081_v58, %v993_v25  ;;  %v3917_v58 = vld [vmem:[%s4502_s15 + $0xf4] sm:$0xf]  ;;  %v5093_v44 = vpop.f32.mrf.mxu1 }
 0x32d   : > { %v5095_v32 = vor.u32 %v3917_v58, %v3716_v9 }
 0x32f   : > { %7119 = vst [vmem:[#allocation39_spill] sm:$0xff] %v5095_v32 }
 0x333   : > { %v5068_v51 = vpop.f32.mrf.mxu2 }
 0x334   : > { %v1017_v16 = vpop.f32.mrf.mxu1 }
 0x338   : > { %1125 = vmatmul.bf16.gmra.mxu2 %v5070_v54 }
 0x33b   : > { %v1086_v56 = vpop.f32.mrf.mxu2 }
 0x33c   : > { %v5075_v52 = vadd.f32 %v1086_v56, %v998_v40  ;;  %v1008_v40 = vadd.f32 %v1007_v22, %v4983_v5  ;;  %v1018_v22 = vadd.f32 %v1017_v16, %v4983_v5 }
 0x343   : > { %v5081_v43 = vpop.f32.mrf.mxu2 }
 0x348   : > { %1130 = vmatmul.bf16.gmra.mxu2 %v5083_v63 }
 0x34b   : > { %v1091_v25 = vpop.f32.mrf.mxu2 }
 0x34c   : > { %v5087_v47 = vadd.f32 %v1091_v25, %v1003_v11  ;;  %v5103_v11 = vpop.f32.mrf.mxu1  ;;  %v1013_v25 = vadd.f32 %v1012_v30, %v4983_v5 }
 0x353   : > { %v5091_v31 = vpop.f32.mrf.mxu2 }
 0x354   : > { %v1022_v39 = vpop.f32.mrf.mxu1 }
 0x355   : > { %v1023_v27 = vadd.f32 %v1022_v39, %v4983_v5  ;;  %v5138_v39 = vmax.f32 %v4990_v55, 0.0 }
 0x358   : > { %1135 = vmatmul.bf16.gmra.mxu2 %v5095_v32 }
 0x35b   : > { %v1096_v56 = vpop.f32.mrf.mxu2 }
 0x35c   : > { %v5099_v45 = vadd.f32 %v1096_v56, %v1008_v40  ;;  %v5111_v32 = vpop.f32.mrf.mxu1 }
 0x363   : > { %v5101_v2 = vpop.f32.mrf.mxu2 }
 0x364   : > { %v5117_v46 = vpop.f32.mrf.mxu1 }
 0x36b   : > { %v1101_v63 = vpop.f32.mrf.mxu2 }
 0x36c   : > { %v5106_v54 = vadd.f32 %v1101_v63, %v1013_v25  ;;  %v5122_v63 = vpop.f32.mrf.mxu1 }
 0x373   : > { %v5108_v58 = vpop.f32.mrf.mxu2 }
 0x374   : > { %v5126_v35 = vpop.f32.mrf.mxu1 }
 0x37b   : > { %v1106_v9 = vpop.f32.mrf.mxu2 }
 0x37c   : > { %v5113_v40 = vadd.f32 %v1106_v9, %v1018_v22  ;;  %v5131_v22 = vmax.f32 %v4999_v7, 0.0  ;;  %v5135_v48 = vpop.f32.mrf.mxu1  ;;  %v1211_v7 = vmul.f32 %v5138_v39, %v5138_v39 }
 0x37e   : > { %v1173_v55 = vadd.f32 %v5131_v22, %v5138_v39 }
 0x383   : > { %v5115_v56 = vpop.f32.mrf.mxu2 }
 0x38b   : > { %v1111_v30 = vpop.f32.mrf.mxu2 }
 0x38c   : > { %v5120_v28 = vadd.f32 %v1111_v30, %v1023_v27  ;;  %v5141_v27 = vmax.f32 %v5006_v24, 0.0  ;;  %v1212_v30 = vmul.f32 %v5131_v22, %v5131_v22 }
 0x38e   : > { %v1213_v37 = vmul.f32 %v5141_v27, %v5141_v27  ;;  %v1243_v24 = vadd.f32 %v1212_v30, %v1211_v7  ;;  %v1174_v50 = vadd.f32 %v1173_v55, %v5141_v27  ;;  %v995_v30 = vadd.f32 %v5022_v38, %v4983_v5  ;;  %v5172_v7 = vpop.f32.mrf.mxu1 }
 0x38f   : > { %v5178_v55 = vmax.f32 %v5051_v19, 0.0  ;;  %v5185_v38 = vmax.f32 %v5060_v3, 0.0 }
 0x390   : > { %v1244_v20 = vadd.f32 %v1243_v24, %v1213_v37  ;;  %v1175_v17 = vadd.f32 %v1174_v50, %v5146_v10  ;;  %v1084_v37 = vadd.f32 %v5068_v51, %v995_v30 }
 0x391   : > { %v1218_v19 = vmul.f32 %v5178_v55, %v5178_v55  ;;  %v1219_v3 = vmul.f32 %v5185_v38, %v5185_v38 }
 0x392   : > { %v1245_v41 = vadd.f32 %v1244_v20, %v1214_v42  ;;  %v1176_v24 = vadd.f32 %v1175_v17, %v5153_v61  ;;  %v1000_v20 = vadd.f32 %v5040_v53, %v4983_v5  ;;  %v5192_v36 = vmax.f32 %v1084_v37, 0.0 }
 0x393   : > { %v5124_v25 = vpop.f32.mrf.mxu2  ;;  %v5201_v53 = vmax.f32 %v5075_v52, 0.0 }
 0x394   : > { %v1246_v21 = vadd.f32 %v1245_v41, %v1215_v4  ;;  %v1177_v50 = vadd.f32 %v1176_v24, %v5160_v8  ;;  %v1089_v17 = vadd.f32 %v5081_v43, %v1000_v20  ;;  %v1005_v41 = vadd.f32 %v5058_v29, %v4983_v5 }
 0x395   : > { %v1220_v43 = vmul.f32 %v5192_v36, %v5192_v36  ;;  %v1221_v52 = vmul.f32 %v5201_v53, %v5201_v53  ;;  %v5218_v29 = vmax.f32 %v5087_v47, 0.0 }
 0x396   : > { %v1247_v42 = vadd.f32 %v1246_v21, %v1216_v0  ;;  %v1178_v51 = vadd.f32 %v1177_v50, %v5168_v49  ;;  %v5208_v24 = vmax.f32 %v1089_v17, 0.0  ;;  %v5210_v21 = vpop.f32.mrf.mxu1  ;;  %v1094_v20 = vadd.f32 %v5091_v31, %v1005_v41 }
 0x397   : > { %v1223_v47 = vmul.f32 %v5218_v29, %v5218_v29 }
 0x398   : > { %v1248_v30 = vadd.f32 %v1247_v42, %v1217_v23  ;;  %v1179_v0 = vadd.f32 %v1178_v51, %v5178_v55  ;;  %v1222_v51 = vmul.f32 %v5208_v24, %v5208_v24 }
 0x39a   : > { %v1249_v37 = vadd.f32 %v1248_v30, %v1218_v19  ;;  %v1180_v23 = vadd.f32 %v1179_v0, %v5185_v38  ;;  %v1010_v19 = vadd.f32 %v5077_v18, %v4983_v5  ;;  %v5234_v18 = vmax.f32 %v5099_v45, 0.0 }
 0x39b   : > { %v5128_v16 = vpop.f32.mrf.mxu2 }
 0x39c   : > { %v1250_v50 = vadd.f32 %v1249_v37, %v1219_v3  ;;  %v1181_v42 = vadd.f32 %v1180_v23, %v5192_v36  ;;  %v5227_v3 = vmax.f32 %v1094_v20, 0.0  ;;  %v1099_v0 = vadd.f32 %v5101_v2, %v1010_v19 }
 0x39d   : > { %v1225_v45 = vmul.f32 %v5234_v18, %v5234_v18 }
 0x39e   : > { %v1251_v17 = vadd.f32 %v1250_v50, %v1220_v43  ;;  %v1182_v31 = vadd.f32 %v1181_v42, %v5201_v53  ;;  %v1015_v43 = vadd.f32 %v5093_v44, %v4983_v5  ;;  %v1224_v20 = vmul.f32 %v5227_v3, %v5227_v3 }
 0x39f   : > { %v5241_v42 = vmax.f32 %v1099_v0, 0.0  ;;  %v1020_v44 = vadd.f32 %v5103_v11, %v4983_v5  ;;  %v1025_v11 = vadd.f32 %v5111_v32, %v4983_v5  ;;  %v5278_v32 = vmax.f32 %v5120_v28, 0.0 }
 0x3a0   : > { %v1252_v41 = vadd.f32 %v1251_v17, %v1221_v52  ;;  %v1183_v37 = vadd.f32 %v1182_v31, %v5208_v24  ;;  %v1104_v2 = vadd.f32 %v5108_v58, %v1015_v43  ;;  %v1042_v52 = vpop.f32.mrf.mxu1  ;;  %v5248_v31 = vmax.f32 %v5106_v54, 0.0 }
 0x3a1   : > { %v1226_v58 = vmul.f32 %v5241_v42, %v5241_v42 }
 0x3a2   : > { %v1253_v23 = vadd.f32 %v1252_v41, %v1222_v51  ;;  %v1184_v50 = vadd.f32 %v1183_v37, %v5218_v29  ;;  %v5255_v37 = vmax.f32 %v1104_v2, 0.0  ;;  %v1227_v54 = vmul.f32 %v5248_v31, %v5248_v31 }
 0x3a3   : > { %v5133_v9 = vpop.f32.mrf.mxu2 }
 0x3a4   : > { %v1254_v19 = vadd.f32 %v1253_v23, %v1223_v47  ;;  %v1185_v17 = vadd.f32 %v1184_v50, %v5227_v3  ;;  %v1109_v47 = vadd.f32 %v5115_v56, %v1020_v44  ;;  %v5262_v50 = vmax.f32 %v5113_v40, 0.0 }
 0x3a5   : > { %v1228_v56 = vmul.f32 %v5255_v37, %v5255_v37 }
 0x3a6   : > { %v1255_v41 = vadd.f32 %v1254_v19, %v1224_v20  ;;  %v1186_v0 = vadd.f32 %v1185_v17, %v5234_v18  ;;  %v1028_v20 = vadd.f32 %v5117_v46, %v4983_v5  ;;  %v5271_v17 = vmax.f32 %v1109_v47, 0.0 }
 0x3a7   : > { %v1030_v46 = vadd.f32 %v5122_v63, %v4983_v5 }
 0x3a8   : > { %v1256_v43 = vadd.f32 %v1255_v41, %v1225_v45  ;;  %v1187_v23 = vadd.f32 %v1186_v0, %v5241_v42  ;;  %v1114_v45 = vadd.f32 %v5124_v25, %v1025_v11  ;;  %v1229_v41 = vmul.f32 %v5262_v50, %v5262_v50  ;;  %v1044_v47 = vpop.f32.mrf.mxu1 }
 0x3a9   : > { %v1117_v0 = vadd.f32 %v5128_v16, %v1028_v20  ;;  %v1119_v28 = vadd.f32 %v5133_v9, %v1030_v46  ;;  %v1231_v16 = vmul.f32 %v5278_v32, %v5278_v32 }
 0x3aa   : > { %v1257_v19 = vadd.f32 %v1256_v43, %v1226_v58  ;;  %v1188_v2 = vadd.f32 %v1187_v23, %v5248_v31  ;;  %v1033_v58 = vadd.f32 %v5126_v35, %v4983_v5  ;;  %v5288_v11 = vmax.f32 %v1114_v45, 0.0 }
 0x3ab   : > { %v5162_v33 = vpop.f32.mrf.mxu2  ;;  %v5294_v20 = vmax.f32 %v1117_v0, 0.0 }
 0x3ac   : > { %v1258_v44 = vadd.f32 %v1257_v19, %v1227_v54  ;;  %v1189_v40 = vadd.f32 %v1188_v2, %v5255_v37  ;;  %v1230_v54 = vmul.f32 %v5271_v17, %v5271_v17  ;;  %v1122_v35 = vadd.f32 %v5162_v33, %v1033_v58 }
 0x3ad   : > { %v1035_v2 = vadd.f32 %v5135_v48, %v4983_v5  ;;  %v1232_v9 = vmul.f32 %v5288_v11, %v5288_v11  ;;  %v1233_v33 = vmul.f32 %v5294_v20, %v5294_v20 }
 0x3ae   : > { %v1259_v25 = vadd.f32 %v1258_v44, %v1228_v56  ;;  %v1190_v23 = vadd.f32 %v1189_v40, %v5262_v50  ;;  %v1038_v56 = vadd.f32 %v5172_v7, %v4983_v5  ;;  %v5304_v40 = vmax.f32 %v1119_v28, 0.0 }
 0x3af   : > { %v5310_v48 = vmax.f32 %v1122_v35, 0.0  ;;  %v1040_v7 = vadd.f32 %v5210_v21, %v4983_v5 }
 0x3b0   : > { %v1260_v19 = vadd.f32 %v1259_v25, %v1229_v41  ;;  %v1191_v63 = vadd.f32 %v1190_v23, %v5271_v17  ;;  %v1043_v23 = vadd.f32 %v1042_v52, %v4983_v5  ;;  %v1045_v52 = vadd.f32 %v1044_v47, %v4983_v5 }
 0x3b1   : > { %v1235_v21 = vmul.f32 %v5310_v48, %v5310_v48 }
 0x3b2   : > { %v1261_v45 = vadd.f32 %v1260_v19, %v1230_v54  ;;  %v1192_v44 = vadd.f32 %v1191_v63, %v5278_v32  ;;  %v1047_v19 = vpop.f32.mrf.mxu1 }
 0x3b3   : > { %v5195_v4 = vpop.f32.mrf.mxu2 }
 0x3b4   : > { %v1124_v41 = vadd.f32 %v5195_v4, %v1035_v2  ;;  %v1262_v46 = vadd.f32 %v1261_v45, %v1231_v16  ;;  %v1193_v0 = vadd.f32 %v1192_v44, %v5288_v11  ;;  %v1234_v4 = vmul.f32 %v5304_v40, %v5304_v40  ;;  %v3934_v45 = vld [vmem:[#allocation8 + $0x78] sm:$0xff] }
 0x3b5   : > { %v1048_v44 = vadd.f32 %v1047_v19, %v4983_v5  ;;  %1441 = vmatpush.bf16.msra.mxu3 %v3934_v45 }
 0x3b6   : > { %v1263_v54 = vadd.f32 %v1262_v46, %v1232_v9  ;;  %v1194_v28 = vadd.f32 %v1193_v0, %v5294_v20  ;;  %v5319_v63 = vmax.f32 %v1124_v41, 0.0 }
 0x3b8   : > { %v1264_v35 = vadd.f32 %v1263_v54, %v1233_v33  ;;  %v1195_v2 = vadd.f32 %v1194_v28, %v5304_v40  ;;  %v3933_v54 = vld [vmem:[#allocation8 + $0x70] sm:$0xff] }
 0x3b9   : > { %1442 = vmatpush.bf16.msra.mxu3 %v3933_v54 }
 0x3ba   : > { %v1265_v9 = vadd.f32 %v1264_v35, %v1234_v4  ;;  %v1196_v41 = vadd.f32 %v1195_v2, %v5310_v48  ;;  %v3932_v35 = vld [vmem:[#allocation8 + $0x68] sm:$0xff] }
 0x3bb   : > { %v5224_v30 = vpop.f32.mrf.mxu2 }
 0x3bc   : > { %v1127_v25 = vadd.f32 %v5224_v30, %v1038_v56  ;;  %v1266_v33 = vadd.f32 %v1265_v9, %v1235_v21 }
 0x3bd   : > { %1443 = vmatpush.bf16.msra.mxu3 %v3932_v35 }
 0x3be   : > { %v5324_v30 = vmax.f32 %v1127_v25, 0.0  ;;  %v1197_v25 = vadd.f32 %v1196_v41, %v5319_v63 }
 0x3c0   : > { %v1237_v47 = vmul.f32 %v5324_v30, %v5324_v30  ;;  %v1198_v4 = vadd.f32 %v1197_v25, %v5324_v30 }
 0x3c3   : > { %v1128_v51 = vpop.f32.mrf.mxu2 }
 0x3c4   : > { %v1129_v16 = vadd.f32 %v1128_v51, %v1040_v7  ;;  %v1236_v51 = vmul.f32 %v5319_v63, %v5319_v63 }
 0x3c6   : > { %v5331_v46 = vmax.f32 %v1129_v16, 0.0  ;;  %v1267_v28 = vadd.f32 %v1266_v33, %v1236_v51 }
 0x3c8   : > { %v1238_v19 = vmul.f32 %v5331_v46, %v5331_v46  ;;  %v1268_v2 = vadd.f32 %v1267_v28, %v1237_v47  ;;  %v1199_v21 = vadd.f32 %v1198_v4, %v5331_v46  ;;  %v3930_v4 = vld [vmem:[#allocation8 + $0x58] sm:$0xff] }
 0x3cb   : > { %v1131_v43 = vpop.f32.mrf.mxu2 }
 0x3cc   : > { %v1132_v56 = vadd.f32 %v1131_v43, %v1043_v23 }
 0x3ce   : > { %v5336_v43 = vmax.f32 %v1132_v56, 0.0  ;;  %v1269_v56 = vadd.f32 %v1268_v2, %v1238_v19 }
 0x3d0   : > { %v1239_v45 = vmul.f32 %v5336_v43, %v5336_v43 }
 0x3d2   : > { %v1270_v33 = vadd.f32 %v1269_v56, %v1239_v45 }
 0x3d3   : > { %v1133_v58 = vpop.f32.mrf.mxu2 }
 0x3d4   : > { %v1134_v0 = vadd.f32 %v1133_v58, %v1045_v52  ;;  %v1049_v58 = vpop.f32.mrf.mxu1 }
 0x3d5   : > { %v1050_v41 = vadd.f32 %v1049_v58, %v4983_v5 }
 0x3d6   : > { %v5341_v16 = vmax.f32 %v1134_v0, 0.0  ;;  %v3931_v0 = vld [vmem:[#allocation8 + $0x60] sm:$0xff] }
 0x3d7   : > { %1444 = vmatpush.bf16.msra.mxu3 %v3931_v0 }
 0x3d8   : > { %v1240_v9 = vmul.f32 %v5341_v16, %v5341_v16 }
 0x3da   : > { %v1271_v47 = vadd.f32 %v1270_v33, %v1240_v9  ;;  %v3927_v33 = vld [vmem:[#allocation8 + $0x40] sm:$0xff] }
 0x3db   : > { %v1136_v7 = vpop.f32.mrf.mxu2  ;;  %1445 = vmatpush.bf16.msra.mxu3 %v3930_v4 }
 0x3dc   : > { %v1137_v23 = vadd.f32 %v1136_v7, %v1048_v44  ;;  %v1200_v44 = vadd.f32 %v1199_v21, %v5336_v43  ;;  %v3929_v21 = vld [vmem:[#allocation8 + $0x50] sm:$0xff] }
 0x3de   : > { %v5346_v52 = vmax.f32 %v1137_v23, 0.0  ;;  %v1201_v7 = vadd.f32 %v1200_v44, %v5341_v16 }
 0x3df   : > { %1446 = vmatpush.bf16.msra.mxu3 %v3929_v21 }
 0x3e0   : > { %v1241_v54 = vmul.f32 %v5346_v52, %v5346_v52  ;;  %v1202_v23 = vadd.f32 %v1201_v7, %v5346_v52 }
 0x3e2   : > { %v1272_v19 = vadd.f32 %v1271_v47, %v1241_v54 }
 0x3e3   : > { %v1138_v51 = vpop.f32.mrf.mxu2 }
 0x3e4   : > { %v1139_v25 = vadd.f32 %v1138_v51, %v1050_v41  ;;  %v3928_v41 = vld [vmem:[#allocation8 + $0x48] sm:$0xff] }
 0x3e5   : > { %1447 = vmatpush.bf16.msra.mxu3 %v3928_v41 }
 0x3e6   : > { %v5356_v28 = vmax.f32 %v1139_v25, 0.0 }
 0x3e8   : > { %v1203_v35 = vadd.f32 %v1202_v23, %v5356_v28  ;;  %v1242_v5 = vmul.f32 %v5356_v28, %v5356_v28 }
 0x3e9   : > { %1448 = vmatpush.bf16.msra.mxu3 %v3927_v33 }
 0x3ea   : > { %v1204_v58 = vrot.slane %v1203_v35, 4  ;;  %v1273_v2 = vadd.f32 %v1272_v19, %v1242_v5 }
 0x3ec   : > { %v1205_v45 = vadd.f32 %v1204_v58, %v1203_v35  ;;  %v1274_v56 = vrot.slane %v1273_v2, 4 }
 0x3ee   : > { %v1206_v44 = vrot.slane %v1205_v45, 2  ;;  %v1275_v9 = vadd.f32 %v1274_v56, %v1273_v2 }
 0x3f0   : > { %v1207_v51 = vadd.f32 %v1206_v44, %v1205_v45  ;;  %v1276_v0 = vrot.slane %v1275_v9, 2 }
 0x3f2   : > { %v1208_v7 = vrot.slane %v1207_v51, 1  ;;  %v1277_v54 = vadd.f32 %v1276_v0, %v1275_v9 }
 0x3f4   : > { %v1209_v25 = vadd.f32 %v1208_v7, %v1207_v51  ;;  %v1278_v47 = vrot.slane %v1277_v54, 1 }
 0x3f6   : > { %v5362_v23 = vmul.f32 %v1209_v25, %v4716_v1  ;;  %v1279_v4 = vadd.f32 %v1278_v47, %v1277_v54 }
 0x3f8   : > { %v1280_v19 = vmul.f32 %v1279_v4, %v4716_v1  ;;  %v1281_v35 = vmul.f32 %v5362_v23, %v5362_v23  ;;  %v1315_v5 = vsub.f32 %v5356_v28, %v5362_v23  ;;  %v1310_v58 = vsub.f32 %v5324_v30, %v5362_v23 }
 0x3f9   : > { %v1311_v2 = vsub.f32 %v5331_v46, %v5362_v23  ;;  %v1312_v21 = vsub.f32 %v5336_v43, %v5362_v23  ;;  %v1313_v56 = vsub.f32 %v5341_v16, %v5362_v23  ;;  %v1314_v44 = vsub.f32 %v5346_v52, %v5362_v23 }
 0x3fa   : > { %v1282_v45 = vsub.f32 %v1280_v19, %v1281_v35  ;;  %v1308_v25 = vsub.f32 %v5310_v48, %v5362_v23  ;;  %v1309_v47 = vsub.f32 %v5319_v63, %v5362_v23  ;;  %v1284_v19 = vsub.f32 %v5138_v39, %v5362_v23 }
 0x3fb   : > { %v1285_v35 = vsub.f32 %v5131_v22, %v5362_v23  ;;  %v1294_v48 = vsub.f32 %v5201_v53, %v5362_v23  ;;  %v1295_v63 = vsub.f32 %v5208_v24, %v5362_v23  ;;  %v1296_v39 = vsub.f32 %v5218_v29, %v5362_v23 }
 0x3fc   : > { %v1283_v9 = vmax.f32 %v1282_v45, 0.0  ;;  %v1292_v45 = vsub.f32 %v5185_v38, %v5362_v23  ;;  %v1297_v22 = vsub.f32 %v5227_v3, %v5362_v23  ;;  %v1298_v38 = vsub.f32 %v5234_v18, %v5362_v23 }
 0x3fd   : > { %v1299_v53 = vsub.f32 %v5241_v42, %v5362_v23  ;;  %v1300_v24 = vsub.f32 %v5248_v31, %v5362_v23  ;;  %v1302_v29 = vsub.f32 %v5262_v50, %v5362_v23  ;;  %v1303_v3 = vsub.f32 %v5271_v17, %v5362_v23 }
 0x3fe   : > { %v1316_v41 = vadd.f32 1e-05, %v1283_v9  ;;  %v1293_v9 = vsub.f32 %v5192_v36, %v5362_v23  ;;  %v1304_v18 = vsub.f32 %v5278_v32, %v5362_v23  ;;  %v1305_v31 = vsub.f32 %v5288_v11, %v5362_v23 }
 0x3ff   : > { %v1306_v50 = vsub.f32 %v5294_v20, %v5362_v23  ;;  %v1307_v17 = vsub.f32 %v5304_v40, %v5362_v23  ;;  %v1288_v28 = vsub.f32 %v5153_v61, %v5362_v23 }
 0x400   : > { %4054 = vrsqrt.f32 %v1316_v41  ;;  %vm1323_vm5 = vweird.f32 %v1316_v41 }
 0x406   : > { %v4055_v51 = vpop.eup %4054 }
 0x407   : > { %v1318_v0 = vmul.f32 %v4055_v51, %v1316_v41  ;;  %vm1324_vm4 = vweird.f32 %v4055_v51 }
 0x408   : > { %vm1325_vm6 = vmor %vm1323_vm5, %vm1324_vm4 }
 0x409   : > { %v1319_v33 = vmul.f32 %v4055_v51, %v1318_v0 }
 0x40b   : > { %v1320_v7 = vmul.f32 0.5, %v1319_v33 }
 0x40d   : > { %v1321_v54 = vsub.f32 1.5, %v1320_v7 }
 0x40f   : > { %v1322_v4 = vmul.f32 %v4055_v51, %v1321_v54 }
 0x411   : > { %v5395_v41 = vsel %vm1325_vm6, %v4055_v51, %v1322_v4  ;;  %v1301_v51 = vsub.f32 %v5255_v37, %v5362_v23 }
 0x412   : > { %v1327_v0 = vmul.f32 %v5395_v41, %v1284_v19  ;;  %v1328_v36 = vmul.f32 %v5395_v41, %v1285_v35  ;;  %v1335_v7 = vmul.f32 %v5395_v41, %v1292_v45  ;;  %v1336_v42 = vmul.f32 %v5395_v41, %v1293_v9 }
 0x413   : > { %v1337_v54 = vmul.f32 %v5395_v41, %v1294_v48  ;;  %v1338_v37 = vmul.f32 %v5395_v41, %v1295_v63  ;;  %v1339_v4 = vmul.f32 %v5395_v41, %v1296_v39  ;;  %v1340_v19 = vmul.f32 %v5395_v41, %v1297_v22 }
 0x414   : > { %v1359_v33 = vpack.c.bf16 %v1328_v36, %v1327_v0  ;;  %v1363_v32 = vpack.c.bf16 %v1336_v42, %v1335_v7  ;;  %v1341_v35 = vmul.f32 %v5395_v41, %v1298_v38  ;;  %v1342_v11 = vmul.f32 %v5395_v41, %v1299_v53 }
 0x415   : > { %v1364_v45 = vpack.c.bf16 %v1338_v37, %v1337_v54  ;;  %v1343_v9 = vmul.f32 %v5395_v41, %v1300_v24  ;;  %v1344_v48 = vmul.f32 %v5395_v41, %v1301_v51  ;;  %v1365_v63 = vpack.c.bf16 %v1340_v19, %v1339_v4  ;;  %v5486_v4 = vld [vmem:[#allocation10] sm:$0xff] }
 0x416   : > { %1449 = vmatmul.bf16.vlgmr.msra.gmra.mxu3 %v1359_v33  ;;  %v1345_v20 = vmul.f32 %v5395_v41, %v1302_v29  ;;  %v1346_v40 = vmul.f32 %v5395_v41, %v1303_v3  ;;  %v1347_v0 = vmul.f32 %v5395_v41, %v1304_v18  ;;  %v1366_v36 = vpack.c.bf16 %v1342_v11, %v1341_v35 }
 0x417   : > { %v1367_v39 = vpack.c.bf16 %v1344_v48, %v1343_v9  ;;  %v1348_v22 = vmul.f32 %v5395_v41, %v1305_v31  ;;  %v1349_v38 = vmul.f32 %v5395_v41, %v1306_v50  ;;  %v1350_v53 = vmul.f32 %v5395_v41, %v1307_v17 }
 0x418   : > { %v1368_v33 = vpack.c.bf16 %v1346_v40, %v1345_v20  ;;  %v1351_v24 = vmul.f32 %v5395_v41, %v1308_v25  ;;  %v1352_v51 = vmul.f32 %v5395_v41, %v1309_v47  ;;  %v1353_v29 = vmul.f32 %v5395_v41, %v1310_v58 }
 0x419   : > { %v1369_v7 = vpack.c.bf16 %v1348_v22, %v1347_v0  ;;  %v1354_v3 = vmul.f32 %v5395_v41, %v1311_v2  ;;  %v5453_v18 = vmul.f32 %v5395_v41, %v1312_v21  ;;  %v1370_v25 = vpack.c.bf16 %v1350_v53, %v1349_v38 }
 0x41a   : > { %v1371_v42 = vpack.c.bf16 %v1352_v51, %v1351_v24  ;;  %v1356_v30 = vmul.f32 %v5395_v41, %v1313_v56  ;;  %v1357_v46 = vmul.f32 %v5395_v41, %v1314_v44  ;;  %v1358_v43 = vmul.f32 %v5395_v41, %v1315_v5 }
 0x41b   : > { %v1372_v58 = vpack.c.bf16 %v1354_v3, %v1353_v29  ;;  %v1286_v2 = vsub.f32 %v5141_v27, %v5362_v23  ;;  %v1287_v21 = vsub.f32 %v5146_v10, %v5362_v23  ;;  %v1289_v5 = vsub.f32 %v5160_v8, %v5362_v23 }
 0x41c   : > { %v1373_v16 = vpack.c.bf16 %v1356_v30, %v5453_v18  ;;  %v1374_v56 = vpack.c.bf16 %v1358_v43, %v1357_v46  ;;  %v1331_v27 = vmul.f32 %v5395_v41, %v1288_v28  ;;  %v1290_v54 = vsub.f32 %v5168_v49, %v5362_v23 }
 0x41d   : > { %v1329_v47 = vmul.f32 %v5395_v41, %v1286_v2  ;;  %v1330_v52 = vmul.f32 %v5395_v41, %v1287_v21  ;;  %v1332_v31 = vmul.f32 %v5395_v41, %v1289_v5  ;;  %v1291_v37 = vsub.f32 %v5178_v55, %v5362_v23 }
 0x41e   : > { %v1333_v50 = vmul.f32 %v5395_v41, %v1290_v54  ;;  %v5489_v19 = vperm.slane %v5486_v4, 1 }
 0x41f   : > { %v1360_v44 = vpack.c.bf16 %v1330_v52, %v1329_v47  ;;  %v1361_v10 = vpack.c.bf16 %v1332_v31, %v1331_v27  ;;  %v1334_v17 = vmul.f32 %v5395_v41, %v1291_v37 }
 0x421   : > { %v1362_v61 = vpack.c.bf16 %v1334_v17, %v1333_v50 }
 0x426   : > { %1454 = vmatmul.bf16.gmra.mxu3 %v1360_v44 }
 0x436   : > { %1459 = vmatmul.bf16.gmra.mxu3 %v1361_v10 }
 0x446   : > { %1464 = vmatmul.bf16.gmra.mxu3 %v1362_v61 }
 0x456   : > { %1469 = vmatmul.bf16.gmra.mxu3 %v1363_v32 }
 0x466   : > { %1474 = vmatmul.bf16.gmra.mxu3 %v1364_v45 }
 0x476   : > { %1479 = vmatmul.bf16.gmra.mxu3 %v1365_v63 }
 0x486   : > { %1484 = vmatmul.bf16.gmra.mxu3 %v1366_v36 }
 0x496   : > { %1489 = vmatmul.bf16.gmra.mxu3 %v1367_v39 }
 0x499   : > { %v1450_v8 = vpop.f32.mrf.mxu3 }
 0x49a   : > { %v1451_v55 = vadd.f32 %v1450_v8, %v5489_v19 }
 0x4a1   : > { %v1452_v49 = vpop.f32.mrf.mxu3 }
 0x4a2   : > { %v1453_v23 = vadd.f32 %v1452_v49, %v5489_v19 }
 0x4a4   : > { %v1530_v35 = vpack.c.bf16 %v1453_v23, %v1451_v55 }
 0x4a6   : > { %1494 = vmatmul.bf16.gmra.mxu3 %v1368_v33 }
 0x4a9   : > { %v1455_v41 = vpop.f32.mrf.mxu3 }
 0x4aa   : > { %v1456_v32 = vadd.f32 %v1455_v41, %v5489_v19 }
 0x4b1   : > { %v1457_v11 = vpop.f32.mrf.mxu3 }
 0x4b2   : > { %v1458_v45 = vadd.f32 %v1457_v11, %v5489_v19 }
 0x4b4   : > { %v1531_v9 = vpack.c.bf16 %v1458_v45, %v1456_v32 }
 0x4b6   : > { %1499 = vmatmul.bf16.gmra.mxu3 %v1369_v7 }
 0x4b9   : > { %v1460_v48 = vpop.f32.mrf.mxu3 }
 0x4ba   : > { %v1461_v20 = vadd.f32 %v1460_v48, %v5489_v19 }
 0x4c1   : > { %v1462_v63 = vpop.f32.mrf.mxu3 }
 0x4c2   : > { %v1463_v40 = vadd.f32 %v1462_v63, %v5489_v19 }
 0x4c4   : > { %v1532_v0 = vpack.c.bf16 %v1463_v40, %v1461_v20 }
 0x4c6   : > { %1504 = vmatmul.bf16.gmra.mxu3 %v1370_v25 }
 0x4c9   : > { %v1465_v36 = vpop.f32.mrf.mxu3 }
 0x4ca   : > { %v1466_v22 = vadd.f32 %v1465_v36, %v5489_v19 }
 0x4d1   : > { %v1467_v39 = vpop.f32.mrf.mxu3 }
 0x4d2   : > { %v1468_v38 = vadd.f32 %v1467_v39, %v5489_v19 }
 0x4d4   : > { %v1533_v33 = vpack.c.bf16 %v1468_v38, %v1466_v22 }
 0x4d6   : > { %1509 = vmatmul.bf16.gmra.mxu3 %v1371_v42 }
 0x4d9   : > { %v1470_v53 = vpop.f32.mrf.mxu3 }
 0x4da   : > { %v1471_v44 = vadd.f32 %v1470_v53, %v5489_v19 }
 0x4e1   : > { %v1472_v24 = vpop.f32.mrf.mxu3 }
 0x4e6   : > { %1514 = vmatmul.bf16.gmra.mxu3 %v1372_v58 }
 0x4e9   : > { %v1475_v51 = vpop.f32.mrf.mxu3 }
 0x4f1   : > { %v1477_v7 = vpop.f32.mrf.mxu3 }
 0x4f2   : > { %v1478_v58 = vadd.f32 %v1477_v7, %v5489_v19 }
 0x4f6   : > { %1519 = vmatmul.bf16.gmra.mxu3 %v1373_v16  ;;  %v1476_v16 = vadd.f32 %v1475_v51, %v5489_v19 }
 0x4f8   : > { %v1535_v52 = vpack.c.bf16 %v1478_v58, %v1476_v16  ;;  %v7123_v58 = vld [vmem:[#allocation20_spill] sm:$0xff] }
 0x4f9   : > { %v1480_v29 = vpop.f32.mrf.mxu3 }
 0x4fa   : > { %v1481_v42 = vadd.f32 %v1480_v29, %v5489_v19 }
 0x501   : > { %v1482_v3 = vpop.f32.mrf.mxu3 }
 0x502   : > { %v1483_v43 = vadd.f32 %v1482_v3, %v5489_v19 }
 0x504   : > { %v1536_v21 = vpack.c.bf16 %v1483_v43, %v1481_v42  ;;  %v7120_v43 = vld [vmem:[#allocation24_spill] sm:$0xff]  ;;  %v7122_v42 = vld [vmem:[#allocation26_spill] sm:$0xff] }
 0x506   : > { %1524 = vmatmul.bf16.gmra.mxu3 %v1374_v56  ;;  %v1473_v56 = vadd.f32 %v1472_v24, %v5489_v19 }
 0x508   : > { %v1534_v28 = vpack.c.bf16 %v1473_v56, %v1471_v44  ;;  %v7128_v44 = vld [vmem:[#allocation23_spill] sm:$0xff] }
 0x509   : > { %v1485_v18 = vpop.f32.mrf.mxu3 }
 0x50a   : > { %v1486_v25 = vadd.f32 %v1485_v18, %v5489_v19 }
 0x511   : > { %v1487_v30 = vpop.f32.mrf.mxu3 }
 0x512   : > { %v1488_v46 = vadd.f32 %v1487_v30, %v5489_v19 }
 0x514   : > { %v1537_v2 = vpack.c.bf16 %v1488_v46, %v1486_v25 }
 0x516   : > { %1547 = vmatpush.bf16.msrb.mxu0 %v1537_v2  ;;  %v7121_v2 = vld [vmem:[#allocation19_spill] sm:$0xff] }
 0x519   : > { %v5504_v47 = vpop.f32.mrf.mxu3 }
 0x51a   : > { %1548 = vmatpush.bf16.msrb.mxu0 %v1536_v21  ;;  %v1491_v25 = vadd.f32 %v5504_v47, %v5489_v19  ;;  %v7124_v21 = vld [vmem:[#allocation28_spill] sm:$0xff]  ;;  %v7126_v47 = vld [vmem:[#allocation22_spill] sm:$0xff] }
 0x51e   : > { %1549 = vmatpush.bf16.msrb.mxu0 %v1535_v52  ;;  %v7127_v52 = vld [vmem:[#allocation30_spill] sm:$0xff] }
 0x521   : > { %v1492_v5 = vpop.f32.mrf.mxu3 }
 0x522   : > { %1550 = vmatpush.bf16.msrb.mxu0 %v1534_v28  ;;  %v1493_v18 = vadd.f32 %v1492_v5, %v5489_v19 }
 0x524   : > { %v1538_v46 = vpack.c.bf16 %v1493_v18, %v1491_v25  ;;  %v7136_v25 = vld [vmem:[#allocation33_spill] sm:$0xff] }
 0x526   : > { %1551 = vmatpush.bf16.msrb.mxu0 %v1533_v33 }
 0x529   : > { %v1495_v27 = vpop.f32.mrf.mxu3 }
 0x52a   : > { %1552 = vmatpush.bf16.msrb.mxu0 %v1532_v0  ;;  %v1496_v3 = vadd.f32 %v1495_v27, %v5489_v19  ;;  %v7129_v27 = vld [vmem:[#allocation32_spill] sm:$0xff] }
 0x52e   : > { %1553 = vmatpush.bf16.msrb.mxu0 %v1531_v9 }
 0x531   : > { %v1497_v31 = vpop.f32.mrf.mxu3 }
 0x532   : > { %1554 = vmatpush.bf16.msrb.mxu0 %v1530_v35  ;;  %v1498_v7 = vadd.f32 %v1497_v31, %v5489_v19  ;;  %v7130_v31 = vld [vmem:[#allocation25_spill] sm:$0xff] }
 0x534   : > { %v1539_v30 = vpack.c.bf16 %v1498_v7, %v1496_v3 }
 0x535   : > { %1555 = vmatmul.bf16.vlgmr.msrb.gmra.mxu0 %v4871_v62 }
 0x539   : > { %v1500_v10 = vpop.f32.mrf.mxu3 }
 0x53a   : > { %v1501_v51 = vadd.f32 %v1500_v10, %v5489_v19 }
 0x541   : > { %v1502_v54 = vpop.f32.mrf.mxu3 }
 0x542   : > { %v1503_v53 = vadd.f32 %v1502_v54, %v5489_v19  ;;  %v5549_v54 = vperm.slane %v5486_v4, 5 }
 0x544   : > { %v1540_v29 = vpack.c.bf16 %v1503_v53, %v1501_v51 }
 0x545   : > { %1560 = vmatmul.bf16.gmra.mxu0 %v4883_v12 }
 0x549   : > { %v1505_v37 = vpop.f32.mrf.mxu3 }
 0x54a   : > { %v1506_v33 = vadd.f32 %v1505_v37, %v5489_v19 }
 0x551   : > { %v1507_v50 = vpop.f32.mrf.mxu3 }
 0x552   : > { %v1508_v22 = vadd.f32 %v1507_v50, %v5489_v19 }
 0x554   : > { %v1541_v24 = vpack.c.bf16 %v1508_v22, %v1506_v33  ;;  %v7135_v33 = vld [vmem:[#allocation31_spill] sm:$0xff] }
 0x555   : > { %1565 = vmatmul.bf16.gmra.mxu0 %v4896_v14 }
 0x559   : > { %v1510_v17 = vpop.f32.mrf.mxu3 }
 0x55a   : > { %v1511_v39 = vadd.f32 %v1510_v17, %v5489_v19  ;;  %v7131_v17 = vld [vmem:[#allocation34_spill] sm:$0xff] }
 0x561   : > { %v1512_v61 = vpop.f32.mrf.mxu3 }
 0x562   : > { %v1513_v0 = vadd.f32 %v1512_v61, %v5489_v19 }
 0x564   : > { %v1542_v38 = vpack.c.bf16 %v1513_v0, %v1511_v39 }
 0x565   : > { %1570 = vmatmul.bf16.gmra.mxu0 %v4908_v60 }
 0x569   : > { %v1515_v8 = vpop.f32.mrf.mxu3 }
 0x56a   : > { %v1516_v40 = vadd.f32 %v1515_v8, %v5489_v19 }
 0x571   : > { %v1517_v49 = vpop.f32.mrf.mxu3 }
 0x572   : > { %v1518_v63 = vadd.f32 %v1517_v49, %v5489_v19  ;;  %v7132_v49 = vld [vmem:[#allocation27_spill] sm:$0xff] }
 0x574   : > { %v1543_v36 = vpack.c.bf16 %v1518_v63, %v1516_v40 }
 0x575   : > { %1575 = vmatmul.bf16.gmra.mxu0 %v4918_v6 }
 0x579   : > { %v1520_v55 = vpop.f32.mrf.mxu3 }
 0x57a   : > { %v1521_v48 = vadd.f32 %v1520_v55, %v5489_v19 }
 0x581   : > { %v1522_v23 = vpop.f32.mrf.mxu3 }
 0x582   : > { %v1523_v45 = vadd.f32 %v1522_v23, %v5489_v19 }
 0x584   : > { %v1544_v20 = vpack.c.bf16 %v1523_v45, %v1521_v48  ;;  %v7134_v48 = vld [vmem:[#allocation29_spill] sm:$0xff] }
 0x585   : > { %1580 = vmatmul.bf16.gmra.mxu0 %v4928_v15 }
 0x589   : > { %v1525_v35 = vpop.f32.mrf.mxu3 }
 0x58a   : > { %v1526_v11 = vadd.f32 %v1525_v35, %v5489_v19 }
 0x591   : > { %v1527_v41 = vpop.f32.mrf.mxu3 }
 0x592   : > { %v1528_v32 = vadd.f32 %v1527_v41, %v5489_v19  ;;  %v7125_v19 = vld [vmem:[#allocation21_spill] sm:$0xff] }
 0x594   : > { %v1545_v9 = vpack.c.bf16 %v1528_v32, %v1526_v11  ;;  %v7133_v32 = vld [vmem:[#allocation36_spill] sm:$0xff] }
 0x595   : > { %1585 = vmatmul.bf16.gmra.mxu0 %v4938_v34 }
 0x596   : > { %1636 = vmatpush.bf16.msrb.mxu1 %v1545_v9 }
 0x59a   : > { %1637 = vmatpush.bf16.msrb.mxu1 %v1544_v20 }
 0x59e   : > { %1638 = vmatpush.bf16.msrb.mxu1 %v1543_v36 }
 0x5a2   : > { %1639 = vmatpush.bf16.msrb.mxu1 %v1542_v38 }
 0x5a5   : > { %1590 = vmatmul.bf16.gmra.mxu0 %v4948_v59 }
 0x5a6   : > { %1640 = vmatpush.bf16.msrb.mxu1 %v1541_v24 }
 0x5aa   : > { %1641 = vmatpush.bf16.msrb.mxu1 %v1540_v29 }
 0x5ae   : > { %1642 = vmatpush.bf16.msrb.mxu1 %v1539_v30 }
 0x5b2   : > { %1643 = vmatpush.bf16.msrb.mxu1 %v1538_v46  ;;  %v1556_v16 = vpop.f32.mrf.mxu0 }
 0x5b3   : > { %v1557_v37 = vadd.f32 %v1556_v16, %v5549_v54 }
 0x5b5   : > { %1644 = vmatmul.bf16.vlgmr.msrb.gmra.mxu1 %v4902_v13  ;;  %1595 = vmatmul.bf16.gmra.mxu0 %v4958_v26 }
 0x5ba   : > { %v1558_v56 = vpop.f32.mrf.mxu0 }
 0x5bb   : > { %v1559_v55 = vadd.f32 %v1558_v56, %v5549_v54 }
 0x5c2   : > { %v1561_v28 = vpop.f32.mrf.mxu0 }
 0x5c3   : > { %v1562_v11 = vadd.f32 %v1561_v28, %v5549_v54 }
 0x5c5   : > { %1649 = vmatmul.bf16.gmra.mxu1 %v4912_v57  ;;  %1600 = vmatmul.bf16.gmra.mxu0 %v7120_v43 }
 0x5ca   : > { %v1563_v5 = vpop.f32.mrf.mxu0 }
 0x5cb   : > { %v1564_v63 = vadd.f32 %v1563_v5, %v5549_v54 }
 0x5d2   : > { %v1566_v10 = vpop.f32.mrf.mxu0 }
 0x5d3   : > { %v1567_v36 = vadd.f32 %v1566_v10, %v5549_v54 }
 0x5d5   : > { %1654 = vmatmul.bf16.gmra.mxu1 %v7121_v2  ;;  %1605 = vmatmul.bf16.gmra.mxu0 %v7122_v42 }
 0x5da   : > { %v1568_v50 = vpop.f32.mrf.mxu0 }
 0x5db   : > { %v1569_v53 = vadd.f32 %v1568_v50, %v5549_v54 }
 0x5e2   : > { %v1571_v23 = vpop.f32.mrf.mxu0 }
 0x5e3   : > { %v1572_v29 = vadd.f32 %v1571_v23, %v5549_v54 }
 0x5e5   : > { %1659 = vmatmul.bf16.gmra.mxu1 %v7123_v58  ;;  %1610 = vmatmul.bf16.gmra.mxu0 %v7124_v21 }
 0x5ea   : > { %v1573_v4 = vpop.f32.mrf.mxu0 }
 0x5eb   : > { %v1574_v46 = vadd.f32 %v1573_v4, %v5549_v54 }
 0x5f2   : > { %v1576_v20 = vpop.f32.mrf.mxu0 }
 0x5f3   : > { %v1577_v5 = vadd.f32 %v1576_v20, %v5549_v54 }
 0x5f5   : > { %1664 = vmatmul.bf16.gmra.mxu1 %v7125_v19  ;;  %1615 = vmatmul.bf16.gmra.mxu0 %v7127_v52 }
 0x5fa   : > { %v5568_v39 = vpop.f32.mrf.mxu0 }
 0x602   : > { %v1581_v24 = vpop.f32.mrf.mxu0 }
 0x605   : > { %1669 = vmatmul.bf16.gmra.mxu1 %v7126_v47  ;;  %1620 = vmatmul.bf16.gmra.mxu0 %v7129_v27 }
 0x60a   : > { %v5577_v3 = vpop.f32.mrf.mxu0 }
 0x612   : > { %v1586_v16 = vpop.f32.mrf.mxu0 }
 0x615   : > { %1674 = vmatmul.bf16.gmra.mxu1 %v7128_v44  ;;  %1625 = vmatmul.bf16.gmra.mxu0 %v7131_v17 }
 0x625   : > { %1679 = vmatmul.bf16.gmra.mxu1 %v7130_v31  ;;  %1630 = vmatmul.bf16.gmra.mxu0 %v7133_v32 }
 0x632   : > { %v1645_v61 = vpop.f32.mrf.mxu1 }
 0x633   : > { %v5553_v8 = vadd.f32 %v1645_v61, %v1557_v37  ;;  %v5586_v37 = vpop.f32.mrf.mxu0  ;;  %v7137_v61 = vld [vmem:[#allocation35_spill] sm:$0xff] }
 0x635   : > { %1684 = vmatmul.bf16.gmra.mxu1 %v7132_v49 }
 0x63a   : > { %v1647_v35 = vpop.f32.mrf.mxu1 }
 0x63b   : > { %v5557_v41 = vadd.f32 %v1647_v35, %v1559_v55  ;;  %v1591_v23 = vpop.f32.mrf.mxu0  ;;  %v1582_v35 = vadd.f32 %v1581_v24, %v5549_v54 }
 0x642   : > { %v1650_v45 = vpop.f32.mrf.mxu1 }
 0x643   : > { %v5561_v9 = vadd.f32 %v1650_v45, %v1562_v11  ;;  %v7138_v45 = vld [vmem:[#allocation37_spill] sm:$0xff] }
 0x645   : > { %1689 = vmatmul.bf16.gmra.mxu1 %v7134_v48 }
 0x64a   : > { %v1652_v40 = vpop.f32.mrf.mxu1 }
 0x64b   : > { %v5565_v0 = vadd.f32 %v1652_v40, %v1564_v63  ;;  %v5597_v63 = vpop.f32.mrf.mxu0  ;;  %v1587_v40 = vadd.f32 %v1586_v16, %v5549_v54 }
 0x64d   : > { %v5658_v17 = vmax.f32 %v5565_v0, 0.0 }
 0x64f   : > { %v1798_v44 = vmul.f32 %v5658_v17, %v5658_v17 }
 0x652   : > { %v1655_v22 = vpop.f32.mrf.mxu1 }
 0x653   : > { %v5570_v38 = vadd.f32 %v1655_v22, %v1567_v36  ;;  %v1596_v36 = vpop.f32.mrf.mxu0 }
 0x655   : > { %1694 = vmatmul.bf16.gmra.mxu1 %v7135_v33  ;;  %v5665_v27 = vmax.f32 %v5570_v38, 0.0 }
 0x657   : > { %v1799_v21 = vmul.f32 %v5665_v27, %v5665_v27 }
 0x65a   : > { %v1657_v51 = vpop.f32.mrf.mxu1 }
 0x65b   : > { %v5574_v7 = vadd.f32 %v1657_v51, %v1569_v53  ;;  %v7139_v51 = vld [vmem:[#allocation38_spill] sm:$0xff]  ;;  %v5607_v24 = vpop.f32.mrf.mxu0 }
 0x65d   : > { %v5672_v52 = vmax.f32 %v5574_v7, 0.0 }
 0x65f   : > { %v1800_v42 = vmul.f32 %v5672_v52, %v5672_v52 }
 0x662   : > { %v1660_v18 = vpop.f32.mrf.mxu1 }
 0x663   : > { %v5579_v30 = vadd.f32 %v1660_v18, %v1572_v29  ;;  %v1592_v18 = vadd.f32 %v1591_v23, %v5549_v54 }
 0x665   : > { %1699 = vmatmul.bf16.gmra.mxu1 %v7136_v25  ;;  %v5680_v38 = vmax.f32 %v5579_v30, 0.0 }
 0x667   : > { %v1801_v2 = vmul.f32 %v5680_v38, %v5680_v38 }
 0x66a   : > { %v1662_v56 = vpop.f32.mrf.mxu1 }
 0x66b   : > { %v5583_v28 = vadd.f32 %v1662_v56, %v1574_v46 }
 0x672   : > { %v1665_v10 = vpop.f32.mrf.mxu1 }
 0x673   : > { %v5588_v50 = vadd.f32 %v1665_v10, %v1577_v5  ;;  %v1601_v5 = vpop.f32.mrf.mxu0  ;;  %v7140_v10 = vld [vmem:[#allocation39_spill] sm:$0xff] }
 0x674   : > { %v1602_v23 = vadd.f32 %v1601_v5, %v5549_v54 }
 0x675   : > { %1704 = vmatmul.bf16.gmra.mxu1 %v7137_v61 }
 0x67a   : > { %v5591_v55 = vpop.f32.mrf.mxu1 }
 0x67b   : > { %v5615_v16 = vpop.f32.mrf.mxu0 }
 0x682   : > { %v1670_v11 = vpop.f32.mrf.mxu1 }
 0x683   : > { %v5594_v4 = vadd.f32 %v1670_v11, %v1582_v35  ;;  %v1597_v11 = vadd.f32 %v1596_v36, %v5549_v54 }
 0x685   : > { %1709 = vmatmul.bf16.gmra.mxu1 %v7138_v45 }
 0x68a   : > { %v5599_v20 = vpop.f32.mrf.mxu1 }
 0x692   : > { %v1675_v22 = vpop.f32.mrf.mxu1 }
 0x693   : > { %v5602_v53 = vadd.f32 %v1675_v22, %v1587_v40 }
 0x695   : > { %1714 = vmatmul.bf16.gmra.mxu1 %v7139_v51  ;;  %v1606_v51 = vpop.f32.mrf.mxu0 }
 0x696   : > { %v1607_v33 = vadd.f32 %v1606_v51, %v5549_v54  ;;  %v5650_v51 = vmax.f32 %v5553_v8, 0.0 }
 0x69a   : > { %v5605_v29 = vpop.f32.mrf.mxu1 }
 0x6a2   : > { %v1680_v46 = vpop.f32.mrf.mxu1 }
 0x6a3   : > { %v5610_v56 = vadd.f32 %v1680_v46, %v1592_v18  ;;  %v5623_v18 = vpop.f32.mrf.mxu0 }
 0x6a5   : > { %1719 = vmatmul.bf16.gmra.mxu1 %v7140_v10 }
 0x6aa   : > { %v5613_v35 = vpop.f32.mrf.mxu1 }
 0x6ab   : > { %v5629_v25 = vpop.f32.mrf.mxu0 }
 0x6b2   : > { %v1685_v40 = vpop.f32.mrf.mxu1 }
 0x6b3   : > { %v5618_v22 = vadd.f32 %v1685_v40, %v1597_v11  ;;  %v5634_v11 = vpop.f32.mrf.mxu0 }
 0x6ba   : > { %v5620_v45 = vpop.f32.mrf.mxu1 }
 0x6bb   : > { %v5638_v32 = vpop.f32.mrf.mxu0 }
 0x6c2   : > { %v1690_v61 = vpop.f32.mrf.mxu1 }
 0x6c3   : > { %v5625_v46 = vadd.f32 %v1690_v61, %v1602_v23  ;;  %v5643_v61 = vmax.f32 %v5557_v41, 0.0  ;;  %v5647_v49 = vpop.f32.mrf.mxu0  ;;  %v1795_v41 = vmul.f32 %v5650_v51, %v5650_v51 }
 0x6c5   : > { %v1757_v8 = vadd.f32 %v5643_v61, %v5650_v51 }
 0x6ca   : > { %v5627_v10 = vpop.f32.mrf.mxu1 }
 0x6d2   : > { %v1695_v36 = vpop.f32.mrf.mxu1 }
 0x6d3   : > { %v5632_v48 = vadd.f32 %v1695_v36, %v1607_v33  ;;  %v5653_v33 = vmax.f32 %v5561_v9, 0.0  ;;  %v1796_v36 = vmul.f32 %v5643_v61, %v5643_v61 }
 0x6d5   : > { %v1797_v31 = vmul.f32 %v5653_v33, %v5653_v33  ;;  %v1827_v9 = vadd.f32 %v1796_v36, %v1795_v41  ;;  %v1758_v47 = vadd.f32 %v1757_v8, %v5653_v33  ;;  %v1579_v36 = vadd.f32 %v5568_v39, %v5549_v54  ;;  %v5684_v41 = vpop.f32.mrf.mxu0 }
 0x6d6   : > { %v5690_v8 = vmax.f32 %v5583_v28, 0.0  ;;  %v5697_v39 = vmax.f32 %v5588_v50, 0.0 }
 0x6d7   : > { %v1828_v19 = vadd.f32 %v1827_v9, %v1797_v31  ;;  %v1759_v58 = vadd.f32 %v1758_v47, %v5658_v17  ;;  %v1668_v31 = vadd.f32 %v5591_v55, %v1579_v36 }
 0x6d8   : > { %v1802_v28 = vmul.f32 %v5690_v8, %v5690_v8  ;;  %v1803_v50 = vmul.f32 %v5697_v39, %v5697_v39 }
 0x6d9   : > { %v1829_v7 = vadd.f32 %v1828_v19, %v1798_v44  ;;  %v1760_v9 = vadd.f32 %v1759_v58, %v5665_v27  ;;  %v1584_v19 = vadd.f32 %v5577_v3, %v5549_v54  ;;  %v5704_v43 = vmax.f32 %v1668_v31, 0.0 }
 0x6da   : > { %v5636_v40 = vpop.f32.mrf.mxu1  ;;  %v5713_v3 = vmax.f32 %v5594_v4, 0.0 }
 0x6db   : > { %v1830_v30 = vadd.f32 %v1829_v7, %v1799_v21  ;;  %v1761_v47 = vadd.f32 %v1760_v9, %v5672_v52  ;;  %v1673_v58 = vadd.f32 %v5599_v20, %v1584_v19  ;;  %v1589_v7 = vadd.f32 %v5586_v37, %v5549_v54 }
 0x6dc   : > { %v1804_v20 = vmul.f32 %v5704_v43, %v5704_v43  ;;  %v1805_v4 = vmul.f32 %v5713_v3, %v5713_v3  ;;  %v5730_v37 = vmax.f32 %v5602_v53, 0.0 }
 0x6dd   : > { %v1831_v44 = vadd.f32 %v1830_v30, %v1800_v42  ;;  %v1762_v55 = vadd.f32 %v1761_v47, %v5680_v38  ;;  %v5720_v9 = vmax.f32 %v1673_v58, 0.0  ;;  %v5722_v30 = vpop.f32.mrf.mxu0  ;;  %v1678_v19 = vadd.f32 %v5605_v29, %v1589_v7 }
 0x6de   : > { %v1807_v53 = vmul.f32 %v5730_v37, %v5730_v37 }
 0x6df   : > { %v1832_v36 = vadd.f32 %v1831_v44, %v1801_v2  ;;  %v1763_v42 = vadd.f32 %v1762_v55, %v5690_v8  ;;  %v1806_v55 = vmul.f32 %v5720_v9, %v5720_v9 }
 0x6e1   : > { %v1833_v31 = vadd.f32 %v1832_v36, %v1802_v28  ;;  %v1764_v2 = vadd.f32 %v1763_v42, %v5697_v39  ;;  %v1594_v28 = vadd.f32 %v5597_v63, %v5549_v54  ;;  %v5746_v63 = vmax.f32 %v5610_v56, 0.0 }
 0x6e2   : > { %v5640_v5 = vpop.f32.mrf.mxu1 }
 0x6e3   : > { %v1834_v47 = vadd.f32 %v1833_v31, %v1803_v50  ;;  %v1765_v44 = vadd.f32 %v1764_v2, %v5704_v43  ;;  %v5739_v50 = vmax.f32 %v1678_v19, 0.0  ;;  %v1683_v42 = vadd.f32 %v5613_v35, %v1594_v28 }
 0x6e4   : > { %v1809_v56 = vmul.f32 %v5746_v63, %v5746_v63 }
 0x6e5   : > { %v1835_v58 = vadd.f32 %v1834_v47, %v1804_v20  ;;  %v1766_v29 = vadd.f32 %v1765_v44, %v5713_v3  ;;  %v1599_v20 = vadd.f32 %v5607_v24, %v5549_v54  ;;  %v1808_v19 = vmul.f32 %v5739_v50, %v5739_v50 }
 0x6e6   : > { %v5753_v44 = vmax.f32 %v1683_v42, 0.0  ;;  %v1604_v24 = vadd.f32 %v5615_v16, %v5549_v54  ;;  %v1609_v16 = vadd.f32 %v5623_v18, %v5549_v54  ;;  %v5790_v18 = vmax.f32 %v5632_v48, 0.0 }
 0x6e7   : > { %v1836_v7 = vadd.f32 %v1835_v58, %v1805_v4  ;;  %v1767_v31 = vadd.f32 %v1766_v29, %v5720_v9  ;;  %v1688_v35 = vadd.f32 %v5620_v45, %v1599_v20  ;;  %v1626_v4 = vpop.f32.mrf.mxu0  ;;  %v5760_v29 = vmax.f32 %v5618_v22, 0.0 }
 0x6e8   : > { %v1810_v45 = vmul.f32 %v5753_v44, %v5753_v44 }
 0x6e9   : > { %v1837_v2 = vadd.f32 %v1836_v7, %v1806_v55  ;;  %v1768_v47 = vadd.f32 %v1767_v31, %v5730_v37  ;;  %v5767_v31 = vmax.f32 %v1688_v35, 0.0  ;;  %v1811_v22 = vmul.f32 %v5760_v29, %v5760_v29 }
 0x6ea   : > { %v5645_v23 = vpop.f32.mrf.mxu1 }
 0x6eb   : > { %v1838_v28 = vadd.f32 %v1837_v2, %v1807_v53  ;;  %v1769_v58 = vadd.f32 %v1768_v47, %v5739_v50  ;;  %v1693_v53 = vadd.f32 %v5627_v10, %v1604_v24  ;;  %v5774_v47 = vmax.f32 %v5625_v46, 0.0 }
 0x6ec   : > { %v1812_v10 = vmul.f32 %v5767_v31, %v5767_v31 }
 0x6ed   : > { %v1839_v7 = vadd.f32 %v1838_v28, %v1808_v19  ;;  %v1770_v42 = vadd.f32 %v1769_v58, %v5746_v63  ;;  %v1612_v19 = vadd.f32 %v5629_v25, %v5549_v54  ;;  %v5783_v58 = vmax.f32 %v1693_v53, 0.0 }
 0x6ee   : > { %v1614_v25 = vadd.f32 %v5634_v11, %v5549_v54 }
 0x6ef   : > { %v1840_v20 = vadd.f32 %v1839_v7, %v1809_v56  ;;  %v1771_v2 = vadd.f32 %v1770_v42, %v5753_v44  ;;  %v1698_v56 = vadd.f32 %v5636_v40, %v1609_v16  ;;  %v1813_v7 = vmul.f32 %v5774_v47, %v5774_v47  ;;  %v1628_v53 = vpop.f32.mrf.mxu0 }
 0x6f0   : > { %v1701_v42 = vadd.f32 %v5640_v5, %v1612_v19  ;;  %v1703_v48 = vadd.f32 %v5645_v23, %v1614_v25  ;;  %v1815_v5 = vmul.f32 %v5790_v18, %v5790_v18 }
 0x6f1   : > { %v1841_v28 = vadd.f32 %v1840_v20, %v1810_v45  ;;  %v1772_v35 = vadd.f32 %v1771_v2, %v5760_v29  ;;  %v1617_v45 = vadd.f32 %v5638_v32, %v5549_v54  ;;  %v5800_v16 = vmax.f32 %v1698_v56, 0.0 }
 0x6f2   : > { %v5674_v0 = vpop.f32.mrf.mxu1  ;;  %v5806_v19 = vmax.f32 %v1701_v42, 0.0 }
 0x6f3   : > { %v1842_v24 = vadd.f32 %v1841_v28, %v1811_v22  ;;  %v1773_v46 = vadd.f32 %v1772_v35, %v5767_v31  ;;  %v1814_v22 = vmul.f32 %v5783_v58, %v5783_v58  ;;  %v1706_v32 = vadd.f32 %v5674_v0, %v1617_v45 }
 0x6f4   : > { %v1619_v35 = vadd.f32 %v5647_v49, %v5549_v54  ;;  %v1816_v23 = vmul.f32 %v5800_v16, %v5800_v16  ;;  %v1817_v0 = vmul.f32 %v5806_v19, %v5806_v19 }
 0x6f5   : > { %v1843_v40 = vadd.f32 %v1842_v24, %v1812_v10  ;;  %v1774_v2 = vadd.f32 %v1773_v46, %v5774_v47  ;;  %v1622_v10 = vadd.f32 %v5684_v41, %v5549_v54  ;;  %v5816_v46 = vmax.f32 %v1703_v48, 0.0 }
 0x6f6   : > { %v5822_v49 = vmax.f32 %v1706_v32, 0.0  ;;  %v1624_v41 = vadd.f32 %v5722_v30, %v5549_v54 }
 0x6f7   : > { %v1844_v28 = vadd.f32 %v1843_v40, %v1813_v7  ;;  %v1775_v11 = vadd.f32 %v1774_v2, %v5783_v58  ;;  %v1627_v2 = vadd.f32 %v1626_v4, %v5549_v54 }
 0x6f8   : > { %v1819_v30 = vmul.f32 %v5822_v49, %v5822_v49 }
 0x6f9   : > { %v1845_v56 = vadd.f32 %v1844_v28, %v1814_v22  ;;  %v1776_v24 = vadd.f32 %v1775_v11, %v5790_v18  ;;  %v1631_v28 = vpop.f32.mrf.mxu0 }
 0x6fa   : > { %v5707_v21 = vpop.f32.mrf.mxu1 }
 0x6fb   : > { %v1708_v7 = vadd.f32 %v5707_v21, %v1619_v35  ;;  %v1846_v25 = vadd.f32 %v1845_v56, %v1815_v5  ;;  %v1777_v42 = vadd.f32 %v1776_v24, %v5800_v16  ;;  %v1818_v21 = vmul.f32 %v5816_v46, %v5816_v46 }
 0x6fd   : > { %v1847_v22 = vadd.f32 %v1846_v25, %v1816_v23  ;;  %v1778_v48 = vadd.f32 %v1777_v42, %v5806_v19  ;;  %v5831_v11 = vmax.f32 %v1708_v7, 0.0 }
 0x6ff   : > { %v1848_v32 = vadd.f32 %v1847_v22, %v1817_v0  ;;  %v1779_v35 = vadd.f32 %v1778_v48, %v5816_v46  ;;  %v1820_v7 = vmul.f32 %v5831_v11, %v5831_v11 }
 0x701   : > { %v1849_v24 = vadd.f32 %v1848_v32, %v1818_v21  ;;  %v1780_v23 = vadd.f32 %v1779_v35, %v5822_v49 }
 0x702   : > { %v5736_v36 = vpop.f32.mrf.mxu1 }
 0x703   : > { %v1711_v40 = vadd.f32 %v5736_v36, %v1622_v10  ;;  %v1629_v36 = vadd.f32 %v1628_v53, %v5549_v54  ;;  %v1632_v10 = vadd.f32 %v1631_v28, %v5549_v54  ;;  %v1850_v42 = vadd.f32 %v1849_v24, %v1819_v30  ;;  %v1633_v28 = vpop.f32.mrf.mxu0  ;;  %v3942_v30 = vld [vmem:[#allocation8 + $0xb8] sm:$0xff] }
 0x704   : > { %v1634_v24 = vadd.f32 %v1633_v28, %v5549_v54  ;;  %2025 = vmatpush.bf16.msrb.mxu2 %v3942_v30  ;;  %v3940_v28 = vld [vmem:[#allocation8 + $0xa8] sm:$0xff] }
 0x705   : > { %v5836_v56 = vmax.f32 %v1711_v40, 0.0 }
 0x707   : > { %v1821_v40 = vmul.f32 %v5836_v56, %v5836_v56 }
 0x70a   : > { %v1712_v55 = vpop.f32.mrf.mxu1 }
 0x70b   : > { %v1713_v5 = vadd.f32 %v1712_v55, %v1624_v41  ;;  %v1781_v41 = vadd.f32 %v1780_v23, %v5831_v11 }
 0x70d   : > { %v5843_v55 = vmax.f32 %v1713_v5, 0.0  ;;  %v1782_v22 = vadd.f32 %v1781_v41, %v5836_v56  ;;  %v3941_v41 = vld [vmem:[#allocation8 + $0xb0] sm:$0xff] }
 0x70e   : > { %2026 = vmatpush.bf16.msrb.mxu2 %v3941_v41 }
 0x70f   : > { %v1822_v48 = vmul.f32 %v5843_v55, %v5843_v55  ;;  %v1783_v5 = vadd.f32 %v1782_v22, %v5843_v55 }
 0x712   : > { %v1715_v20 = vpop.f32.mrf.mxu1  ;;  %2027 = vmatpush.bf16.msrb.mxu2 %v3940_v28 }
 0x713   : > { %v1716_v4 = vadd.f32 %v1715_v20, %v1627_v2  ;;  %v1851_v2 = vadd.f32 %v1850_v42, %v1820_v7 }
 0x715   : > { %v5848_v53 = vmax.f32 %v1716_v4, 0.0 }
 0x717   : > { %v1823_v32 = vmul.f32 %v5848_v53, %v5848_v53  ;;  %v1784_v4 = vadd.f32 %v1783_v5, %v5848_v53 }
 0x71a   : > { %v1717_v45 = vpop.f32.mrf.mxu1 }
 0x71b   : > { %v1718_v25 = vadd.f32 %v1717_v45, %v1629_v36  ;;  %v1852_v45 = vadd.f32 %v1851_v2, %v1821_v40 }
 0x71d   : > { %v5853_v21 = vmax.f32 %v1718_v25, 0.0  ;;  %v1853_v36 = vadd.f32 %v1852_v45, %v1822_v48 }
 0x71f   : > { %v1854_v7 = vadd.f32 %v1853_v36, %v1823_v32  ;;  %v1785_v25 = vadd.f32 %v1784_v4, %v5853_v21  ;;  %v3939_v36 = vld [vmem:[#allocation8 + $0xa0] sm:$0xff] }
 0x720   : > { %2028 = vmatpush.bf16.msrb.mxu2 %v3939_v36 }
 0x722   : > { %v1720_v0 = vpop.f32.mrf.mxu1 }
 0x723   : > { %v1721_v20 = vadd.f32 %v1720_v0, %v1632_v10  ;;  %v1824_v10 = vmul.f32 %v5853_v21, %v5853_v21 }
 0x725   : > { %v5858_v35 = vmax.f32 %v1721_v20, 0.0  ;;  %v1855_v40 = vadd.f32 %v1854_v7, %v1824_v10  ;;  %v3938_v7 = vld [vmem:[#allocation8 + $0x98] sm:$0xff] }
 0x726   : > { %2029 = vmatpush.bf16.msrb.mxu2 %v3938_v7 }
 0x727   : > { %v1825_v42 = vmul.f32 %v5858_v35, %v5858_v35  ;;  %v1786_v20 = vadd.f32 %v1785_v25, %v5858_v35 }
 0x729   : > { %v1856_v22 = vadd.f32 %v1855_v40, %v1825_v42 }
 0x72a   : > { %v1722_v23 = vpop.f32.mrf.mxu1 }
 0x72b   : > { %v1723_v0 = vadd.f32 %v1722_v23, %v1634_v24 }
 0x72d   : > { %v5868_v2 = vmax.f32 %v1723_v0, 0.0  ;;  %v3937_v0 = vld [vmem:[#allocation8 + $0x90] sm:$0xff] }
 0x72e   : > { %2030 = vmatpush.bf16.msrb.mxu2 %v3937_v0 }
 0x72f   : > { %v1787_v48 = vadd.f32 %v1786_v20, %v5868_v2  ;;  %v1826_v54 = vmul.f32 %v5868_v2, %v5868_v2 }
 0x731   : > { %v1788_v45 = vrot.slane %v1787_v48, 4  ;;  %v1857_v5 = vadd.f32 %v1856_v22, %v1826_v54 }
 0x733   : > { %v1789_v32 = vadd.f32 %v1788_v45, %v1787_v48  ;;  %v1858_v30 = vrot.slane %v1857_v5, 4  ;;  %v3936_v48 = vld [vmem:[#allocation8 + $0x88] sm:$0xff] }
 0x734   : > { %2031 = vmatpush.bf16.msrb.mxu2 %v3936_v48 }
 0x735   : > { %v1790_v4 = vrot.slane %v1789_v32, 2  ;;  %v1859_v10 = vadd.f32 %v1858_v30, %v1857_v5 }
 0x737   : > { %v1791_v24 = vadd.f32 %v1790_v4, %v1789_v32  ;;  %v1860_v23 = vrot.slane %v1859_v10, 2  ;;  %v3935_v32 = vld [vmem:[#allocation8 + $0x80] sm:$0xff] }
 0x738   : > { %2032 = vmatpush.bf16.msrb.mxu2 %v3935_v32 }
 0x739   : > { %v1792_v25 = vrot.slane %v1791_v24, 1  ;;  %v1861_v42 = vadd.f32 %v1860_v23, %v1859_v10 }
 0x73b   : > { %v1793_v41 = vadd.f32 %v1792_v25, %v1791_v24  ;;  %v1862_v40 = vrot.slane %v1861_v42, 1 }
 0x73d   : > { %v5874_v20 = vmul.f32 %v1793_v41, %v4716_v1  ;;  %v1863_v22 = vadd.f32 %v1862_v40, %v1861_v42 }
 0x73f   : > { %v1864_v54 = vmul.f32 %v1863_v22, %v4716_v1  ;;  %v1865_v28 = vmul.f32 %v5874_v20, %v5874_v20  ;;  %v1899_v45 = vsub.f32 %v5868_v2, %v5874_v20  ;;  %v1894_v4 = vsub.f32 %v5836_v56, %v5874_v20 }
 0x740   : > { %v1895_v10 = vsub.f32 %v5843_v55, %v5874_v20  ;;  %v1896_v24 = vsub.f32 %v5848_v53, %v5874_v20  ;;  %v1897_v23 = vsub.f32 %v5853_v21, %v5874_v20  ;;  %v1898_v7 = vsub.f32 %v5858_v35, %v5874_v20 }
 0x741   : > { %v1866_v5 = vsub.f32 %v1864_v54, %v1865_v28  ;;  %v1868_v22 = vsub.f32 %v5650_v51, %v5874_v20  ;;  %v1869_v48 = vsub.f32 %v5643_v61, %v5874_v20  ;;  %v1876_v28 = vsub.f32 %v5697_v39, %v5874_v20 }
 0x742   : > { %v1878_v32 = vsub.f32 %v5713_v3, %v5874_v20  ;;  %v1880_v51 = vsub.f32 %v5730_v37, %v5874_v20  ;;  %v1881_v61 = vsub.f32 %v5739_v50, %v5874_v20  ;;  %v1882_v39 = vsub.f32 %v5746_v63, %v5874_v20 }
 0x743   : > { %v1867_v30 = vmax.f32 %v1866_v5, 0.0  ;;  %v1877_v5 = vsub.f32 %v5704_v43, %v5874_v20  ;;  %v1883_v43 = vsub.f32 %v5753_v44, %v5874_v20  ;;  %v1884_v3 = vsub.f32 %v5760_v29, %v5874_v20 }
 0x744   : > { %v1886_v37 = vsub.f32 %v5774_v47, %v5874_v20  ;;  %v1888_v63 = vsub.f32 %v5790_v18, %v5874_v20  ;;  %v1889_v44 = vsub.f32 %v5800_v16, %v5874_v20  ;;  %v1890_v29 = vsub.f32 %v5806_v19, %v5874_v20 }
 0x745   : > { %v1900_v36 = vadd.f32 1e-05, %v1867_v30  ;;  %v1879_v30 = vsub.f32 %v5720_v9, %v5874_v20  ;;  %v1885_v9 = vsub.f32 %v5767_v31, %v5874_v20  ;;  %v1891_v31 = vsub.f32 %v5816_v46, %v5874_v20 }
 0x746   : > { %v1893_v18 = vsub.f32 %v5831_v11, %v5874_v20  ;;  %v1872_v2 = vsub.f32 %v5665_v27, %v5874_v20 }
 0x747   : > { %4056 = vrsqrt.f32 %v1900_v36  ;;  %vm1907_vm8 = vweird.f32 %v1900_v36 }
 0x74d   : > { %v4057_v25 = vpop.eup %4056 }
 0x74e   : > { %v1902_v42 = vmul.f32 %v4057_v25, %v1900_v36  ;;  %vm1908_vm7 = vweird.f32 %v4057_v25 }
 0x74f   : > { %vm1909_vm9 = vmor %vm1907_vm8, %vm1908_vm7 }
 0x750   : > { %v1903_v0 = vmul.f32 %v4057_v25, %v1902_v42 }
 0x752   : > { %v1904_v41 = vmul.f32 0.5, %v1903_v0 }
 0x754   : > { %v1905_v40 = vsub.f32 1.5, %v1904_v41 }
 0x756   : > { %v1906_v54 = vmul.f32 %v4057_v25, %v1905_v40 }
 0x758   : > { %v5907_v36 = vsel %vm1909_vm9, %v4057_v25, %v1906_v54  ;;  %v1887_v25 = vsub.f32 %v5783_v58, %v5874_v20  ;;  %v1892_v58 = vsub.f32 %v5822_v49, %v5874_v20 }
 0x759   : > { %v1911_v42 = vmul.f32 %v5907_v36, %v1868_v22  ;;  %v1912_v50 = vmul.f32 %v5907_v36, %v1869_v48  ;;  %v1919_v0 = vmul.f32 %v5907_v36, %v1876_v28  ;;  %v1920_v41 = vmul.f32 %v5907_v36, %v1877_v5 }
 0x75a   : > { %v1921_v40 = vmul.f32 %v5907_v36, %v1878_v32  ;;  %v1922_v16 = vmul.f32 %v5907_v36, %v1879_v30  ;;  %v1923_v22 = vmul.f32 %v5907_v36, %v1880_v51  ;;  %v1924_v46 = vmul.f32 %v5907_v36, %v1881_v61 }
 0x75b   : > { %v1943_v47 = vpack.c.bf16 %v1912_v50, %v1911_v42  ;;  %v1947_v19 = vpack.c.bf16 %v1920_v41, %v1919_v0  ;;  %v1925_v48 = vmul.f32 %v5907_v36, %v1882_v39  ;;  %v1926_v28 = vmul.f32 %v5907_v36, %v1883_v43 }
 0x75c   : > { %v1948_v54 = vpack.c.bf16 %v1922_v16, %v1921_v40  ;;  %v1927_v49 = vmul.f32 %v5907_v36, %v1884_v3  ;;  %v1928_v5 = vmul.f32 %v5907_v36, %v1885_v9  ;;  %v1949_v11 = vpack.c.bf16 %v1924_v46, %v1923_v22  ;;  %v5998_v22 = vld [vmem:[#allocation10] sm:$0xff] }
 0x75d   : > { %2033 = vmatmul.bf16.vlgmr.msrb.gmra.mxu2 %v1943_v47  ;;  %v1929_v32 = vmul.f32 %v5907_v36, %v1886_v37  ;;  %v1930_v30 = vmul.f32 %v5907_v36, %v1887_v25  ;;  %v1931_v42 = vmul.f32 %v5907_v36, %v1888_v63  ;;  %v1950_v50 = vpack.c.bf16 %v1926_v28, %v1925_v48 }
 0x75e   : > { %v1951_v51 = vpack.c.bf16 %v1928_v5, %v1927_v49  ;;  %v1932_v61 = vmul.f32 %v5907_v36, %v1889_v44  ;;  %v1933_v39 = vmul.f32 %v5907_v36, %v1890_v29  ;;  %v1934_v43 = vmul.f32 %v5907_v36, %v1891_v31 }
 0x75f   : > { %v1952_v47 = vpack.c.bf16 %v1930_v30, %v1929_v32  ;;  %v1935_v3 = vmul.f32 %v5907_v36, %v1892_v58  ;;  %v1936_v9 = vmul.f32 %v5907_v36, %v1893_v18  ;;  %v1937_v37 = vmul.f32 %v5907_v36, %v1894_v4 }
 0x760   : > { %v1953_v0 = vpack.c.bf16 %v1932_v61, %v1931_v42  ;;  %v1938_v25 = vmul.f32 %v5907_v36, %v1895_v10  ;;  %v5965_v63 = vmul.f32 %v5907_v36, %v1896_v24  ;;  %v1954_v44 = vpack.c.bf16 %v1934_v43, %v1933_v39 }
 0x761   : > { %v1955_v29 = vpack.c.bf16 %v1936_v9, %v1935_v3  ;;  %v1940_v56 = vmul.f32 %v5907_v36, %v1897_v23  ;;  %v1941_v55 = vmul.f32 %v5907_v36, %v1898_v7  ;;  %v1942_v53 = vmul.f32 %v5907_v36, %v1899_v45 }
 0x762   : > { %v1956_v4 = vpack.c.bf16 %v1938_v25, %v1937_v37  ;;  %v1870_v10 = vsub.f32 %v5653_v33, %v5874_v20  ;;  %v1871_v24 = vsub.f32 %v5658_v17, %v5874_v20  ;;  %v1873_v45 = vsub.f32 %v5672_v52, %v5874_v20 }
 0x763   : > { %v1957_v21 = vpack.c.bf16 %v1940_v56, %v5965_v63  ;;  %v1958_v23 = vpack.c.bf16 %v1942_v53, %v1941_v55  ;;  %v1915_v33 = vmul.f32 %v5907_v36, %v1872_v2  ;;  %v1874_v58 = vsub.f32 %v5680_v38, %v5874_v20 }
 0x764   : > { %v1913_v31 = vmul.f32 %v5907_v36, %v1870_v10  ;;  %v1914_v35 = vmul.f32 %v5907_v36, %v1871_v24  ;;  %v1916_v41 = vmul.f32 %v5907_v36, %v1873_v45  ;;  %v1875_v18 = vsub.f32 %v5690_v8, %v5874_v20 }
 0x765   : > { %v1917_v40 = vmul.f32 %v5907_v36, %v1874_v58  ;;  %v6001_v46 = vperm.slane %v5998_v22, 2 }
 0x766   : > { %v1944_v7 = vpack.c.bf16 %v1914_v35, %v1913_v31  ;;  %v1945_v17 = vpack.c.bf16 %v1916_v41, %v1915_v33  ;;  %v1918_v16 = vmul.f32 %v5907_v36, %v1875_v18 }
 0x768   : > { %v1946_v27 = vpack.c.bf16 %v1918_v16, %v1917_v40 }
 0x76d   : > { %2038 = vmatmul.bf16.gmra.mxu2 %v1944_v7 }
 0x77d   : > { %2043 = vmatmul.bf16.gmra.mxu2 %v1945_v17 }
 0x78d   : > { %2048 = vmatmul.bf16.gmra.mxu2 %v1946_v27 }
 0x79d   : > { %2053 = vmatmul.bf16.gmra.mxu2 %v1947_v19 }
 0x7ad   : > { %2058 = vmatmul.bf16.gmra.mxu2 %v1948_v54 }
 0x7bd   : > { %2063 = vmatmul.bf16.gmra.mxu2 %v1949_v11 }
 0x7cd   : > { %2068 = vmatmul.bf16.gmra.mxu2 %v1950_v50 }
 0x7dd   : > { %2073 = vmatmul.bf16.gmra.mxu2 %v1951_v51 }
 0x7e0   : > { %v2034_v52 = vpop.f32.mrf.mxu2 }
 0x7e1   : > { %v2035_v8 = vadd.f32 %v2034_v52, %v6001_v46 }
 0x7e8   : > { %v2036_v38 = vpop.f32.mrf.mxu2 }
 0x7e9   : > { %v2037_v20 = vadd.f32 %v2036_v38, %v6001_v46 }
 0x7eb   : > { %v2114_v48 = vpack.c.bf16 %v2037_v20, %v2035_v8 }
 0x7ed   : > { %2078 = vmatmul.bf16.gmra.mxu2 %v1952_v47 }
 0x7f0   : > { %v2039_v36 = vpop.f32.mrf.mxu2 }
 0x7f1   : > { %v2040_v19 = vadd.f32 %v2039_v36, %v6001_v46 }
 0x7f8   : > { %v2041_v28 = vpop.f32.mrf.mxu2 }
 0x7f9   : > { %v2042_v54 = vadd.f32 %v2041_v28, %v6001_v46 }
 0x7fb   : > { %v2115_v49 = vpack.c.bf16 %v2042_v54, %v2040_v19 }
 0x7fd   : > { %2083 = vmatmul.bf16.gmra.mxu2 %v1953_v0 }
 0x800   : > { %v2044_v5 = vpop.f32.mrf.mxu2 }
 0x801   : > { %v2045_v32 = vadd.f32 %v2044_v5, %v6001_v46 }
 0x808   : > { %v2046_v11 = vpop.f32.mrf.mxu2 }
 0x809   : > { %v2047_v30 = vadd.f32 %v2046_v11, %v6001_v46 }
 0x80b   : > { %v2116_v42 = vpack.c.bf16 %v2047_v30, %v2045_v32 }
 0x80d   : > { %2088 = vmatmul.bf16.gmra.mxu2 %v1954_v44 }
 0x810   : > { %v2049_v50 = vpop.f32.mrf.mxu2 }
 0x811   : > { %v2050_v61 = vadd.f32 %v2049_v50, %v6001_v46 }
 0x818   : > { %v2051_v51 = vpop.f32.mrf.mxu2 }
 0x819   : > { %v2052_v39 = vadd.f32 %v2051_v51, %v6001_v46 }
 0x81b   : > { %v2117_v47 = vpack.c.bf16 %v2052_v39, %v2050_v61 }
 0x81d   : > { %2093 = vmatmul.bf16.gmra.mxu2 %v1955_v29 }
 0x820   : > { %v2054_v43 = vpop.f32.mrf.mxu2 }
 0x821   : > { %v2055_v7 = vadd.f32 %v2054_v43, %v6001_v46 }
 0x828   : > { %v2056_v3 = vpop.f32.mrf.mxu2 }
 0x82d   : > { %2098 = vmatmul.bf16.gmra.mxu2 %v1956_v4 }
 0x830   : > { %v2059_v9 = vpop.f32.mrf.mxu2 }
 0x838   : > { %v2061_v0 = vpop.f32.mrf.mxu2 }
 0x839   : > { %v2062_v4 = vadd.f32 %v2061_v0, %v6001_v46 }
 0x83d   : > { %2103 = vmatmul.bf16.gmra.mxu2 %v1957_v21  ;;  %v2060_v21 = vadd.f32 %v2059_v9, %v6001_v46 }
 0x83f   : > { %v2119_v35 = vpack.c.bf16 %v2062_v4, %v2060_v21  ;;  %v7144_v4 = vld [vmem:[#allocation20_spill] sm:$0xff] }
 0x840   : > { %v2064_v37 = vpop.f32.mrf.mxu2 }
 0x841   : > { %v2065_v29 = vadd.f32 %v2064_v37, %v6001_v46 }
 0x848   : > { %v2066_v25 = vpop.f32.mrf.mxu2 }
 0x849   : > { %v2067_v53 = vadd.f32 %v2066_v25, %v6001_v46 }
 0x84b   : > { %v2120_v24 = vpack.c.bf16 %v2067_v53, %v2065_v29  ;;  %v7141_v53 = vld [vmem:[#allocation24_spill] sm:$0xff]  ;;  %v7143_v29 = vld [vmem:[#allocation26_spill] sm:$0xff] }
 0x84d   : > { %2108 = vmatmul.bf16.gmra.mxu2 %v1958_v23  ;;  %v2057_v23 = vadd.f32 %v2056_v3, %v6001_v46 }
 0x84f   : > { %v2118_v2 = vpack.c.bf16 %v2057_v23, %v2055_v7  ;;  %v7149_v7 = vld [vmem:[#allocation23_spill] sm:$0xff] }
 0x850   : > { %v2069_v63 = vpop.f32.mrf.mxu2 }
 0x851   : > { %v2070_v44 = vadd.f32 %v2069_v63, %v6001_v46 }
 0x858   : > { %v2071_v56 = vpop.f32.mrf.mxu2 }
 0x859   : > { %v2072_v55 = vadd.f32 %v2071_v56, %v6001_v46 }
 0x85b   : > { %v2121_v10 = vpack.c.bf16 %v2072_v55, %v2070_v44 }
 0x85d   : > { %2131 = vmatpush.bf16.msrb.mxu3 %v2121_v10  ;;  %v7142_v10 = vld [vmem:[#allocation19_spill] sm:$0xff] }
 0x860   : > { %v6016_v31 = vpop.f32.mrf.mxu2 }
 0x861   : > { %2132 = vmatpush.bf16.msrb.mxu3 %v2120_v24  ;;  %v2075_v44 = vadd.f32 %v6016_v31, %v6001_v46  ;;  %v7145_v24 = vld [vmem:[#allocation28_spill] sm:$0xff]  ;;  %v7147_v31 = vld [vmem:[#allocation22_spill] sm:$0xff] }
 0x865   : > { %2133 = vmatpush.bf16.msrb.mxu3 %v2119_v35  ;;  %v7148_v35 = vld [vmem:[#allocation30_spill] sm:$0xff] }
 0x868   : > { %v2076_v45 = vpop.f32.mrf.mxu2 }
 0x869   : > { %2134 = vmatpush.bf16.msrb.mxu3 %v2118_v2  ;;  %v2077_v63 = vadd.f32 %v2076_v45, %v6001_v46 }
 0x86b   : > { %v2122_v55 = vpack.c.bf16 %v2077_v63, %v2075_v44  ;;  %v7157_v44 = vld [vmem:[#allocation33_spill] sm:$0xff] }
 0x86d   : > { %2135 = vmatpush.bf16.msrb.mxu3 %v2117_v47 }
 0x870   : > { %v2079_v33 = vpop.f32.mrf.mxu2 }
 0x871   : > { %2136 = vmatpush.bf16.msrb.mxu3 %v2116_v42  ;;  %v2080_v25 = vadd.f32 %v2079_v33, %v6001_v46  ;;  %v7150_v33 = vld [vmem:[#allocation32_spill] sm:$0xff] }
 0x875   : > { %2137 = vmatpush.bf16.msrb.mxu3 %v2115_v49 }
 0x878   : > { %v2081_v41 = vpop.f32.mrf.mxu2 }
 0x879   : > { %2138 = vmatpush.bf16.msrb.mxu3 %v2114_v48  ;;  %v2082_v0 = vadd.f32 %v2081_v41, %v6001_v46  ;;  %v7151_v41 = vld [vmem:[#allocation25_spill] sm:$0xff] }
 0x87b   : > { %v2123_v56 = vpack.c.bf16 %v2082_v0, %v2080_v25 }
 0x87c   : > { %2139 = vmatmul.bf16.vlgmr.msrb.gmra.mxu3 %v4871_v62 }
 0x880   : > { %v2084_v17 = vpop.f32.mrf.mxu2 }
 0x881   : > { %v2085_v9 = vadd.f32 %v2084_v17, %v6001_v46 }
 0x888   : > { %v2086_v58 = vpop.f32.mrf.mxu2 }
 0x889   : > { %v2087_v43 = vadd.f32 %v2086_v58, %v6001_v46  ;;  %v6061_v58 = vperm.slane %v5998_v22, 6 }
 0x88b   : > { %v2124_v37 = vpack.c.bf16 %v2087_v43, %v2085_v9 }
 0x88c   : > { %2144 = vmatmul.bf16.gmra.mxu3 %v4883_v12 }
 0x890   : > { %v2089_v18 = vpop.f32.mrf.mxu2 }
 0x891   : > { %v2090_v47 = vadd.f32 %v2089_v18, %v6001_v46 }
 0x898   : > { %v2091_v40 = vpop.f32.mrf.mxu2 }
 0x899   : > { %v2092_v61 = vadd.f32 %v2091_v40, %v6001_v46 }
 0x89b   : > { %v2125_v3 = vpack.c.bf16 %v2092_v61, %v2090_v47  ;;  %v7156_v47 = vld [vmem:[#allocation31_spill] sm:$0xff] }
 0x89c   : > { %2149 = vmatmul.bf16.gmra.mxu3 %v4896_v14 }
 0x8a0   : > { %v2094_v16 = vpop.f32.mrf.mxu2 }
 0x8a1   : > { %v2095_v51 = vadd.f32 %v2094_v16, %v6001_v46  ;;  %v7152_v16 = vld [vmem:[#allocation34_spill] sm:$0xff] }
 0x8a8   : > { %v2096_v27 = vpop.f32.mrf.mxu2 }
 0x8a9   : > { %v2097_v42 = vadd.f32 %v2096_v27, %v6001_v46 }
 0x8ab   : > { %v2126_v39 = vpack.c.bf16 %v2097_v42, %v2095_v51 }
 0x8ac   : > { %2154 = vmatmul.bf16.gmra.mxu3 %v4908_v60 }
 0x8b0   : > { %v2099_v52 = vpop.f32.mrf.mxu2 }
 0x8b1   : > { %v2100_v30 = vadd.f32 %v2099_v52, %v6001_v46 }
 0x8b8   : > { %v2101_v38 = vpop.f32.mrf.mxu2 }
 0x8b9   : > { %v2102_v11 = vadd.f32 %v2101_v38, %v6001_v46  ;;  %v7153_v38 = vld [vmem:[#allocation27_spill] sm:$0xff] }
 0x8bb   : > { %v2127_v50 = vpack.c.bf16 %v2102_v11, %v2100_v30 }
 0x8bc   : > { %2159 = vmatmul.bf16.gmra.mxu3 %v4918_v6 }
 0x8c0   : > { %v2104_v8 = vpop.f32.mrf.mxu2 }
 0x8c1   : > { %v2105_v5 = vadd.f32 %v2104_v8, %v6001_v46 }
 0x8c8   : > { %v2106_v20 = vpop.f32.mrf.mxu2 }
 0x8c9   : > { %v2107_v54 = vadd.f32 %v2106_v20, %v6001_v46 }
 0x8cb   : > { %v2128_v32 = vpack.c.bf16 %v2107_v54, %v2105_v5  ;;  %v7155_v5 = vld [vmem:[#allocation29_spill] sm:$0xff] }
 0x8cc   : > { %2164 = vmatmul.bf16.gmra.mxu3 %v4928_v15 }
 0x8d0   : > { %v2109_v48 = vpop.f32.mrf.mxu2 }
 0x8d1   : > { %v2110_v28 = vadd.f32 %v2109_v48, %v6001_v46 }
 0x8d8   : > { %v2111_v36 = vpop.f32.mrf.mxu2 }
 0x8d9   : > { %v2112_v19 = vadd.f32 %v2111_v36, %v6001_v46  ;;  %v7146_v46 = vld [vmem:[#allocation21_spill] sm:$0xff] }
 0x8db   : > { %v2129_v49 = vpack.c.bf16 %v2112_v19, %v2110_v28  ;;  %v7154_v19 = vld [vmem:[#allocation36_spill] sm:$0xff] }
 0x8dc   : > { %2169 = vmatmul.bf16.gmra.mxu3 %v4938_v34 }
 0x8dd   : > { %2220 = vmatpush.bf16.msra.mxu0 %v2129_v49 }
 0x8e1   : > { %2221 = vmatpush.bf16.msra.mxu0 %v2128_v32 }
 0x8e5   : > { %2222 = vmatpush.bf16.msra.mxu0 %v2127_v50 }
 0x8e9   : > { %2223 = vmatpush.bf16.msra.mxu0 %v2126_v39 }
 0x8ec   : > { %2174 = vmatmul.bf16.gmra.mxu3 %v4948_v59 }
 0x8ed   : > { %2224 = vmatpush.bf16.msra.mxu0 %v2125_v3 }
 0x8f1   : > { %2225 = vmatpush.bf16.msra.mxu0 %v2124_v37 }
 0x8f5   : > { %2226 = vmatpush.bf16.msra.mxu0 %v2123_v56 }
 0x8f9   : > { %2227 = vmatpush.bf16.msra.mxu0 %v2122_v55 }
 0x8fc   : > { %2228 = vmatmul.bf16.vlgmr.msra.gmra.mxu0 %v4902_v13  ;;  %2179 = vmatmul.bf16.gmra.mxu3 %v4958_v26 }
 0x8ff   : > { %v2140_v21 = vpop.f32.mrf.mxu3 }
 0x900   : > { %v2141_v18 = vadd.f32 %v2140_v21, %v6061_v58 }
 0x907   : > { %v2142_v23 = vpop.f32.mrf.mxu3 }
 0x908   : > { %v2143_v8 = vadd.f32 %v2142_v23, %v6061_v58 }
 0x90c   : > { %2233 = vmatmul.bf16.gmra.mxu0 %v4912_v57  ;;  %2184 = vmatmul.bf16.gmra.mxu3 %v7141_v53 }
 0x90f   : > { %v2145_v2 = vpop.f32.mrf.mxu3 }
 0x910   : > { %v2146_v28 = vadd.f32 %v2145_v2, %v6061_v58 }
 0x917   : > { %v2147_v45 = vpop.f32.mrf.mxu3 }
 0x918   : > { %v2148_v11 = vadd.f32 %v2147_v45, %v6061_v58 }
 0x91c   : > { %2238 = vmatmul.bf16.gmra.mxu0 %v7142_v10  ;;  %2189 = vmatmul.bf16.gmra.mxu3 %v7143_v29 }
 0x91f   : > { %v2150_v17 = vpop.f32.mrf.mxu3 }
 0x920   : > { %v2151_v50 = vadd.f32 %v2150_v17, %v6061_v58 }
 0x927   : > { %v2152_v40 = vpop.f32.mrf.mxu3 }
 0x928   : > { %v2153_v43 = vadd.f32 %v2152_v40, %v6061_v58 }
 0x92c   : > { %2243 = vmatmul.bf16.gmra.mxu0 %v7144_v4  ;;  %2194 = vmatmul.bf16.gmra.mxu3 %v7145_v24 }
 0x92f   : > { %v2155_v20 = vpop.f32.mrf.mxu3 }
 0x930   : > { %v2156_v37 = vadd.f32 %v2155_v20, %v6061_v58 }
 0x937   : > { %v2157_v22 = vpop.f32.mrf.mxu3 }
 0x938   : > { %v2158_v55 = vadd.f32 %v2157_v22, %v6061_v58 }
 0x93c   : > { %2248 = vmatmul.bf16.gmra.mxu0 %v7146_v46  ;;  %2199 = vmatmul.bf16.gmra.mxu3 %v7148_v35 }
 0x93f   : > { %v2160_v32 = vpop.f32.mrf.mxu3 }
 0x940   : > { %v2161_v45 = vadd.f32 %v2160_v32, %v6061_v58 }
 0x947   : > { %v6080_v51 = vpop.f32.mrf.mxu3 }
 0x94c   : > { %2253 = vmatmul.bf16.gmra.mxu0 %v7147_v31  ;;  %2204 = vmatmul.bf16.gmra.mxu3 %v7150_v33 }
 0x94f   : > { %v2165_v3 = vpop.f32.mrf.mxu3 }
 0x957   : > { %v6089_v25 = vpop.f32.mrf.mxu3 }
 0x95c   : > { %2258 = vmatmul.bf16.gmra.mxu0 %v7149_v7  ;;  %2209 = vmatmul.bf16.gmra.mxu3 %v7152_v16 }
 0x95f   : > { %v2170_v21 = vpop.f32.mrf.mxu3 }
 0x96c   : > { %2263 = vmatmul.bf16.gmra.mxu0 %v7151_v41  ;;  %2214 = vmatmul.bf16.gmra.mxu3 %v7154_v19 }
 0x979   : > { %v2229_v27 = vpop.f32.mrf.mxu0 }
 0x97a   : > { %v6065_v52 = vadd.f32 %v2229_v27, %v2141_v18  ;;  %v6098_v18 = vpop.f32.mrf.mxu3  ;;  %v7158_v27 = vld [vmem:[#allocation35_spill] sm:$0xff] }
 0x97c   : > { %2268 = vmatmul.bf16.gmra.mxu0 %v7153_v38 }
 0x981   : > { %v2231_v48 = vpop.f32.mrf.mxu0 }
 0x982   : > { %v6069_v36 = vadd.f32 %v2231_v48, %v2143_v8  ;;  %v2175_v20 = vpop.f32.mrf.mxu3  ;;  %v2166_v48 = vadd.f32 %v2165_v3, %v6061_v58 }
 0x989   : > { %v2234_v54 = vpop.f32.mrf.mxu0 }
 0x98a   : > { %v6073_v49 = vadd.f32 %v2234_v54, %v2146_v28  ;;  %v7159_v54 = vld [vmem:[#allocation37_spill] sm:$0xff] }
 0x98c   : > { %2273 = vmatmul.bf16.gmra.mxu0 %v7155_v5 }
 0x991   : > { %v2236_v30 = vpop.f32.mrf.mxu0 }
 0x992   : > { %v6077_v42 = vadd.f32 %v2236_v30, %v2148_v11  ;;  %v6109_v11 = vpop.f32.mrf.mxu3  ;;  %v2171_v30 = vadd.f32 %v2170_v21, %v6061_v58 }
 0x994   : > { %v6170_v38 = vmax.f32 %v6077_v42, 0.0 }
 0x996   : > { %v2382_v35 = vmul.f32 %v6170_v38, %v6170_v38 }
 0x999   : > { %v2239_v61 = vpop.f32.mrf.mxu0 }
 0x99a   : > { %v6082_v39 = vadd.f32 %v2239_v61, %v2151_v50  ;;  %v2180_v50 = vpop.f32.mrf.mxu3 }
 0x99c   : > { %2278 = vmatmul.bf16.gmra.mxu0 %v7156_v47  ;;  %v6177_v41 = vmax.f32 %v6082_v39, 0.0 }
 0x99e   : > { %v2383_v24 = vmul.f32 %v6177_v41, %v6177_v41 }
 0x9a1   : > { %v2241_v9 = vpop.f32.mrf.mxu0 }
 0x9a2   : > { %v6086_v0 = vadd.f32 %v2241_v9, %v2153_v43  ;;  %v7160_v9 = vld [vmem:[#allocation38_spill] sm:$0xff]  ;;  %v6119_v3 = vpop.f32.mrf.mxu3 }
 0x9a4   : > { %v6184_v7 = vmax.f32 %v6086_v0, 0.0 }
 0x9a6   : > { %v2384_v29 = vmul.f32 %v6184_v7, %v6184_v7 }
 0x9a9   : > { %v2244_v63 = vpop.f32.mrf.mxu0 }
 0x9aa   : > { %v6091_v56 = vadd.f32 %v2244_v63, %v2156_v37  ;;  %v2176_v63 = vadd.f32 %v2175_v20, %v6061_v58 }
 0x9ac   : > { %2283 = vmatmul.bf16.gmra.mxu0 %v7157_v44  ;;  %v6192_v39 = vmax.f32 %v6091_v56, 0.0 }
 0x9ae   : > { %v2385_v10 = vmul.f32 %v6192_v39, %v6192_v39 }
 0x9b1   : > { %v2246_v23 = vpop.f32.mrf.mxu0 }
 0x9b2   : > { %v6095_v2 = vadd.f32 %v2246_v23, %v2158_v55 }
 0x9b9   : > { %v2249_v17 = vpop.f32.mrf.mxu0 }
 0x9ba   : > { %v6100_v40 = vadd.f32 %v2249_v17, %v2161_v45  ;;  %v2185_v45 = vpop.f32.mrf.mxu3  ;;  %v7161_v17 = vld [vmem:[#allocation39_spill] sm:$0xff] }
 0x9bb   : > { %v2186_v20 = vadd.f32 %v2185_v45, %v6061_v58 }
 0x9bc   : > { %2288 = vmatmul.bf16.gmra.mxu0 %v7158_v27 }
 0x9c1   : > { %v6103_v8 = vpop.f32.mrf.mxu0 }
 0x9c2   : > { %v6127_v21 = vpop.f32.mrf.mxu3 }
 0x9c9   : > { %v2254_v28 = vpop.f32.mrf.mxu0 }
 0x9ca   : > { %v6106_v22 = vadd.f32 %v2254_v28, %v2166_v48  ;;  %v2181_v28 = vadd.f32 %v2180_v50, %v6061_v58 }
 0x9cc   : > { %2293 = vmatmul.bf16.gmra.mxu0 %v7159_v54 }
 0x9d1   : > { %v6111_v32 = vpop.f32.mrf.mxu0 }
 0x9d9   : > { %v2259_v61 = vpop.f32.mrf.mxu0 }
 0x9da   : > { %v6114_v43 = vadd.f32 %v2259_v61, %v2171_v30 }
 0x9dc   : > { %2298 = vmatmul.bf16.gmra.mxu0 %v7160_v9  ;;  %v2190_v9 = vpop.f32.mrf.mxu3 }
 0x9dd   : > { %v2191_v47 = vadd.f32 %v2190_v9, %v6061_v58  ;;  %v6162_v9 = vmax.f32 %v6065_v52, 0.0 }
 0x9e1   : > { %v6117_v37 = vpop.f32.mrf.mxu0 }
 0x9e9   : > { %v2264_v55 = vpop.f32.mrf.mxu0 }
 0x9ea   : > { %v6122_v23 = vadd.f32 %v2264_v55, %v2176_v63  ;;  %v6135_v63 = vpop.f32.mrf.mxu3 }
 0x9ec   : > { %2303 = vmatmul.bf16.gmra.mxu0 %v7161_v17 }
 0x9f1   : > { %v6125_v48 = vpop.f32.mrf.mxu0 }
 0x9f2   : > { %v6141_v44 = vpop.f32.mrf.mxu3 }
 0x9f9   : > { %v2269_v30 = vpop.f32.mrf.mxu0 }
 0x9fa   : > { %v6130_v61 = vadd.f32 %v2269_v30, %v2181_v28  ;;  %v6146_v28 = vpop.f32.mrf.mxu3 }
 0xa01   : > { %v6132_v54 = vpop.f32.mrf.mxu0 }
 0xa02   : > { %v6150_v5 = vpop.f32.mrf.mxu3 }
 0xa09   : > { %v2274_v27 = vpop.f32.mrf.mxu0 }
 0xa0a   : > { %v6137_v55 = vadd.f32 %v2274_v27, %v2186_v20  ;;  %v6155_v27 = vmax.f32 %v6069_v36, 0.0  ;;  %v6159_v16 = vpop.f32.mrf.mxu3  ;;  %v2379_v36 = vmul.f32 %v6162_v9, %v6162_v9 }
 0xa0c   : > { %v2341_v52 = vadd.f32 %v6155_v27, %v6162_v9 }
 0xa11   : > { %v6139_v17 = vpop.f32.mrf.mxu0 }
 0xa19   : > { %v2279_v50 = vpop.f32.mrf.mxu0 }
 0xa1a   : > { %v6144_v19 = vadd.f32 %v2279_v50, %v2191_v47  ;;  %v6165_v47 = vmax.f32 %v6073_v49, 0.0  ;;  %v2380_v50 = vmul.f32 %v6155_v27, %v6155_v27 }
 0xa1c   : > { %v2381_v33 = vmul.f32 %v6165_v47, %v6165_v47  ;;  %v2411_v49 = vadd.f32 %v2380_v50, %v2379_v36  ;;  %v2342_v31 = vadd.f32 %v2341_v52, %v6165_v47  ;;  %v2163_v50 = vadd.f32 %v6080_v51, %v6061_v58  ;;  %v6196_v36 = vpop.f32.mrf.mxu3 }
 0xa1d   : > { %v6202_v52 = vmax.f32 %v6095_v2, 0.0  ;;  %v6209_v51 = vmax.f32 %v6100_v40, 0.0 }
 0xa1e   : > { %v2412_v46 = vadd.f32 %v2411_v49, %v2381_v33  ;;  %v2343_v4 = vadd.f32 %v2342_v31, %v6170_v38  ;;  %v2252_v33 = vadd.f32 %v6103_v8, %v2163_v50 }
 0xa1f   : > { %v2386_v2 = vmul.f32 %v6202_v52, %v6202_v52  ;;  %v2387_v40 = vmul.f32 %v6209_v51, %v6209_v51 }
 0xa20   : > { %v2413_v0 = vadd.f32 %v2412_v46, %v2382_v35  ;;  %v2344_v49 = vadd.f32 %v2343_v4, %v6177_v41  ;;  %v2168_v46 = vadd.f32 %v6089_v25, %v6061_v58  ;;  %v6216_v53 = vmax.f32 %v2252_v33, 0.0 }
 0xa21   : > { %v6148_v30 = vpop.f32.mrf.mxu0  ;;  %v6225_v25 = vmax.f32 %v6106_v22, 0.0 }
 0xa22   : > { %v2414_v56 = vadd.f32 %v2413_v0, %v2383_v24  ;;  %v2345_v31 = vadd.f32 %v2344_v49, %v6184_v7  ;;  %v2257_v4 = vadd.f32 %v6111_v32, %v2168_v46  ;;  %v2173_v0 = vadd.f32 %v6098_v18, %v6061_v58 }
 0xa23   : > { %v2388_v32 = vmul.f32 %v6216_v53, %v6216_v53  ;;  %v2389_v22 = vmul.f32 %v6225_v25, %v6225_v25  ;;  %v6242_v18 = vmax.f32 %v6114_v43, 0.0 }
 0xa24   : > { %v2415_v35 = vadd.f32 %v2414_v56, %v2384_v29  ;;  %v2346_v8 = vadd.f32 %v2345_v31, %v6192_v39  ;;  %v6232_v49 = vmax.f32 %v2257_v4, 0.0  ;;  %v6234_v56 = vpop.f32.mrf.mxu3  ;;  %v2262_v46 = vadd.f32 %v6117_v37, %v2173_v0 }
 0xa25   : > { %v2391_v43 = vmul.f32 %v6242_v18, %v6242_v18 }
 0xa26   : > { %v2416_v50 = vadd.f32 %v2415_v35, %v2385_v10  ;;  %v2347_v29 = vadd.f32 %v2346_v8, %v6202_v52  ;;  %v2390_v8 = vmul.f32 %v6232_v49, %v6232_v49 }
 0xa28   : > { %v2417_v33 = vadd.f32 %v2416_v50, %v2386_v2  ;;  %v2348_v10 = vadd.f32 %v2347_v29, %v6209_v51  ;;  %v2178_v2 = vadd.f32 %v6109_v11, %v6061_v58  ;;  %v6258_v11 = vmax.f32 %v6122_v23, 0.0 }
 0xa29   : > { %v6152_v45 = vpop.f32.mrf.mxu0 }
 0xa2a   : > { %v2418_v31 = vadd.f32 %v2417_v33, %v2387_v40  ;;  %v2349_v35 = vadd.f32 %v2348_v10, %v6216_v53  ;;  %v6251_v40 = vmax.f32 %v2262_v46, 0.0  ;;  %v2267_v29 = vadd.f32 %v6125_v48, %v2178_v2 }
 0xa2b   : > { %v2393_v23 = vmul.f32 %v6258_v11, %v6258_v11 }
 0xa2c   : > { %v2419_v4 = vadd.f32 %v2418_v31, %v2388_v32  ;;  %v2350_v37 = vadd.f32 %v2349_v35, %v6225_v25  ;;  %v2183_v32 = vadd.f32 %v6119_v3, %v6061_v58  ;;  %v2392_v46 = vmul.f32 %v6251_v40, %v6251_v40 }
 0xa2d   : > { %v6265_v35 = vmax.f32 %v2267_v29, 0.0  ;;  %v2188_v3 = vadd.f32 %v6127_v21, %v6061_v58  ;;  %v2193_v21 = vadd.f32 %v6135_v63, %v6061_v58  ;;  %v6302_v63 = vmax.f32 %v6144_v19, 0.0 }
 0xa2e   : > { %v2420_v0 = vadd.f32 %v2419_v4, %v2389_v22  ;;  %v2351_v33 = vadd.f32 %v2350_v37, %v6232_v49  ;;  %v2272_v48 = vadd.f32 %v6132_v54, %v2183_v32  ;;  %v2210_v22 = vpop.f32.mrf.mxu3  ;;  %v6272_v37 = vmax.f32 %v6130_v61, 0.0 }
 0xa2f   : > { %v2394_v54 = vmul.f32 %v6265_v35, %v6265_v35 }
 0xa30   : > { %v2421_v10 = vadd.f32 %v2420_v0, %v2390_v8  ;;  %v2352_v31 = vadd.f32 %v2351_v33, %v6242_v18  ;;  %v6279_v33 = vmax.f32 %v2272_v48, 0.0  ;;  %v2395_v61 = vmul.f32 %v6272_v37, %v6272_v37 }
 0xa31   : > { %v6157_v20 = vpop.f32.mrf.mxu0 }
 0xa32   : > { %v2422_v2 = vadd.f32 %v2421_v10, %v2391_v43  ;;  %v2353_v4 = vadd.f32 %v2352_v31, %v6251_v40  ;;  %v2277_v43 = vadd.f32 %v6139_v17, %v2188_v3  ;;  %v6286_v31 = vmax.f32 %v6137_v55, 0.0 }
 0xa33   : > { %v2396_v17 = vmul.f32 %v6279_v33, %v6279_v33 }
 0xa34   : > { %v2423_v0 = vadd.f32 %v2422_v2, %v2392_v46  ;;  %v2354_v29 = vadd.f32 %v2353_v4, %v6258_v11  ;;  %v2196_v46 = vadd.f32 %v6141_v44, %v6061_v58  ;;  %v6295_v4 = vmax.f32 %v2277_v43, 0.0 }
 0xa35   : > { %v2198_v44 = vadd.f32 %v6146_v28, %v6061_v58 }
 0xa36   : > { %v2424_v32 = vadd.f32 %v2423_v0, %v2393_v23  ;;  %v2355_v10 = vadd.f32 %v2354_v29, %v6265_v35  ;;  %v2282_v23 = vadd.f32 %v6148_v30, %v2193_v21  ;;  %v2397_v0 = vmul.f32 %v6286_v31, %v6286_v31  ;;  %v2212_v43 = vpop.f32.mrf.mxu3 }
 0xa37   : > { %v2285_v29 = vadd.f32 %v6152_v45, %v2196_v46  ;;  %v2287_v19 = vadd.f32 %v6157_v20, %v2198_v44  ;;  %v2399_v45 = vmul.f32 %v6302_v63, %v6302_v63 }
 0xa38   : > { %v2425_v2 = vadd.f32 %v2424_v32, %v2394_v54  ;;  %v2356_v48 = vadd.f32 %v2355_v10, %v6272_v37  ;;  %v2201_v54 = vadd.f32 %v6150_v5, %v6061_v58  ;;  %v6312_v21 = vmax.f32 %v2282_v23, 0.0 }
 0xa39   : > { %v6186_v42 = vpop.f32.mrf.mxu0  ;;  %v6318_v46 = vmax.f32 %v2285_v29, 0.0 }
 0xa3a   : > { %v2426_v3 = vadd.f32 %v2425_v2, %v2395_v61  ;;  %v2357_v55 = vadd.f32 %v2356_v48, %v6279_v33  ;;  %v2398_v61 = vmul.f32 %v6295_v4, %v6295_v4  ;;  %v2290_v5 = vadd.f32 %v6186_v42, %v2201_v54 }
 0xa3b   : > { %v2203_v48 = vadd.f32 %v6159_v16, %v6061_v58  ;;  %v2400_v20 = vmul.f32 %v6312_v21, %v6312_v21  ;;  %v2401_v42 = vmul.f32 %v6318_v46, %v6318_v46 }
 0xa3c   : > { %v2427_v30 = vadd.f32 %v2426_v3, %v2396_v17  ;;  %v2358_v10 = vadd.f32 %v2357_v55, %v6286_v31  ;;  %v2206_v17 = vadd.f32 %v6196_v36, %v6061_v58  ;;  %v6328_v55 = vmax.f32 %v2287_v19, 0.0 }
 0xa3d   : > { %v6334_v16 = vmax.f32 %v2290_v5, 0.0  ;;  %v2208_v36 = vadd.f32 %v6234_v56, %v6061_v58 }
 0xa3e   : > { %v2428_v2 = vadd.f32 %v2427_v30, %v2397_v0  ;;  %v2359_v28 = vadd.f32 %v2358_v10, %v6295_v4  ;;  %v2211_v10 = vadd.f32 %v2210_v22, %v6061_v58 }
 0xa3f   : > { %v2403_v56 = vmul.f32 %v6334_v16, %v6334_v16 }
 0xa40   : > { %v2429_v23 = vadd.f32 %v2428_v2, %v2398_v61  ;;  %v2360_v3 = vadd.f32 %v2359_v28, %v6302_v63  ;;  %v2215_v2 = vpop.f32.mrf.mxu3 }
 0xa41   : > { %v6219_v24 = vpop.f32.mrf.mxu0 }
 0xa42   : > { %v2292_v0 = vadd.f32 %v6219_v24, %v2203_v48  ;;  %v2430_v44 = vadd.f32 %v2429_v23, %v2399_v45  ;;  %v2361_v29 = vadd.f32 %v2360_v3, %v6312_v21  ;;  %v2402_v24 = vmul.f32 %v6328_v55, %v6328_v55 }
 0xa44   : > { %v2431_v61 = vadd.f32 %v2430_v44, %v2400_v20  ;;  %v2362_v19 = vadd.f32 %v2361_v29, %v6318_v46  ;;  %v6343_v28 = vmax.f32 %v2292_v0, 0.0 }
 0xa46   : > { %v2432_v5 = vadd.f32 %v2431_v61, %v2401_v42  ;;  %v2363_v48 = vadd.f32 %v2362_v19, %v6328_v55  ;;  %v2404_v0 = vmul.f32 %v6343_v28, %v6343_v28 }
 0xa48   : > { %v2433_v3 = vadd.f32 %v2432_v5, %v2402_v24  ;;  %v2364_v20 = vadd.f32 %v2363_v48, %v6334_v16 }
 0xa49   : > { %v6248_v50 = vpop.f32.mrf.mxu0 }
 0xa4a   : > { %v2295_v30 = vadd.f32 %v6248_v50, %v2206_v17  ;;  %v2213_v50 = vadd.f32 %v2212_v43, %v6061_v58  ;;  %v2216_v17 = vadd.f32 %v2215_v2, %v6061_v58  ;;  %v2434_v29 = vadd.f32 %v2433_v3, %v2403_v56  ;;  %v2217_v2 = vpop.f32.mrf.mxu3  ;;  %v3950_v56 = vld [vmem:[#allocation8 + $0xf8] sm:$0xff] }
 0xa4b   : > { %v2218_v3 = vadd.f32 %v2217_v2, %v6061_v58  ;;  %2609 = vmatpush.bf16.msra.mxu1 %v3950_v56  ;;  %v3948_v2 = vld [vmem:[#allocation8 + $0xe8] sm:$0xff] }
 0xa4c   : > { %v6348_v23 = vmax.f32 %v2295_v30, 0.0 }
 0xa4e   : > { %v2405_v30 = vmul.f32 %v6348_v23, %v6348_v23 }
 0xa51   : > { %v2296_v8 = vpop.f32.mrf.mxu0 }
 0xa52   : > { %v2297_v45 = vadd.f32 %v2296_v8, %v2208_v36  ;;  %v2365_v36 = vadd.f32 %v2364_v20, %v6343_v28 }
 0xa54   : > { %v6355_v8 = vmax.f32 %v2297_v45, 0.0  ;;  %v2366_v61 = vadd.f32 %v2365_v36, %v6348_v23  ;;  %v3949_v36 = vld [vmem:[#allocation8 + $0xf0] sm:$0xff] }
 0xa55   : > { %2610 = vmatpush.bf16.msra.mxu1 %v3949_v36 }
 0xa56   : > { %v2406_v19 = vmul.f32 %v6355_v8, %v6355_v8  ;;  %v2367_v45 = vadd.f32 %v2366_v61, %v6355_v8 }
 0xa59   : > { %v2299_v32 = vpop.f32.mrf.mxu0  ;;  %2611 = vmatpush.bf16.msra.mxu1 %v3948_v2 }
 0xa5a   : > { %v2300_v22 = vadd.f32 %v2299_v32, %v2211_v10  ;;  %v2435_v10 = vadd.f32 %v2434_v29, %v2404_v0 }
 0xa5c   : > { %v6360_v43 = vmax.f32 %v2300_v22, 0.0 }
 0xa5e   : > { %v2407_v5 = vmul.f32 %v6360_v43, %v6360_v43  ;;  %v2368_v22 = vadd.f32 %v2367_v45, %v6360_v43 }
 0xa61   : > { %v2301_v54 = vpop.f32.mrf.mxu0 }
 0xa62   : > { %v2302_v44 = vadd.f32 %v2301_v54, %v2213_v50  ;;  %v2436_v54 = vadd.f32 %v2435_v10, %v2405_v30 }
 0xa64   : > { %v6365_v24 = vmax.f32 %v2302_v44, 0.0  ;;  %v2437_v50 = vadd.f32 %v2436_v54, %v2406_v19 }
 0xa66   : > { %v2438_v0 = vadd.f32 %v2437_v50, %v2407_v5  ;;  %v2369_v44 = vadd.f32 %v2368_v22, %v6365_v24  ;;  %v3947_v50 = vld [vmem:[#allocation8 + $0xe0] sm:$0xff] }
 0xa67   : > { %2612 = vmatpush.bf16.msra.mxu1 %v3947_v50 }
 0xa69   : > { %v2304_v42 = vpop.f32.mrf.mxu0 }
 0xa6a   : > { %v2305_v32 = vadd.f32 %v2304_v42, %v2216_v17  ;;  %v2408_v17 = vmul.f32 %v6365_v24, %v6365_v24 }
 0xa6c   : > { %v6370_v48 = vmax.f32 %v2305_v32, 0.0  ;;  %v2439_v30 = vadd.f32 %v2438_v0, %v2408_v17  ;;  %v3946_v0 = vld [vmem:[#allocation8 + $0xd8] sm:$0xff] }
 0xa6d   : > { %2613 = vmatpush.bf16.msra.mxu1 %v3946_v0 }
 0xa6e   : > { %v2409_v29 = vmul.f32 %v6370_v48, %v6370_v48  ;;  %v2370_v32 = vadd.f32 %v2369_v44, %v6370_v48 }
 0xa70   : > { %v2440_v61 = vadd.f32 %v2439_v30, %v2409_v29  ;;  %v3945_v30 = vld [vmem:[#allocation8 + $0xd0] sm:$0xff] }
 0xa71   : > { %v2306_v20 = vpop.f32.mrf.mxu0  ;;  %2614 = vmatpush.bf16.msra.mxu1 %v3945_v30 }
 0xa72   : > { %v2307_v42 = vadd.f32 %v2306_v20, %v2218_v3 }
 0xa74   : > { %v6380_v10 = vmax.f32 %v2307_v42, 0.0 }
 0xa76   : > { %v2371_v19 = vadd.f32 %v2370_v32, %v6380_v10  ;;  %v2410_v58 = vmul.f32 %v6380_v10, %v6380_v10 }
 0xa78   : > { %v2372_v54 = vrot.slane %v2371_v19, 4  ;;  %v2441_v45 = vadd.f32 %v2440_v61, %v2410_v58 }
 0xa7a   : > { %v2373_v5 = vadd.f32 %v2372_v54, %v2371_v19  ;;  %v2442_v56 = vrot.slane %v2441_v45, 4  ;;  %v3944_v19 = vld [vmem:[#allocation8 + $0xc8] sm:$0xff] }
 0xa7b   : > { %2615 = vmatpush.bf16.msra.mxu1 %v3944_v19 }
 0xa7c   : > { %v2374_v22 = vrot.slane %v2373_v5, 2  ;;  %v2443_v17 = vadd.f32 %v2442_v56, %v2441_v45 }
 0xa7e   : > { %v2375_v3 = vadd.f32 %v2374_v22, %v2373_v5  ;;  %v2444_v20 = vrot.slane %v2443_v17, 2  ;;  %v3943_v5 = vld [vmem:[#allocation8 + $0xc0] sm:$0xff] }
 0xa7f   : > { %2616 = vmatpush.bf16.msra.mxu1 %v3943_v5 }
 0xa80   : > { %v2376_v44 = vrot.slane %v2375_v3, 1  ;;  %v2445_v29 = vadd.f32 %v2444_v20, %v2443_v17 }
 0xa82   : > { %v2377_v42 = vadd.f32 %v2376_v44, %v2375_v3  ;;  %v2446_v36 = vrot.slane %v2445_v29, 1 }
 0xa84   : > { %v6386_v32 = vmul.f32 %v2377_v42, %v4716_v1  ;;  %v2447_v61 = vadd.f32 %v2446_v36, %v2445_v29 }
 0xa86   : > { %v2448_v58 = vmul.f32 %v2447_v61, %v4716_v1  ;;  %v2449_v2 = vmul.f32 %v6386_v32, %v6386_v32  ;;  %v2483_v54 = vsub.f32 %v6380_v10, %v6386_v32  ;;  %v2478_v22 = vsub.f32 %v6348_v23, %v6386_v32 }
 0xa87   : > { %v2479_v17 = vsub.f32 %v6355_v8, %v6386_v32  ;;  %v2480_v3 = vsub.f32 %v6360_v43, %v6386_v32  ;;  %v2481_v20 = vsub.f32 %v6365_v24, %v6386_v32  ;;  %v2482_v0 = vsub.f32 %v6370_v48, %v6386_v32 }
 0xa88   : > { %v2450_v45 = vsub.f32 %v2448_v58, %v2449_v2  ;;  %v2452_v61 = vsub.f32 %v6162_v9, %v6386_v32  ;;  %v2453_v19 = vsub.f32 %v6155_v27, %v6386_v32  ;;  %v2460_v2 = vsub.f32 %v6209_v51, %v6386_v32 }
 0xa89   : > { %v2462_v5 = vsub.f32 %v6225_v25, %v6386_v32  ;;  %v2464_v9 = vsub.f32 %v6242_v18, %v6386_v32  ;;  %v2465_v27 = vsub.f32 %v6251_v40, %v6386_v32  ;;  %v2466_v51 = vsub.f32 %v6258_v11, %v6386_v32 }
 0xa8a   : > { %v2451_v56 = vmax.f32 %v2450_v45, 0.0  ;;  %v2461_v45 = vsub.f32 %v6216_v53, %v6386_v32  ;;  %v2467_v53 = vsub.f32 %v6265_v35, %v6386_v32  ;;  %v2468_v25 = vsub.f32 %v6272_v37, %v6386_v32 }
 0xa8b   : > { %v2470_v18 = vsub.f32 %v6286_v31, %v6386_v32  ;;  %v2472_v11 = vsub.f32 %v6302_v63, %v6386_v32  ;;  %v2473_v35 = vsub.f32 %v6312_v21, %v6386_v32  ;;  %v2474_v37 = vsub.f32 %v6318_v46, %v6386_v32 }
 0xa8c   : > { %v2484_v50 = vadd.f32 1e-05, %v2451_v56  ;;  %v2463_v56 = vsub.f32 %v6232_v49, %v6386_v32  ;;  %v2469_v49 = vsub.f32 %v6279_v33, %v6386_v32  ;;  %v2475_v33 = vsub.f32 %v6328_v55, %v6386_v32 }
 0xa8d   : > { %v2477_v63 = vsub.f32 %v6343_v28, %v6386_v32  ;;  %v2455_v24 = vsub.f32 %v6170_v38, %v6386_v32  ;;  %v2456_v10 = vsub.f32 %v6177_v41, %v6386_v32 }
 0xa8e   : > { %4058 = vrsqrt.f32 %v2484_v50  ;;  %vm2491_vm11 = vweird.f32 %v2484_v50 }
 0xa94   : > { %v4059_v44 = vpop.eup %4058 }
 0xa95   : > { %v2486_v29 = vmul.f32 %v4059_v44, %v2484_v50  ;;  %vm2492_vm10 = vweird.f32 %v4059_v44 }
 0xa96   : > { %vm2493_vm12 = vmor %vm2491_vm11, %vm2492_vm10 }
 0xa97   : > { %v2487_v42 = vmul.f32 %v4059_v44, %v2486_v29 }
 0xa99   : > { %v2488_v36 = vmul.f32 0.5, %v2487_v42 }
 0xa9b   : > { %v2489_v30 = vsub.f32 1.5, %v2488_v36 }
 0xa9d   : > { %v2490_v58 = vmul.f32 %v4059_v44, %v2489_v30 }
 0xa9f   : > { %v6419_v50 = vsel %vm2493_vm12, %v4059_v44, %v2490_v58  ;;  %v2471_v44 = vsub.f32 %v6295_v4, %v6386_v32  ;;  %v2476_v4 = vsub.f32 %v6334_v16, %v6386_v32 }
 0xaa0   : > { %v2495_v29 = vmul.f32 %v6419_v50, %v2452_v61  ;;  %v2496_v40 = vmul.f32 %v6419_v50, %v2453_v19  ;;  %v2503_v42 = vmul.f32 %v6419_v50, %v2460_v2  ;;  %v2504_v36 = vmul.f32 %v6419_v50, %v2461_v45 }
 0xaa1   : > { %v2505_v30 = vmul.f32 %v6419_v50, %v2462_v5  ;;  %v2506_v21 = vmul.f32 %v6419_v50, %v2463_v56  ;;  %v2507_v61 = vmul.f32 %v6419_v50, %v2464_v9  ;;  %v2508_v55 = vmul.f32 %v6419_v50, %v2465_v27 }
 0xaa2   : > { %v2527_v31 = vpack.c.bf16 %v2496_v40, %v2495_v29  ;;  %v2531_v46 = vpack.c.bf16 %v2504_v36, %v2503_v42  ;;  %v2509_v19 = vmul.f32 %v6419_v50, %v2466_v51  ;;  %v2510_v2 = vmul.f32 %v6419_v50, %v2467_v53 }
 0xaa3   : > { %v2532_v58 = vpack.c.bf16 %v2506_v21, %v2505_v30  ;;  %v2511_v16 = vmul.f32 %v6419_v50, %v2468_v25  ;;  %v2512_v45 = vmul.f32 %v6419_v50, %v2469_v49  ;;  %v2533_v28 = vpack.c.bf16 %v2508_v55, %v2507_v61  ;;  %v6519_v61 = vld [vmem:[#allocation10] sm:$0xff] }
 0xaa4   : > { %2617 = vmatmul.bf16.vlgmr.msra.gmra.mxu1 %v2527_v31  ;;  %v2513_v5 = vmul.f32 %v6419_v50, %v2470_v18  ;;  %v2514_v56 = vmul.f32 %v6419_v50, %v2471_v44  ;;  %v2515_v29 = vmul.f32 %v6419_v50, %v2472_v11  ;;  %v2534_v40 = vpack.c.bf16 %v2510_v2, %v2509_v19 }
 0xaa5   : > { %v2535_v9 = vpack.c.bf16 %v2512_v45, %v2511_v16  ;;  %v2516_v27 = vmul.f32 %v6419_v50, %v2473_v35  ;;  %v2517_v51 = vmul.f32 %v6419_v50, %v2474_v37  ;;  %v2518_v53 = vmul.f32 %v6419_v50, %v2475_v33 }
 0xaa6   : > { %v2536_v31 = vpack.c.bf16 %v2514_v56, %v2513_v5  ;;  %v6464_v25 = vmul.f32 %v6419_v50, %v2476_v4  ;;  %v2520_v49 = vmul.f32 %v6419_v50, %v2477_v63  ;;  %v6471_v18 = vmul.f32 %v6419_v50, %v2478_v22 }
 0xaa7   : > { %v2537_v42 = vpack.c.bf16 %v2516_v27, %v2515_v29  ;;  %v2522_v44 = vmul.f32 %v6419_v50, %v2479_v17  ;;  %v6481_v11 = vmul.f32 %v6419_v50, %v2480_v3  ;;  %v2538_v35 = vpack.c.bf16 %v2518_v53, %v2517_v51 }
 0xaa8   : > { %v2539_v37 = vpack.c.bf16 %v2520_v49, %v6464_v25  ;;  %v2524_v23 = vmul.f32 %v6419_v50, %v2481_v20  ;;  %v6492_v8 = vmul.f32 %v6419_v50, %v2482_v0  ;;  %v2526_v43 = vmul.f32 %v6419_v50, %v2483_v54 }
 0xaa9   : > { %v2540_v22 = vpack.c.bf16 %v2522_v44, %v6471_v18  ;;  %v2454_v17 = vsub.f32 %v6165_v47, %v6386_v32  ;;  %v2498_v0 = vmul.f32 %v6419_v50, %v2455_v24  ;;  %v2457_v54 = vsub.f32 %v6184_v7, %v6386_v32 }
 0xaaa   : > { %v2541_v3 = vpack.c.bf16 %v2524_v23, %v6481_v11  ;;  %v2542_v48 = vpack.c.bf16 %v2526_v43, %v6492_v8  ;;  %v2499_v47 = vmul.f32 %v6419_v50, %v2456_v10  ;;  %v2458_v4 = vsub.f32 %v6192_v39, %v6386_v32 }
 0xaab   : > { %v2497_v20 = vmul.f32 %v6419_v50, %v2454_v17  ;;  %v2500_v38 = vmul.f32 %v6419_v50, %v2457_v54  ;;  %v2459_v63 = vsub.f32 %v6202_v52, %v6386_v32  ;;  %v6522_v55 = vperm.slane %v6519_v61, 3 }
 0xaac   : > { %v2501_v30 = vmul.f32 %v6419_v50, %v2458_v4 }
 0xaad   : > { %v2528_v33 = vpack.c.bf16 %v2498_v0, %v2497_v20  ;;  %v2529_v36 = vpack.c.bf16 %v2500_v38, %v2499_v47  ;;  %v2502_v21 = vmul.f32 %v6419_v50, %v2459_v63 }
 0xaaf   : > { %v2530_v41 = vpack.c.bf16 %v2502_v21, %v2501_v30 }
 0xab4   : > { %2622 = vmatmul.bf16.gmra.mxu1 %v2528_v33 }
 0xac4   : > { %2627 = vmatmul.bf16.gmra.mxu1 %v2529_v36 }
 0xad4   : > { %2632 = vmatmul.bf16.gmra.mxu1 %v2530_v41 }
 0xae4   : > { %2637 = vmatmul.bf16.gmra.mxu1 %v2531_v46 }
 0xaf4   : > { %2642 = vmatmul.bf16.gmra.mxu1 %v2532_v58 }
 0xb04   : > { %2647 = vmatmul.bf16.gmra.mxu1 %v2533_v28 }
 0xb14   : > { %2652 = vmatmul.bf16.gmra.mxu1 %v2534_v40 }
 0xb21   : > { %v2618_v7 = vpop.f32.mrf.mxu1 }
 0xb22   : > { %v2619_v52 = vadd.f32 %v2618_v7, %v6522_v55 }
 0xb24   : > { %2657 = vmatmul.bf16.gmra.mxu1 %v2535_v9 }
 0xb29   : > { %v2620_v39 = vpop.f32.mrf.mxu1 }
 0xb2a   : > { %v2621_v32 = vadd.f32 %v2620_v39, %v6522_v55 }
 0xb2c   : > { %v2698_v19 = vpack.c.bf16 %v2621_v32, %v2619_v52 }
 0xb31   : > { %v2623_v50 = vpop.f32.mrf.mxu1 }
 0xb32   : > { %v2624_v46 = vadd.f32 %v2623_v50, %v6522_v55 }
 0xb34   : > { %2662 = vmatmul.bf16.gmra.mxu1 %v2536_v31 }
 0xb39   : > { %v2625_v2 = vpop.f32.mrf.mxu1 }
 0xb3a   : > { %v2626_v58 = vadd.f32 %v2625_v2, %v6522_v55 }
 0xb3c   : > { %v2699_v16 = vpack.c.bf16 %v2626_v58, %v2624_v46 }
 0xb41   : > { %v2628_v45 = vpop.f32.mrf.mxu1 }
 0xb42   : > { %v2629_v5 = vadd.f32 %v2628_v45, %v6522_v55 }
 0xb44   : > { %2667 = vmatmul.bf16.gmra.mxu1 %v2537_v42 }
 0xb49   : > { %v2630_v28 = vpop.f32.mrf.mxu1 }
 0xb4a   : > { %v2631_v56 = vadd.f32 %v2630_v28, %v6522_v55 }
 0xb4c   : > { %v2700_v29 = vpack.c.bf16 %v2631_v56, %v2629_v5 }
 0xb51   : > { %v2633_v40 = vpop.f32.mrf.mxu1 }
 0xb52   : > { %v2634_v27 = vadd.f32 %v2633_v40, %v6522_v55 }
 0xb54   : > { %2672 = vmatmul.bf16.gmra.mxu1 %v2538_v35 }
 0xb59   : > { %v2635_v9 = vpop.f32.mrf.mxu1 }
 0xb5a   : > { %v2636_v51 = vadd.f32 %v2635_v9, %v6522_v55 }
 0xb5c   : > { %v2701_v31 = vpack.c.bf16 %v2636_v51, %v2634_v27 }
 0xb61   : > { %v2638_v53 = vpop.f32.mrf.mxu1 }
 0xb62   : > { %v2639_v33 = vadd.f32 %v2638_v53, %v6522_v55 }
 0xb64   : > { %2677 = vmatmul.bf16.gmra.mxu1 %v2539_v37 }
 0xb69   : > { %v2640_v25 = vpop.f32.mrf.mxu1 }
 0xb71   : > { %v2643_v49 = vpop.f32.mrf.mxu1 }
 0xb74   : > { %2682 = vmatmul.bf16.gmra.mxu1 %v2540_v22 }
 0xb79   : > { %v2645_v42 = vpop.f32.mrf.mxu1 }
 0xb7a   : > { %v2646_v37 = vadd.f32 %v2645_v42, %v6522_v55 }
 0xb81   : > { %v2648_v18 = vpop.f32.mrf.mxu1 }
 0xb82   : > { %v2649_v24 = vadd.f32 %v2648_v18, %v6522_v55  ;;  %v7163_v18 = vld [vmem:[#allocation19_spill] sm:$0xff] }
 0xb84   : > { %2687 = vmatmul.bf16.gmra.mxu1 %v2541_v3  ;;  %v2644_v3 = vadd.f32 %v2643_v49, %v6522_v55 }
 0xb86   : > { %v2703_v0 = vpack.c.bf16 %v2646_v37, %v2644_v3  ;;  %v7173_v3 = vld [vmem:[#allocation27_spill] sm:$0xff] }
 0xb89   : > { %v2650_v44 = vpop.f32.mrf.mxu1 }
 0xb8a   : > { %v2651_v43 = vadd.f32 %v2650_v44, %v6522_v55  ;;  %v7165_v44 = vld [vmem:[#allocation20_spill] sm:$0xff] }
 0xb8c   : > { %v2704_v22 = vpack.c.bf16 %v2651_v43, %v2649_v24  ;;  %v7171_v43 = vld [vmem:[#allocation25_spill] sm:$0xff]  ;;  %v7172_v24 = vld [vmem:[#allocation32_spill] sm:$0xff] }
 0xb91   : > { %v2653_v11 = vpop.f32.mrf.mxu1 }
 0xb92   : > { %v2654_v35 = vadd.f32 %v2653_v11, %v6522_v55  ;;  %v7166_v11 = vld [vmem:[#allocation28_spill] sm:$0xff] }
 0xb94   : > { %2692 = vmatmul.bf16.gmra.mxu1 %v2542_v48  ;;  %v2641_v48 = vadd.f32 %v2640_v25, %v6522_v55 }
 0xb96   : > { %v2702_v10 = vpack.c.bf16 %v2641_v48, %v2639_v33 }
 0xb99   : > { %v2655_v23 = vpop.f32.mrf.mxu1 }
 0xb9a   : > { %v2656_v8 = vadd.f32 %v2655_v23, %v6522_v55  ;;  %v7168_v23 = vld [vmem:[#allocation22_spill] sm:$0xff] }
 0xb9c   : > { %v2705_v17 = vpack.c.bf16 %v2656_v8, %v2654_v35  ;;  %v7170_v8 = vld [vmem:[#allocation30_spill] sm:$0xff] }
 0xb9e   : > { %2715 = vmatpush.bf16.msra.mxu2 %v2705_v17 }
 0xba1   : > { %v2658_v20 = vpop.f32.mrf.mxu1 }
 0xba2   : > { %2716 = vmatpush.bf16.msra.mxu2 %v2704_v22  ;;  %v2659_v47 = vadd.f32 %v2658_v20, %v6522_v55  ;;  %v6579_v22 = vperm.slane %v6519_v61, 7  ;;  %v7175_v61 = vld [vmem:[#allocation29_spill] sm:$0xff] }
 0xba6   : > { %2717 = vmatpush.bf16.msra.mxu2 %v2703_v0  ;;  %v7174_v0 = vld [vmem:[#allocation34_spill] sm:$0xff] }
 0xba9   : > { %v2660_v54 = vpop.f32.mrf.mxu1 }
 0xbaa   : > { %v2661_v38 = vadd.f32 %v2660_v54, %v6522_v55  ;;  %2718 = vmatpush.bf16.msra.mxu2 %v2702_v10 }
 0xbac   : > { %v2706_v36 = vpack.c.bf16 %v2661_v38, %v2659_v47 }
 0xbae   : > { %2719 = vmatpush.bf16.msra.mxu2 %v2701_v31 }
 0xbb1   : > { %v2663_v4 = vpop.f32.mrf.mxu1 }
 0xbb2   : > { %2720 = vmatpush.bf16.msra.mxu2 %v2700_v29  ;;  %v2664_v30 = vadd.f32 %v2663_v4, %v6522_v55 }
 0xbb6   : > { %2721 = vmatpush.bf16.msra.mxu2 %v2699_v16 }
 0xbb9   : > { %v2665_v63 = vpop.f32.mrf.mxu1 }
 0xbba   : > { %v2666_v21 = vadd.f32 %v2665_v63, %v6522_v55  ;;  %2722 = vmatpush.bf16.msra.mxu2 %v2698_v19 }
 0xbbc   : > { %v2707_v41 = vpack.c.bf16 %v2666_v21, %v2664_v30  ;;  %v7176_v30 = vld [vmem:[#allocation36_spill] sm:$0xff] }
 0xbbd   : > { %2723 = vmatmul.bf16.vlgmr.msra.gmra.mxu2 %v4871_v62 }
 0xbc1   : > { %v2668_v7 = vpop.f32.mrf.mxu1 }
 0xbc2   : > { %v2669_v52 = vadd.f32 %v2668_v7, %v6522_v55 }
 0xbc9   : > { %v2670_v39 = vpop.f32.mrf.mxu1 }
 0xbca   : > { %v2671_v32 = vadd.f32 %v2670_v39, %v6522_v55 }
 0xbcc   : > { %v2708_v50 = vpack.c.bf16 %v2671_v32, %v2669_v52 }
 0xbcd   : > { %2728 = vmatmul.bf16.gmra.mxu2 %v4883_v12 }
 0xbd1   : > { %v2673_v2 = vpop.f32.mrf.mxu1 }
 0xbd2   : > { %v2674_v58 = vadd.f32 %v2673_v2, %v6522_v55  ;;  %v7177_v2 = vld [vmem:[#allocation31_spill] sm:$0xff] }
 0xbd9   : > { %v2675_v46 = vpop.f32.mrf.mxu1 }
 0xbda   : > { %v2676_v16 = vadd.f32 %v2675_v46, %v6522_v55 }
 0xbdc   : > { %v2709_v45 = vpack.c.bf16 %v2676_v16, %v2674_v58 }
 0xbdd   : > { %2733 = vmatmul.bf16.gmra.mxu2 %v4896_v14 }
 0xbe1   : > { %v2678_v19 = vpop.f32.mrf.mxu1 }
 0xbe2   : > { %v2679_v49 = vadd.f32 %v2678_v19, %v6522_v55 }
 0xbe9   : > { %v2680_v62 = vpop.f32.mrf.mxu1 }
 0xbed   : > { %2738 = vmatmul.bf16.gmra.mxu2 %v4908_v60 }
 0xbf1   : > { %v2683_v28 = vpop.f32.mrf.mxu1 }
 0xbf2   : > { %v2684_v53 = vadd.f32 %v2683_v28, %v6522_v55 }
 0xbf9   : > { %v2685_v5 = vpop.f32.mrf.mxu1 }
 0xbfd   : > { %2743 = vmatmul.bf16.gmra.mxu2 %v4918_v6  ;;  %v2686_v6 = vadd.f32 %v2685_v5, %v6522_v55 }
 0xbff   : > { %v2711_v25 = vpack.c.bf16 %v2686_v6, %v2684_v53  ;;  %v7179_v6 = vld [vmem:[#allocation35_spill] sm:$0xff] }
 0xc01   : > { %v2688_v56 = vpop.f32.mrf.mxu1 }
 0xc02   : > { %v2689_v60 = vadd.f32 %v2688_v56, %v6522_v55  ;;  %v7178_v56 = vld [vmem:[#allocation33_spill] sm:$0xff] }
 0xc09   : > { %v2690_v29 = vpop.f32.mrf.mxu1 }
 0xc0a   : > { %v2691_v14 = vadd.f32 %v2690_v29, %v6522_v55 }
 0xc0c   : > { %v2712_v31 = vpack.c.bf16 %v2691_v14, %v2689_v60 }
 0xc0d   : > { %2748 = vmatmul.bf16.gmra.mxu2 %v4928_v15  ;;  %v2681_v15 = vadd.f32 %v2680_v62, %v6522_v55 }
 0xc0f   : > { %v2710_v42 = vpack.c.bf16 %v2681_v15, %v2679_v49 }
 0xc11   : > { %v2693_v12 = vpop.f32.mrf.mxu1 }
 0xc12   : > { %v2694_v9 = vadd.f32 %v2693_v12, %v6522_v55 }
 0xc19   : > { %v2695_v40 = vpop.f32.mrf.mxu1 }
 0xc1a   : > { %v2696_v27 = vadd.f32 %v2695_v40, %v6522_v55  ;;  %v7164_v55 = vld [vmem:[#allocation26_spill] sm:$0xff] }
 0xc1c   : > { %v2713_v51 = vpack.c.bf16 %v2696_v27, %v2694_v9 }
 0xc1d   : > { %2753 = vmatmul.bf16.gmra.mxu2 %v4938_v34  ;;  %v7162_v34 = vld [vmem:[#allocation24_spill] sm:$0xff] }
 0xc1e   : > { %2804 = vmatpush.bf16.msra.mxu3 %v2713_v51 }
 0xc22   : > { %2805 = vmatpush.bf16.msra.mxu3 %v2712_v31 }
 0xc26   : > { %2806 = vmatpush.bf16.msra.mxu3 %v2711_v25 }
 0xc2a   : > { %2807 = vmatpush.bf16.msra.mxu3 %v2710_v42 }
 0xc2d   : > { %2758 = vmatmul.bf16.gmra.mxu2 %v4948_v59  ;;  %v7167_v59 = vld [vmem:[#allocation21_spill] sm:$0xff] }
 0xc2e   : > { %2808 = vmatpush.bf16.msra.mxu3 %v2709_v45 }
 0xc32   : > { %2809 = vmatpush.bf16.msra.mxu3 %v2708_v50 }
 0xc36   : > { %2810 = vmatpush.bf16.msra.mxu3 %v2707_v41 }
 0xc3a   : > { %2811 = vmatpush.bf16.msra.mxu3 %v2706_v36 }
 0xc3d   : > { %2812 = vmatmul.bf16.vlgmr.msra.gmra.mxu3 %v4902_v13  ;;  %2763 = vmatmul.bf16.gmra.mxu2 %v4958_v26  ;;  %v7169_v13 = vld [vmem:[#allocation23_spill] sm:$0xff] }
 0xc40   : > { %v2724_v35 = vpop.f32.mrf.mxu2 }
 0xc41   : > { %v2725_v20 = vadd.f32 %v2724_v35, %v6579_v22 }
 0xc48   : > { %v2726_v26 = vpop.f32.mrf.mxu2 }
 0xc49   : > { %v2727_v54 = vadd.f32 %v2726_v26, %v6579_v22 }
 0xc4d   : > { %2817 = vmatmul.bf16.gmra.mxu3 %v4912_v57  ;;  %2768 = vmatmul.bf16.gmra.mxu2 %v7162_v34  ;;  %v7180_v34 = vld [vmem:[#allocation37_spill] sm:$0xff] }
 0xc50   : > { %v2729_v57 = vpop.f32.mrf.mxu2 }
 0xc51   : > { %v2730_v4 = vadd.f32 %v2729_v57, %v6579_v22 }
 0xc58   : > { %v2731_v17 = vpop.f32.mrf.mxu2 }
 0xc59   : > { %v2732_v7 = vadd.f32 %v2731_v17, %v6579_v22 }
 0xc5d   : > { %2822 = vmatmul.bf16.gmra.mxu3 %v7163_v18  ;;  %2773 = vmatmul.bf16.gmra.mxu2 %v7164_v55 }
 0xc60   : > { %v2734_v37 = vpop.f32.mrf.mxu2 }
 0xc61   : > { %v2735_v50 = vadd.f32 %v2734_v37, %v6579_v22 }
 0xc68   : > { %v2736_v48 = vpop.f32.mrf.mxu2 }
 0xc69   : > { %v2737_v45 = vadd.f32 %v2736_v48, %v6579_v22 }
 0xc6d   : > { %2827 = vmatmul.bf16.gmra.mxu3 %v7165_v44  ;;  %2778 = vmatmul.bf16.gmra.mxu2 %v7166_v11 }
 0xc70   : > { %v2739_v47 = vpop.f32.mrf.mxu2 }
 0xc71   : > { %v2740_v5 = vadd.f32 %v2739_v47, %v6579_v22 }
 0xc78   : > { %v2741_v63 = vpop.f32.mrf.mxu2 }
 0xc79   : > { %v2742_v9 = vadd.f32 %v2741_v63, %v6579_v22 }
 0xc7d   : > { %2832 = vmatmul.bf16.gmra.mxu3 %v7167_v59  ;;  %2783 = vmatmul.bf16.gmra.mxu2 %v7170_v8 }
 0xc80   : > { %v2744_v39 = vpop.f32.mrf.mxu2 }
 0xc81   : > { %v2745_v60 = vadd.f32 %v2744_v39, %v6579_v22 }
 0xc88   : > { %v6599_v46 = vpop.f32.mrf.mxu2 }
 0xc8d   : > { %2837 = vmatmul.bf16.gmra.mxu3 %v7168_v23  ;;  %2788 = vmatmul.bf16.gmra.mxu2 %v7172_v24 }
 0xc90   : > { %v2749_v19 = vpop.f32.mrf.mxu2 }
 0xc91   : > { %v2750_v42 = vadd.f32 %v2749_v19, %v6579_v22 }
 0xc98   : > { %v2751_v29 = vpop.f32.mrf.mxu2 }
 0xc99   : > { %v2752_v11 = vadd.f32 %v2751_v29, %v6579_v22 }
 0xc9d   : > { %2842 = vmatmul.bf16.gmra.mxu3 %v7169_v13  ;;  %2793 = vmatmul.bf16.gmra.mxu2 %v7174_v0  ;;  %v7181_v13 = vld [vmem:[#allocation38_spill] sm:$0xff] }
 0xca0   : > { %v2754_v27 = vpop.f32.mrf.mxu2 }
 0xca1   : > { %v2755_v35 = vadd.f32 %v2754_v27, %v6579_v22 }
 0xca8   : > { %v2756_v53 = vpop.f32.mrf.mxu2 }
 0xcad   : > { %2847 = vmatmul.bf16.gmra.mxu3 %v7171_v43  ;;  %2798 = vmatmul.bf16.gmra.mxu2 %v7176_v30  ;;  %v2757_v43 = vadd.f32 %v2756_v53, %v6579_v22 }
 0xcb0   : > { %v2759_v49 = vpop.f32.mrf.mxu2 }
 0xcb8   : > { %v2761_v44 = vpop.f32.mrf.mxu2 }
 0xcbd   : > { %2852 = vmatmul.bf16.gmra.mxu3 %v7173_v3  ;;  %v7182_v3 = vld [vmem:[#allocation39_spill] sm:$0xff] }
 0xcc0   : > { %v2813_v33 = vpop.f32.mrf.mxu3  ;;  %v2764_v26 = vpop.f32.mrf.mxu2 }
 0xcc1   : > { %v6584_v10 = vadd.f32 %v2813_v33, %v2725_v20  ;;  %v2760_v20 = vadd.f32 %v2759_v49, %v6579_v22 }
 0xcc8   : > { %v2815_v38 = vpop.f32.mrf.mxu3  ;;  %v2766_v24 = vpop.f32.mrf.mxu2 }
 0xcc9   : > { %v6587_v36 = vadd.f32 %v2815_v38, %v2727_v54  ;;  %v2762_v54 = vadd.f32 %v2761_v44, %v6579_v22 }
 0xccd   : > { %2857 = vmatmul.bf16.gmra.mxu3 %v7175_v61  ;;  %v2765_v61 = vadd.f32 %v2764_v26, %v6579_v22 }
 0xcd0   : > { %v2818_v21 = vpop.f32.mrf.mxu3  ;;  %v2769_v33 = vpop.f32.mrf.mxu2 }
 0xcd1   : > { %v6592_v41 = vadd.f32 %v2818_v21, %v2730_v4 }
 0xcd8   : > { %v2820_v52 = vpop.f32.mrf.mxu3  ;;  %v2771_v4 = vpop.f32.mrf.mxu2 }
 0xcd9   : > { %v6595_v32 = vadd.f32 %v2820_v52, %v2732_v7  ;;  %v2767_v7 = vadd.f32 %v2766_v24, %v6579_v22  ;;  %v2772_v19 = vadd.f32 %v2771_v4, %v6579_v22 }
 0xcdb   : > { %v6683_v44 = vmax.f32 %v6595_v32, 0.0 }
 0xcdd   : > { %2862 = vmatmul.bf16.gmra.mxu3 %v7177_v2 }
 0xce0   : > { %v2823_v58 = vpop.f32.mrf.mxu3  ;;  %v2774_v21 = vpop.f32.mrf.mxu2 }
 0xce1   : > { %v6601_v16 = vadd.f32 %v2823_v58, %v2735_v50  ;;  %v2770_v50 = vadd.f32 %v2769_v33, %v6579_v22  ;;  %v2775_v29 = vadd.f32 %v2774_v21, %v6579_v22 }
 0xce8   : > { %v2825_v62 = vpop.f32.mrf.mxu3  ;;  %v6647_v58 = vpop.f32.mrf.mxu2 }
 0xce9   : > { %v6604_v28 = vadd.f32 %v2825_v62, %v2737_v45 }
 0xceb   : > { %v6700_v26 = vmax.f32 %v6604_v28, 0.0 }
 0xced   : > { %2867 = vmatmul.bf16.gmra.mxu3 %v7178_v56  ;;  %v2968_v28 = vmul.f32 %v6700_v26, %v6700_v26 }
 0xcf0   : > { %v2828_v12 = vpop.f32.mrf.mxu3  ;;  %v6654_v56 = vpop.f32.mrf.mxu2 }
 0xcf1   : > { %v6608_v40 = vadd.f32 %v2828_v12, %v2740_v5 }
 0xcf3   : > { %v6708_v24 = vmax.f32 %v6608_v40, 0.0 }
 0xcf5   : > { %v2969_v40 = vmul.f32 %v6708_v24, %v6708_v24 }
 0xcf8   : > { %v2830_v14 = vpop.f32.mrf.mxu3  ;;  %v6659_v27 = vpop.f32.mrf.mxu2 }
 0xcf9   : > { %v6611_v51 = vadd.f32 %v2830_v14, %v2742_v9 }
 0xcfb   : > { %v6716_v33 = vmax.f32 %v6611_v51, 0.0 }
 0xcfd   : > { %2872 = vmatmul.bf16.gmra.mxu3 %v7179_v6  ;;  %v2970_v51 = vmul.f32 %v6716_v33, %v6716_v33 }
 0xd00   : > { %v2833_v31 = vpop.f32.mrf.mxu3 }
 0xd01   : > { %v6615_v15 = vadd.f32 %v2833_v31, %v2745_v60  ;;  %v6663_v60 = vpop.f32.mrf.mxu2  ;;  %v6668_v31 = vmax.f32 %v6587_v36, 0.0 }
 0xd08   : > { %v6617_v25 = vpop.f32.mrf.mxu3 }
 0xd09   : > { %v6672_v49 = vpop.f32.mrf.mxu2 }
 0xd0d   : > { %2877 = vmatmul.bf16.gmra.mxu3 %v7180_v34  ;;  %v6678_v34 = vmax.f32 %v6592_v41, 0.0 }
 0xd10   : > { %v2838_v18 = vpop.f32.mrf.mxu3 }
 0xd11   : > { %v6621_v55 = vadd.f32 %v2838_v18, %v2750_v42  ;;  %v6675_v42 = vmax.f32 %v6584_v10, 0.0  ;;  %v2964_v18 = vmul.f32 %v6668_v31, %v6668_v31  ;;  %v6692_v10 = vmax.f32 %v6601_v16, 0.0 }
 0xd13   : > { %v2963_v36 = vmul.f32 %v6675_v42, %v6675_v42  ;;  %v2967_v16 = vmul.f32 %v6692_v10, %v6692_v10 }
 0xd15   : > { %v2995_v41 = vadd.f32 %v2964_v18, %v2963_v36 }
 0xd18   : > { %v2840_v59 = vpop.f32.mrf.mxu3 }
 0xd19   : > { %v6624_v23 = vadd.f32 %v2840_v59, %v2752_v11  ;;  %v2965_v11 = vmul.f32 %v6678_v34, %v6678_v34  ;;  %v2925_v59 = vadd.f32 %v6668_v31, %v6675_v42 }
 0xd1b   : > { %v2926_v32 = vadd.f32 %v2925_v59, %v6678_v34 }
 0xd1d   : > { %2882 = vmatmul.bf16.gmra.mxu3 %v7181_v13 }
 0xd20   : > { %v2843_v8 = vpop.f32.mrf.mxu3 }
 0xd21   : > { %v6628_v57 = vadd.f32 %v2843_v8, %v2755_v35  ;;  %v2966_v35 = vmul.f32 %v6683_v44, %v6683_v44  ;;  %v2996_v8 = vadd.f32 %v2995_v41, %v2965_v11 }
 0xd28   : > { %v2845_v17 = vpop.f32.mrf.mxu3 }
 0xd29   : > { %v6631_v37 = vadd.f32 %v2845_v17, %v2757_v43  ;;  %v6702_v43 = vpop.f32.mrf.mxu2  ;;  %v2927_v17 = vadd.f32 %v2926_v32, %v6683_v44 }
 0xd2d   : > { %2887 = vmatmul.bf16.gmra.mxu3 %v7182_v3  ;;  %v2997_v3 = vadd.f32 %v2996_v8, %v2966_v35 }
 0xd30   : > { %v2848_v48 = vpop.f32.mrf.mxu3 }
 0xd31   : > { %v6635_v0 = vadd.f32 %v2848_v48, %v2760_v20  ;;  %v2747_v20 = vadd.f32 %v6599_v46, %v6579_v22  ;;  %v2928_v48 = vadd.f32 %v2927_v17, %v6692_v10 }
 0xd33   : > { %v2929_v4 = vadd.f32 %v2928_v48, %v6700_v26 }
 0xd35   : > { %v2930_v21 = vadd.f32 %v2929_v4, %v6708_v24 }
 0xd38   : > { %v2850_v47 = vpop.f32.mrf.mxu3 }
 0xd39   : > { %v6638_v38 = vadd.f32 %v2850_v47, %v2762_v54  ;;  %v2836_v54 = vadd.f32 %v6617_v25, %v2747_v20  ;;  %v2998_v47 = vadd.f32 %v2997_v3, %v2967_v16 }
 0xd40   : > { %v2853_v63 = vpop.f32.mrf.mxu3 }
 0xd41   : > { %v6641_v30 = vadd.f32 %v2853_v63, %v2765_v61  ;;  %v6723_v61 = vmax.f32 %v6615_v15, 0.0  ;;  %v2999_v63 = vadd.f32 %v2998_v47, %v2968_v28  ;;  %v6738_v15 = vpop.f32.mrf.mxu2  ;;  %v6770_v28 = vmax.f32 %v6638_v38, 0.0 }
 0xd43   : > { %v3000_v25 = vadd.f32 %v2999_v63, %v2969_v40  ;;  %v6776_v40 = vmax.f32 %v6641_v30, 0.0  ;;  %v2777_v30 = vadd.f32 %v6647_v58, %v6579_v22 }
 0xd48   : > { %v2855_v39 = vpop.f32.mrf.mxu3 }
 0xd49   : > { %v6644_v52 = vadd.f32 %v2855_v39, %v2767_v7  ;;  %v6730_v7 = vmax.f32 %v2836_v54, 0.0  ;;  %v2931_v39 = vadd.f32 %v2930_v21, %v6716_v33 }
 0xd4b   : > { %v6782_v38 = vmax.f32 %v6644_v52, 0.0 }
 0xd4d   : > { %v2980_v52 = vmul.f32 %v6782_v38, %v6782_v38 }
 0xd50   : > { %v2858_v2 = vpop.f32.mrf.mxu3 }
 0xd51   : > { %v6649_v45 = vadd.f32 %v2858_v2, %v2770_v50  ;;  %v2971_v50 = vmul.f32 %v6723_v61, %v6723_v61  ;;  %v6736_v2 = vmax.f32 %v6621_v55, 0.0  ;;  %v6750_v55 = vmax.f32 %v6628_v57, 0.0 }
 0xd52   : > { %v6764_v57 = vmax.f32 %v6635_v0, 0.0 }
 0xd53   : > { %v2973_v11 = vmul.f32 %v6736_v2, %v6736_v2  ;;  %v2975_v16 = vmul.f32 %v6750_v55, %v6750_v55 }
 0xd54   : > { %v2977_v4 = vmul.f32 %v6764_v57, %v6764_v57 }
 0xd58   : > { %v2860_v62 = vpop.f32.mrf.mxu3 }
 0xd59   : > { %v6652_v5 = vadd.f32 %v2860_v62, %v2772_v19  ;;  %v3001_v19 = vadd.f32 %v3000_v25, %v2970_v51  ;;  %v2932_v62 = vadd.f32 %v2931_v39, %v6723_v61  ;;  %v2978_v51 = vmul.f32 %v6770_v28, %v6770_v28 }
 0xd5b   : > { %v3002_v18 = vadd.f32 %v3001_v19, %v2971_v50  ;;  %v2933_v36 = vadd.f32 %v2932_v62, %v6730_v7  ;;  %v2979_v50 = vmul.f32 %v6776_v40, %v6776_v40  ;;  %v6788_v19 = vmax.f32 %v6649_v45, 0.0 }
 0xd5c   : > { %v2780_v62 = vadd.f32 %v6654_v56, %v6579_v22  ;;  %v2782_v56 = vadd.f32 %v6659_v27, %v6579_v22 }
 0xd5d   : > { %v2934_v35 = vadd.f32 %v2933_v36, %v6736_v2  ;;  %v6798_v36 = vmax.f32 %v6652_v5, 0.0  ;;  %v2981_v58 = vmul.f32 %v6788_v19, %v6788_v19  ;;  %v2785_v5 = vadd.f32 %v6663_v60, %v6579_v22 }
 0xd60   : > { %v2863_v12 = vpop.f32.mrf.mxu3 }
 0xd61   : > { %v6657_v9 = vadd.f32 %v2863_v12, %v2775_v29  ;;  %v2972_v29 = vmul.f32 %v6730_v7, %v6730_v7  ;;  %v6744_v12 = vmax.f32 %v6624_v23, 0.0  ;;  %v6758_v23 = vmax.f32 %v6631_v37, 0.0  ;;  %v2794_v37 = vpop.f32.mrf.mxu2 }
 0xd63   : > { %v3003_v41 = vadd.f32 %v3002_v18, %v2972_v29  ;;  %v2974_v32 = vmul.f32 %v6744_v12, %v6744_v12  ;;  %v2935_v17 = vadd.f32 %v2934_v35, %v6744_v12  ;;  %v2976_v48 = vmul.f32 %v6758_v23, %v6758_v23 }
 0xd64   : > { %v6805_v35 = vmax.f32 %v6657_v9, 0.0 }
 0xd65   : > { %v3004_v8 = vadd.f32 %v3003_v41, %v2973_v11  ;;  %v2936_v3 = vadd.f32 %v2935_v17, %v6750_v55 }
 0xd67   : > { %v3005_v20 = vadd.f32 %v3004_v8, %v2974_v32  ;;  %v2937_v47 = vadd.f32 %v2936_v3, %v6758_v23 }
 0xd68   : > { %v6661_v14 = vpop.f32.mrf.mxu3 }
 0xd69   : > { %v3006_v54 = vadd.f32 %v3005_v20, %v2975_v16  ;;  %v2938_v21 = vadd.f32 %v2937_v47, %v6764_v57  ;;  %v2866_v11 = vadd.f32 %v6661_v14, %v2777_v30  ;;  %v2796_v8 = vpop.f32.mrf.mxu2  ;;  %v2982_v20 = vmul.f32 %v6798_v36, %v6798_v36 }
 0xd6a   : > { %v2787_v47 = vadd.f32 %v6672_v49, %v6579_v22 }
 0xd6b   : > { %v3007_v63 = vadd.f32 %v3006_v54, %v2976_v48  ;;  %v2939_v39 = vadd.f32 %v2938_v21, %v6770_v28  ;;  %v6815_v3 = vmax.f32 %v2866_v11, 0.0 }
 0xd6d   : > { %v3008_v25 = vadd.f32 %v3007_v63, %v2977_v4  ;;  %v2940_v18 = vadd.f32 %v2939_v39, %v6776_v40  ;;  %v2790_v4 = vadd.f32 %v6702_v43, %v6579_v22  ;;  %v2792_v43 = vadd.f32 %v6738_v15, %v6579_v22 }
 0xd6f   : > { %v3009_v29 = vadd.f32 %v3008_v25, %v2978_v51  ;;  %v2941_v45 = vadd.f32 %v2940_v18, %v6782_v38 }
 0xd70   : > { %v6665_v6 = vpop.f32.mrf.mxu3 }
 0xd71   : > { %v3010_v41 = vadd.f32 %v3009_v29, %v2979_v50  ;;  %v2869_v32 = vadd.f32 %v6665_v6, %v2780_v62  ;;  %v2942_v16 = vadd.f32 %v2941_v45, %v6788_v19  ;;  %v2983_v6 = vmul.f32 %v6805_v35, %v6805_v35  ;;  %v2799_v11 = vpop.f32.mrf.mxu2 }
 0xd72   : > { %v2795_v29 = vadd.f32 %v2794_v37, %v6579_v22 }
 0xd73   : > { %v3011_v14 = vadd.f32 %v3010_v41, %v2980_v52  ;;  %v2943_v27 = vadd.f32 %v2942_v16, %v6798_v36  ;;  %v6821_v54 = vmax.f32 %v2869_v32, 0.0 }
 0xd75   : > { %v3012_v48 = vadd.f32 %v3011_v14, %v2981_v58  ;;  %v2944_v21 = vadd.f32 %v2943_v27, %v6805_v35 }
 0xd77   : > { %v3013_v63 = vadd.f32 %v3012_v48, %v2982_v20  ;;  %v2945_v50 = vadd.f32 %v2944_v21, %v6815_v3 }
 0xd78   : > { %v6670_v53 = vpop.f32.mrf.mxu3 }
 0xd79   : > { %v2871_v9 = vadd.f32 %v6670_v53, %v2782_v56  ;;  %v2984_v53 = vmul.f32 %v6815_v3, %v6815_v3  ;;  %v3014_v39 = vadd.f32 %v3013_v63, %v2983_v6  ;;  %v2946_v52 = vadd.f32 %v2945_v50, %v6821_v54 }
 0xd7b   : > { %v6831_v51 = vmax.f32 %v2871_v9, 0.0  ;;  %v3015_v18 = vadd.f32 %v3014_v39, %v2984_v53  ;;  %v2801_v53 = vpop.f32.mrf.mxu2 }
 0xd7d   : > { %v2947_v56 = vadd.f32 %v2946_v52, %v6831_v51 }
 0xd80   : > { %v6696_v13 = vpop.f32.mrf.mxu3 }
 0xd81   : > { %v2874_v60 = vadd.f32 %v6696_v13, %v2785_v5  ;;  %v2985_v13 = vmul.f32 %v6821_v54, %v6821_v54  ;;  %v2800_v5 = vadd.f32 %v2799_v11, %v6579_v22 }
 0xd83   : > { %v6837_v49 = vmax.f32 %v2874_v60, 0.0  ;;  %v3016_v58 = vadd.f32 %v3015_v18, %v2985_v13 }
 0xd85   : > { %v2987_v15 = vmul.f32 %v6837_v49, %v6837_v49  ;;  %v2948_v16 = vadd.f32 %v2947_v56, %v6837_v49 }
 0xd88   : > { %v6725_v46 = vpop.f32.mrf.mxu3 }
 0xd89   : > { %v2876_v25 = vadd.f32 %v6725_v46, %v2787_v47  ;;  %v2986_v46 = vmul.f32 %v6831_v51, %v6831_v51 }
 0xd8b   : > { %v6846_v41 = vmax.f32 %v2876_v25, 0.0  ;;  %v3017_v14 = vadd.f32 %v3016_v58, %v2986_v46 }
 0xd8d   : > { %v2988_v20 = vmul.f32 %v6846_v41, %v6846_v41  ;;  %v3018_v48 = vadd.f32 %v3017_v14, %v2987_v15  ;;  %v2949_v6 = vadd.f32 %v2948_v16, %v6846_v41 }
 0xd8f   : > { %v3019_v47 = vadd.f32 %v3018_v48, %v2988_v20 }
 0xd90   : > { %v6752_v59 = vpop.f32.mrf.mxu3 }
 0xd91   : > { %v2879_v62 = vadd.f32 %v6752_v59, %v2790_v4  ;;  %v2797_v59 = vadd.f32 %v2796_v8, %v6579_v22 }
 0xd93   : > { %v6851_v32 = vmax.f32 %v2879_v62, 0.0 }
 0xd95   : > { %v2989_v60 = vmul.f32 %v6851_v32, %v6851_v32  ;;  %v2950_v4 = vadd.f32 %v2949_v6, %v6851_v32 }
 0xd97   : > { %v3020_v25 = vadd.f32 %v3019_v47, %v2989_v60 }
 0xd98   : > { %v2880_v0 = vpop.f32.mrf.mxu3 }
 0xd99   : > { %v2881_v45 = vadd.f32 %v2880_v0, %v2792_v43 }
 0xd9b   : > { %v6858_v0 = vmax.f32 %v2881_v45, 0.0 }
 0xd9d   : > { %v2990_v63 = vmul.f32 %v6858_v0, %v6858_v0  ;;  %v2951_v39 = vadd.f32 %v2950_v4, %v6858_v0 }
 0xda0   : > { %v2883_v17 = vpop.f32.mrf.mxu3 }
 0xda1   : > { %v2884_v37 = vadd.f32 %v2883_v17, %v2795_v29  ;;  %v2802_v29 = vadd.f32 %v2801_v53, %v6579_v22 }
 0xda3   : > { %v6863_v8 = vmax.f32 %v2884_v37, 0.0 }
 0xda5   : > { %v2991_v50 = vmul.f32 %v6863_v8, %v6863_v8  ;;  %v2952_v43 = vadd.f32 %v2951_v39, %v6863_v8 }
 0xda8   : > { %v2885_v30 = vpop.f32.mrf.mxu3 }
 0xda9   : > { %v2886_v9 = vadd.f32 %v2885_v30, %v2797_v59  ;;  %v3021_v30 = vadd.f32 %v3020_v25, %v2990_v63 }
 0xdab   : > { %v6868_v21 = vmax.f32 %v2886_v9, 0.0  ;;  %v3022_v52 = vadd.f32 %v3021_v30, %v2991_v50 }
 0xdad   : > { %v2992_v62 = vmul.f32 %v6868_v21, %v6868_v21  ;;  %v2953_v46 = vadd.f32 %v2952_v43, %v6868_v21 }
 0xdaf   : > { %v3023_v58 = vadd.f32 %v3022_v52, %v2992_v62  ;;  %v3111_v62 = vld [vmem:[%s4518_s28] sm:$0xf] }
 0xdb0   : > { %v2888_v27 = vpop.f32.mrf.mxu3 }
 0xdb1   : > { %v2889_v17 = vadd.f32 %v2888_v27, %v2800_v5 }
 0xdb3   : > { %v6873_v13 = vmax.f32 %v2889_v17, 0.0 }
 0xdb5   : > { %v2993_v11 = vmul.f32 %v6873_v13, %v6873_v13  ;;  %v2954_v56 = vadd.f32 %v2953_v46, %v6873_v13 }
 0xdb7   : > { %v3024_v59 = vadd.f32 %v3023_v58, %v2993_v11 }
 0xdb8   : > { %v2890_v18 = vpop.f32.mrf.mxu3 }
 0xdb9   : > { %v2891_v45 = vadd.f32 %v2890_v18, %v2802_v29  ;;  %v3112_v29 = vunpack.c.l.bf16 %v3111_v62 }
 0xdbb   : > { %v2924_v15 = vmax.f32 %v2891_v45, 0.0  ;;  %3114 = vst [vmem:[#allocation1] ss:$2 sm:$0xff] %v3112_v29 }
 0xdbd   : > { %v2955_v37 = vadd.f32 %v2954_v56, %v2924_v15  ;;  %v2994_v5 = vmul.f32 %v2924_v15, %v2924_v15 }
 0xdbf   : > { %v2956_v14 = vrot.slane %v2955_v37, 4  ;;  %v3025_v16 = vadd.f32 %v3024_v59, %v2994_v5 }
 0xdc1   : > { %v2957_v20 = vadd.f32 %v2956_v14, %v2955_v37  ;;  %v3026_v9 = vrot.slane %v3025_v16, 4 }
 0xdc2   : > { %v3115_v11 = vld.sshfl [vmem:[#allocation1] sm:$0xff pattern:$0x75316420]  ;;  %v3116_v45 = vld.sshfl [vmem:[#allocation1 + $0x8] sm:$0xff pattern:$0x75316420] }
 0xdc3   : > { %v2958_v22 = vrot.slane %v2957_v20, 2  ;;  %v3027_v48 = vadd.f32 %v3026_v9, %v3025_v16  ;;  %v3120_v56 = vsel %vm3119_vm13, %v3115_v11, 0.0  ;;  %3142 = vst [vmem:[#allocation1] ss:$4 sm:$0xff] %v3111_v62 }
 0xdc5   : > { %v2959_v27 = vadd.f32 %v2958_v22, %v2957_v20  ;;  %v3028_v6 = vrot.slane %v3027_v48, 2 }
 0xdc7   : > { %v2960_v60 = vrot.slane %v2959_v27, 1  ;;  %v3029_v17 = vadd.f32 %v3028_v6, %v3027_v48 }
 0xdc9   : > { %v2961_v47 = vadd.f32 %v2960_v60, %v2959_v27  ;;  %v3030_v4 = vrot.slane %v3029_v17, 1 }
 0xdcb   : > { %v6884_v63 = vmul.f32 %v2961_v47, %v4716_v1  ;;  %v3031_v53 = vadd.f32 %v3030_v4, %v3029_v17 }
 0xdcd   : > { %v3032_v25 = vmul.f32 %v3031_v53, %v4716_v1  ;;  %v3033_v39 = vmul.f32 %v6884_v63, %v6884_v63  ;;  %v3121_v1 = vsel %vm3119_vm13, %v3116_v45, 0.0  ;;  %v3067_v5 = vsub.f32 %v2924_v15, %v6884_v63 }
 0xdce   : > { %v3122_v59 = vadd.f32 %v3121_v1, %v3120_v56  ;;  %v3048_v16 = vsub.f32 %v6750_v55, %v6884_v63  ;;  %v3050_v20 = vsub.f32 %v6764_v57, %v6884_v63  ;;  %v3051_v9 = vsub.f32 %v6770_v28, %v6884_v63 }
 0xdcf   : > { %v3034_v50 = vsub.f32 %v3032_v25, %v3033_v39  ;;  %v3066_v22 = vsub.f32 %v6873_v13, %v6884_v63  ;;  %v3049_v15 = vsub.f32 %v6758_v23, %v6884_v63  ;;  %v3064_v27 = vsub.f32 %v6863_v8, %v6884_v63  ;;  %v3958_v13 = vld [vmem:[#allocation8 + $0x138] sm:$0xff] }
 0xdd0   : > { %3123 = vadd.xlane.f32.xlu0 %v3122_v59  ;;  %v3065_v55 = vsub.f32 %v6868_v21, %v6884_v63  ;;  %3256 = vmatpush.bf16.msrb.mxu2 %v3958_v13  ;;  %v3957_v21 = vld [vmem:[#allocation8 + $0x130] sm:$0xff]  ;;  %v3046_v25 = vsub.f32 %v6736_v2, %v6884_v63  ;;  %v3047_v39 = vsub.f32 %v6744_v12, %v6884_v63  ;;  %v3956_v12 = vld [vmem:[#allocation8 + $0x128] sm:$0xff] }
 0xdd1   : > { %v3035_v30 = vmax.f32 %v3034_v50, 0.0  ;;  %v3062_v50 = vsub.f32 %v6851_v32, %v6884_v63  ;;  %v3044_v32 = vsub.f32 %v6723_v61, %v6884_v63  ;;  %v3061_v11 = vsub.f32 %v6846_v41, %v6884_v63 }
 0xdd2   : > { %v3043_v41 = vsub.f32 %v6716_v33, %v6884_v63  ;;  %v3954_v33 = vld [vmem:[#allocation8 + $0x118] sm:$0xff]  ;;  %v3054_v13 = vsub.f32 %v6788_v19, %v6884_v63  ;;  %v3037_v19 = vsub.f32 %v6668_v31, %v6884_v63 }
 0xdd3   : > { %v3068_v43 = vadd.f32 1e-05, %v3035_v30  ;;  %v3063_v30 = vsub.f32 %v6858_v0, %v6884_v63  ;;  %v3045_v0 = vsub.f32 %v6730_v7, %v6884_v63  ;;  %v3955_v7 = vld [vmem:[#allocation8 + $0x120] sm:$0xff] }
 0xdd4   : > { %3257 = vmatpush.bf16.msrb.mxu2 %v3957_v21  ;;  %v3053_v21 = vsub.f32 %v6782_v38, %v6884_v63  ;;  %v3144_v38 = vld.sshfl [vmem:[#allocation1 + $0x8] sm:$0xff pattern:$0x73625140] }
 0xdd5   : > { %4060 = vrsqrt.f32 %v3068_v43  ;;  %vm3075_vm15 = vweird.f32 %v3068_v43 }
 0xdd8   : > { %3258 = vmatpush.bf16.msrb.mxu2 %v3956_v12  ;;  %v3965_v12 = vld [vmem:[#allocation8 + $0x170] sm:$0xff] }
 0xddb   : > { %v4061_v18 = vpop.eup %4060 }
 0xddc   : > { %v3070_v52 = vmul.f32 %v4061_v18, %v3068_v43  ;;  %vm3076_vm14 = vweird.f32 %v4061_v18  ;;  %3259 = vmatpush.bf16.msrb.mxu2 %v3955_v7 }
 0xddd   : > { %vm3077_vm0 = vmor %vm3075_vm15, %vm3076_vm14 }
 0xdde   : > { %v3071_v46 = vmul.f32 %v4061_v18, %v3070_v52 }
 0xde0   : > { %v3072_v58 = vmul.f32 0.5, %v3071_v46  ;;  %v3060_v46 = vsub.f32 %v6837_v49, %v6884_v63  ;;  %v3042_v49 = vsub.f32 %v6708_v24, %v6884_v63  ;;  %3260 = vmatpush.bf16.msrb.mxu2 %v3954_v33 }
 0xde2   : > { %v3073_v37 = vsub.f32 1.5, %v3072_v58 }
 0xde4   : > { %v3074_v14 = vmul.f32 %v4061_v18, %v3073_v37  ;;  %v3058_v37 = vsub.f32 %v6821_v54, %v6884_v63  ;;  %v3040_v54 = vsub.f32 %v6692_v10, %v6884_v63 }
 0xde6   : > { %v6901_v48 = vsel %vm3077_vm0, %v4061_v18, %v3074_v14 }
 0xde7   : > { %v3110_v6 = vmul.f32 %v6901_v48, %v3067_v5  ;;  %v3093_v57 = vmul.f32 %v6901_v48, %v3050_v20  ;;  %v3094_v28 = vmul.f32 %v6901_v48, %v3051_v9  ;;  %v3109_v60 = vmul.f32 %v6901_v48, %v3066_v22 }
 0xde8   : > { %v3091_v17 = vmul.f32 %v6901_v48, %v3048_v16  ;;  %v3092_v47 = vmul.f32 %v6901_v48, %v3049_v15  ;;  %v3107_v8 = vmul.f32 %v6901_v48, %v3064_v27  ;;  %v3108_v53 = vmul.f32 %v6901_v48, %v3065_v55 }
 0xde9   : > { %v3132_v23 = vpack.c.bf16 %v3094_v28, %v3093_v57  ;;  %v3140_v4 = vpack.c.bf16 %v3110_v6, %v3109_v60  ;;  %v3089_v43 = vmul.f32 %v6901_v48, %v3046_v25  ;;  %v3090_v62 = vmul.f32 %v6901_v48, %v3047_v39 }
 0xdea   : > { %v3131_v29 = vpack.c.bf16 %v3092_v47, %v3091_v17  ;;  %v3139_v18 = vpack.c.bf16 %v3108_v53, %v3107_v8  ;;  %v3105_v52 = vmul.f32 %v6901_v48, %v3062_v50  ;;  %v3106_v2 = vmul.f32 %v6901_v48, %v3063_v30 }
 0xdeb   : > { %3147 = vmatpush.bf16.msrb.mxu0 %v3132_v23  ;;  %3160 = vmatpush.bf16.msrb.mxu1 %v3140_v4  ;;  %v3087_v45 = vmul.f32 %v6901_v48, %v3044_v32  ;;  %v3088_v58 = vmul.f32 %v6901_v48, %v3045_v0  ;;  %v3130_v56 = vpack.c.bf16 %v3090_v62, %v3089_v43  ;;  %v3963_v0 = vld [vmem:[#allocation8 + $0x160] sm:$0xff] }
 0xdec   : > { %v3138_v1 = vpack.c.bf16 %v3106_v2, %v3105_v52  ;;  %v3103_v59 = vmul.f32 %v6901_v48, %v3060_v46  ;;  %v3104_v61 = vmul.f32 %v6901_v48, %v3061_v11  ;;  %v3059_v5 = vsub.f32 %v6831_v51, %v6884_v63  ;;  %v3952_v52 = vld [vmem:[#allocation8 + $0x108] sm:$0xff]  ;;  %v3951_v2 = vld [vmem:[#allocation8 + $0x100] sm:$0xff]  ;;  %v3962_v11 = vld [vmem:[#allocation8 + $0x158] sm:$0xff] }
 0xded   : > { %v3129_v14 = vpack.c.bf16 %v3088_v58, %v3087_v45  ;;  %v3085_v16 = vmul.f32 %v6901_v48, %v3042_v49  ;;  %v3086_v9 = vmul.f32 %v6901_v48, %v3043_v41  ;;  %v3101_v22 = vmul.f32 %v6901_v48, %v3058_v37 }
 0xdee   : > { %v3137_v20 = vpack.c.bf16 %v3104_v61, %v3103_v59  ;;  %v3102_v24 = vmul.f32 %v6901_v48, %v3059_v5  ;;  %v3041_v51 = vsub.f32 %v6700_v26, %v6884_v63  ;;  %v3056_v15 = vsub.f32 %v6805_v35, %v6884_v63  ;;  %v3953_v26 = vld [vmem:[#allocation8 + $0x110] sm:$0xff] }
 0xdef   : > { %3148 = vmatpush.bf16.msrb.mxu0 %v3131_v29  ;;  %3161 = vmatpush.bf16.msrb.mxu1 %v3139_v18  ;;  %v3057_v27 = vsub.f32 %v6815_v3, %v6884_v63  ;;  %v3083_v55 = vmul.f32 %v6901_v48, %v3040_v54  ;;  %v3128_v57 = vpack.c.bf16 %v3086_v9, %v3085_v16 }
 0xdf0   : > { %v3084_v6 = vmul.f32 %v6901_v48, %v3041_v51  ;;  %v3136_v28 = vpack.c.bf16 %v3102_v24, %v3101_v22  ;;  %v3099_v60 = vmul.f32 %v6901_v48, %v3056_v15  ;;  %v3038_v35 = vsub.f32 %v6678_v34, %v6884_v63  ;;  %3261 = vmatpush.bf16.msrb.mxu2 %v3953_v26  ;;  %v6989_v24 = vld [vmem:[#allocation10 + $0x8] sm:$0xff] }
 0xdf1   : > { %v3100_v10 = vmul.f32 %v6901_v48, %v3057_v27  ;;  %v3039_v3 = vsub.f32 %v6683_v44, %v6884_v63  ;;  %v3055_v17 = vsub.f32 %v6798_v36, %v6884_v63  ;;  %v3097_v53 = vmul.f32 %v6901_v48, %v3054_v13 }
 0xdf2   : > { %v3127_v47 = vpack.c.bf16 %v3084_v6, %v3083_v55  ;;  %v3081_v23 = vmul.f32 %v6901_v48, %v3038_v35  ;;  %v3036_v44 = vsub.f32 %v6675_v42, %v6884_v63  ;;  %v3052_v36 = vsub.f32 %v6776_v40, %v6884_v63  ;;  %v3143_v40 = vld.sshfl [vmem:[#allocation1] sm:$0xff pattern:$0x73625140]  ;;  %v3966_v63 = vld [vmem:[#allocation8 + $0x178] sm:$0xff] }
 0xdf3   : > { %3149 = vmatpush.bf16.msrb.mxu0 %v3130_v56  ;;  %3162 = vmatpush.bf16.msrb.mxu1 %v3138_v1  ;;  %v3135_v4 = vpack.c.bf16 %v3100_v10, %v3099_v60  ;;  %v3082_v8 = vmul.f32 %v6901_v48, %v3039_v3  ;;  %v3098_v34 = vmul.f32 %v6901_v48, %v3055_v17  ;;  %v4304_v22 = vmov 4.0  }
 0xdf4   : > { %v3079_v25 = vmul.f32 %v6901_v48, %v3036_v44  ;;  %v3080_v39 = vmul.f32 %v6901_v48, %v3037_v19  ;;  %v3095_v43 = vmul.f32 %v6901_v48, %v3052_v36  ;;  %v3096_v42 = vmul.f32 %v6901_v48, %v3053_v21  ;;  %3377 = vmatpush.bf16.msrb.mxu3 %v3966_v63  ;;  %v3964_v48 = vld [vmem:[#allocation8 + $0x168] sm:$0xff]  ;;  %v3961_v21 = vld [vmem:[#allocation8 + $0x150] sm:$0xff] }
 0xdf5   : > { %v3126_v50 = vpack.c.bf16 %v3082_v8, %v3081_v23  ;;  %v3134_v30 = vpack.c.bf16 %v3098_v34, %v3097_v53  ;;  %3262 = vmatpush.bf16.msrb.mxu2 %v3952_v52  ;;  %v3207_v54 = vperm.slane %v6989_v24, 0 }
 0xdf6   : > { %v3125_v31 = vpack.c.bf16 %v3080_v39, %v3079_v25  ;;  %v3133_v62 = vpack.c.bf16 %v3096_v42, %v3095_v43 }
 0xdf7   : > { %3150 = vmatpush.bf16.msrb.mxu0 %v3129_v14  ;;  %3163 = vmatpush.bf16.msrb.mxu1 %v3137_v20 }
 0xdf8   : > { %3378 = vmatpush.bf16.msrb.mxu3 %v3965_v12 }
 0xdf9   : > { %3263 = vmatpush.bf16.msrb.mxu2 %v3951_v2 }
 0xdfb   : > { %3151 = vmatpush.bf16.msrb.mxu0 %v3128_v57  ;;  %3164 = vmatpush.bf16.msrb.mxu1 %v3136_v28 }
 0xdfc   : > { %3379 = vmatpush.bf16.msrb.mxu3 %v3964_v48 }
 0xdff   : > { %3152 = vmatpush.bf16.msrb.mxu0 %v3127_v47  ;;  %3165 = vmatpush.bf16.msrb.mxu1 %v3135_v4 }
 0xe00   : > { %3380 = vmatpush.bf16.msrb.mxu3 %v3963_v0 }
 0xe03   : > { %3153 = vmatpush.bf16.msrb.mxu0 %v3126_v50  ;;  %3166 = vmatpush.bf16.msrb.mxu1 %v3134_v30  ;;  %v3960_v50 = vld [vmem:[#allocation8 + $0x148] sm:$0xff] }
 0xe04   : > { %3381 = vmatpush.bf16.msrb.mxu3 %v3962_v11 }
 0xe07   : > { %3154 = vmatpush.bf16.msrb.mxu0 %v3125_v31  ;;  %3167 = vmatpush.bf16.msrb.mxu1 %v3133_v62  ;;  %v3959_v31 = vld [vmem:[#allocation8 + $0x140] sm:$0xff] }
 0xe08   : > { %3382 = vmatpush.bf16.msrb.mxu3 %v3961_v21 }
 0xe0a   : > { %3155 = vmatmul.bf16.vlgmr.msrb.gmra.mxu0 %v3143_v40  ;;  %3168 = vmatmul.bf16.vlgmr.msrb.gmra.mxu1 %v3144_v38 }
 0xe0c   : > { %3383 = vmatpush.bf16.msrb.mxu3 %v3960_v50 }
 0xe10   : > { %3384 = vmatpush.bf16.msrb.mxu3 %v3959_v31 }
 0xe43   : > { %v3124_v29 = vpop.xlane.xlu0 %3123 }
 0xe44   : > { %v3173_v18 = vmax.f32 %v3124_v29, 1.0 }
 0xe46   : > { %4062 = vrcp.f32 %v3173_v18  ;;  %vm3179_vm1 = vweird.f32 %v3173_v18  ;;  %v3185_v56 = vand.u32 2147483648, %v3173_v18  ;;  %v3183_v59 = vand.u32 2147483647, %v3173_v18 }
 0xe47   : > { %4064 = vrcp.f32 %v4304_v22 }
 0xe48   : > { %v3186_v61 = vor.u32 1.1754944e-38, %v3185_v56  ;;  %vm3184_vm4 = vcmp.eq.f32.partialorder %v3183_v59, 8.507059e+37 }
 0xe4c   : > { %v4063_v32 = vpop.eup %4062 }
 0xe4d   : > { %v3175_v46 = vmul.f32 %v4063_v32, %v3173_v18  ;;  %vm3180_vm2 = vweird.f32 %v4063_v32  ;;  %v4065_v33 = vpop.eup %4064 }
 0xe4e   : > { %vm3181_vm3 = vmor %vm3179_vm1, %vm3180_vm2  ;;  %v3278_v51 = vmul.f32 4.0, %v4065_v33  ;;  %vm3282_vm5 = vweird.f32 %v4065_v33 }
 0xe4f   : > { %v3176_v45 = vsub.f32 1.0, %v3175_v46  ;;  %v3328_v46 = vperm.slane %v6989_v24, 1 }
 0xe50   : > { %v3279_v6 = vsub.f32 1.0, %v3278_v51 }
 0xe51   : > { %v3177_v58 = vmul.f32 %v4063_v32, %v3176_v45 }
 0xe52   : > { %v3280_v10 = vmul.f32 %v4065_v33, %v3279_v6 }
 0xe53   : > { %v3178_v1 = vadd.f32 %v4063_v32, %v3177_v58 }
 0xe54   : > { %v3281_v23 = vadd.f32 %v4065_v33, %v3280_v10 }
 0xe55   : > { %v3182_v7 = vsel %vm3181_vm3, %v4063_v32, %v3178_v1 }
 0xe56   : > { %v3187_v5 = vsel %vm3184_vm4, %v3186_v61, %v3182_v7  ;;  %v3283_v44 = vsel %vm3282_vm5, %v4065_v33, %v3281_v23 }
 0xe87   : > { %v3156_v49 = vpop.f32.mrf.mxu0  ;;  %v3169_v41 = vpop.f32.mrf.mxu1 }
 0xe88   : > { %v3170_v37 = vadd.f32 %v3169_v41, %v3156_v49 }
 0xe8a   : > { %v3188_v14 = vmul.f32 %v3187_v5, %v3170_v37 }
 0xe8c   : > { %v3189_v16 = vpack.c.bf16 %v3188_v14, %v3188_v14 }
 0xe8e   : > { %3264 = vmatmul.bf16.vlgmr.msrb.gmra.mxu2 %v3189_v16 }
 0xe8f   : > { %v3158_v20 = vpop.f32.mrf.mxu0  ;;  %v3171_v9 = vpop.f32.mrf.mxu1 }
 0xf11   : > { %v3265_v15 = vpop.f32.mrf.mxu2 }
 0xf12   : > { %v3266_v27 = vadd.f32 %v3265_v15, %v3207_v54 }
 0xf14   : > { %v3269_v55 = vmax.f32 %v3266_v27, 0.0 }
 0xf16   : > { %v3270_v57 = vsel %vm3119_vm13, %v3269_v55, 0.0  ;;  %v3285_v28 = vmul.f32 %v3269_v55, %v3269_v55 }
 0xf17   : > { %v3271_v60 = vrot.slane %v3270_v57, 4 }
 0xf18   : > { %v3286_v26 = vsel %vm3119_vm13, %v3285_v28, 0.0 }
 0xf19   : > { %v3272_v35 = vadd.f32 %v3271_v60, %v3270_v57  ;;  %v3287_v3 = vrot.slane %v3286_v26, 4  ;;  %v3267_v13 = vpop.f32.mrf.mxu2 }
 0xf1b   : > { %v3273_v17 = vrot.slane %v3272_v35, 2  ;;  %v3288_v47 = vadd.f32 %v3287_v3, %v3286_v26 }
 0xf1d   : > { %v3274_v4 = vadd.f32 %v3273_v17, %v3272_v35  ;;  %v3289_v8 = vrot.slane %v3288_v47, 2 }
 0xf1f   : > { %v3275_v53 = vrot.slane %v3274_v4, 1  ;;  %v3290_v34 = vadd.f32 %v3289_v8, %v3288_v47 }
 0xf21   : > { %v3276_v19 = vadd.f32 %v3275_v53, %v3274_v4  ;;  %v3291_v36 = vrot.slane %v3290_v34, 1 }
 0xf23   : > { %v3284_v25 = vmul.f32 %v3283_v44, %v3276_v19  ;;  %v3292_v39 = vadd.f32 %v3291_v36, %v3290_v34 }
 0xf25   : > { %v3293_v30 = vmul.f32 %v3292_v39, %v3283_v44  ;;  %v3294_v43 = vmul.f32 %v3284_v25, %v3284_v25  ;;  %v3297_v12 = vsub.f32 %v3269_v55, %v3284_v25 }
 0xf27   : > { %v3295_v42 = vsub.f32 %v3293_v30, %v3294_v43 }
 0xf29   : > { %v3296_v62 = vmax.f32 %v3295_v42, 0.0 }
 0xf2b   : > { %v3298_v40 = vadd.f32 1e-05, %v3296_v62 }
 0xf2d   : > { %4066 = vrsqrt.f32 %v3298_v40  ;;  %vm3305_vm7 = vweird.f32 %v3298_v40 }
 0xf33   : > { %v4067_v38 = vpop.eup %4066 }
 0xf34   : > { %v3300_v63 = vmul.f32 %v4067_v38, %v3298_v40  ;;  %vm3306_vm6 = vweird.f32 %v4067_v38 }
 0xf35   : > { %vm3307_vm8 = vmor %vm3305_vm7, %vm3306_vm6 }
 0xf36   : > { %v3301_v29 = vmul.f32 %v4067_v38, %v3300_v63 }
 0xf38   : > { %v3302_v18 = vmul.f32 0.5, %v3301_v29 }
 0xf3a   : > { %v3303_v52 = vsub.f32 1.5, %v3302_v18 }
 0xf3c   : > { %v3304_v2 = vmul.f32 %v4067_v38, %v3303_v52 }
 0xf3e   : > { %v3308_v48 = vsel %vm3307_vm8, %v4067_v38, %v3304_v2 }
 0xf3f   : > { %v3309_v32 = vmul.f32 %v3308_v48, %v3297_v12 }
 0xf41   : > { %v3310_v0 = vpack.c.bf16 %v3309_v32, %v3309_v32 }
 0xf43   : > { %3385 = vmatmul.bf16.vlgmr.msrb.gmra.mxu3 %v3310_v0 }
 0xfc6   : > { %v3386_v11 = vpop.f32.mrf.mxu3 }
 0xfc7   : > { %v3387_v45 = vadd.f32 %v3386_v11, %v3328_v46 }
 0xfc9   : > { %3390 = vst [vmem:[%s356_s20] sm:$0xf] %v3387_v45 }
 0xfca   : > { %4248 = shalt.err (!%p4245_p11)
}
 0xfcb   : > { %3981 = dma.vmem_to_hbm [thread:$0]  (%p4407_p5), %s3405_s7, 64, %s3407_s16, %s3392_s17  }
 0xfce   : > { %v3388_v58 = vpop.f32.mrf.mxu3 }
 0xfcf PF: > { %s3418_s9 = sand.u32 1, %s4283_s18   ;;  %p7183_p2 = scmp.ge.s32.totalorder %s4295_s21, 2 }
 0xfd0   : > { %s3419_s15 = scalar_lea.sflag [#allocation4], %s3418_s9 }
 0xfd1   : > { %p4001_p13 = pnand %p7183_p2, %p4370_p6 }
 0xfd3   : > { %p4002_p0 = pneg %p4001_p13 }
 0xfd5   : > { %4278 = dma.done.wait (%p4002_p0), %s3419_s15, 64  }
 0xfd6   : > { %4280 = vsyncadd (%p4002_p0), %s3419_s15, 4294967232  ;;  %s7184_s21 = sld [smem:[#allocation17_spill]]  ;;  %s7187_s18 = smov %s4287_s19 }
 0xfd7   : > { %s7185_s13 = sld [smem:[#allocation16_spill]] }
 0xfd8   : > { %s7186_s20 = sld [smem:[#allocation18_spill]] }
 0xfdc   : > { %p22_p8 = scmp.ge.s32.totalorder %s7184_s21, 4  }
 0xfdd   : > { %s7188_s19 = smov %s7185_s13 }
 0xfde   :  { %24 = sbr.rel (!%p22_p8) target bundleno = 11 (0xb), region = 122 }
 0xfe3   :  { %3425 = vsyncpa [#allocation3], 1 }
 0xfe4   :  { %3427 = vsyncpa [#allocation3 + $0x1], 1 }
 0xfe5   :  { %3428 = vsyncpa [#allocation6], 1 }
 0xfe6   :  { %3430 = vsyncpa [#allocation6 + $0x1], 1 }
 0xfe7   :  { %3431 = vsyncpa [#allocation9], 1 }
 0xfe8   :  { %3432 = vsyncpa [#allocation4], 1 }
 0xfe9   :  { %3434 = vsyncpa [#allocation4 + $0x1], 1 }

</bundles_post_ra>
